<compile_context>
chip_gen: v6e
topology: v6e:2x2x1
jax: 0.10.0
libtpu: 0.0.40
codegen_flags: <defaults>
</compile_context>

<pallas_src>
import numpy as np
import jax
import jax.numpy as jnp
from jax.experimental import pallas as pl
from jax.experimental.pallas import tpu as pltpu


def _round_up(x, m):
    return (x + m - 1) // m * m


# ---------------------------------------------------------------------------
# Fused forward kernel: one grid step = TB images
# ---------------------------------------------------------------------------

def _convnet_kernel(x_ref, wb1_ref, b1_ref, wb2_ref, b2_ref,
                    w1_ref, c1_ref, w2_ref, c2_ref, w3_ref, c3_ref, o_ref):
    """Whole SimpleConvnet forward for a tile of TB images.

    Activations are 2-D [h*TB + t, lanes] (h-major, batch fast) so that
      * a conv kernel-row tap is a TB-row shifted slice   -> banded matmuls,
      * the 2x2 H-pool is a max of adjacent TB-row blocks -> VPU max,
      * the 2x2 W-pool is a max of the two 128-aligned lane halves
        (conv columns are pre-ordered [even ow | odd ow]) -> VPU max.
    """
    TB = o_ref.shape[0]

    def band_matmul(lhs, w_ref, n_rows):
        # sum_i lhs[rows shifted by i*TB] @ w_ref[i]   (M = n_rows*TB)
        acc = jnp.dot(lhs[0:n_rows * TB], w_ref[0],
                      preferred_element_type=jnp.float32)
        for i in range(1, w_ref.shape[0]):
            acc = acc + jnp.dot(lhs[i * TB:(n_rows + i) * TB], w_ref[i],
                                preferred_element_type=jnp.float32)
        return acc

    def pool2x2(y, n_rows, half):
        # H-pool: max of adjacent TB-row blocks; W-pool: max of lane halves.
        blocks = []
        for p in range(n_rows // 2):
            hb = jnp.maximum(y[(2 * p) * TB:(2 * p + 1) * TB],
                             y[(2 * p + 1) * TB:(2 * p + 2) * TB])
            blocks.append(jnp.maximum(hb[:, :half], hb[:, half:]))
        return jnp.concatenate(blocks, axis=0)

    # ---- conv1 + bias + ReLU + 2x2 max-pool
    h_in = x_ref.shape[0] // TB
    ho1 = h_in - wb1_ref.shape[0] + 1
    x = x_ref[...]                                           # [h_in*TB, W*Cin]
    y1 = jnp.maximum(band_matmul(x, wb1_ref, ho1) + b1_ref[...], 0.0)
    p1 = pool2x2(y1, ho1, wb1_ref.shape[2] // 2)             # [(ho1//2)*TB, half1]

    # ---- conv2 + bias + ReLU + 2x2 max-pool
    hp1 = ho1 // 2
    ho2 = hp1 - wb2_ref.shape[0] + 1
    y2 = jnp.maximum(band_matmul(p1, wb2_ref, ho2) + b2_ref[...], 0.0)
    p2 = pool2x2(y2, ho2, wb2_ref.shape[2] // 2)             # [(ho2//2)*TB, half2]

    # ---- fc1 (banded sum over pooled-row blocks) + ReLU, fc2 + ReLU, fc3
    a = jnp.maximum(band_matmul(p2, w1_ref, 1) + c1_ref[...], 0.0)   # [TB, 128]
    a = jnp.maximum(jnp.dot(a, w2_ref[...],
                            preferred_element_type=jnp.float32) + c2_ref[...], 0.0)
    o_ref[...] = (jnp.dot(a, w3_ref[...],
                          preferred_element_type=jnp.float32)
                  + c3_ref[...]).astype(o_ref.dtype)


# ---------------------------------------------------------------------------
# One-time host-side (NumPy) weight preparation — run OUTSIDE jit, reused
# ---------------------------------------------------------------------------

def _conv_band_weights_split(w, b, *, w_in, k_pad, half):
    """Banded conv weights with output columns split into [even-ow | odd-ow] halves.

    Input lanes:  wi*Cin + ci                (wi in [0, w_in))
    Output lanes: even half:  owp*Cout + co         for ow = 2*owp
                  odd  half:  half + owp*Cout + co  for ow = 2*owp + 1
    Columns with ow >= 2*(Wo//2) are dropped (the 2x2 pool discards them).
    """
    w = np.asarray(w, np.float32)
    b = np.asarray(b, np.float32)
    cout, cin, kh, kw = w.shape
    wo = w_in - kw + 1
    wp = wo // 2
    wb = np.zeros((kh, k_pad, 2 * half), np.float32)
    brow = np.zeros((1, 2 * half), np.float32)
    for ow in range(2 * wp):
        owp, par = divmod(ow, 2)
        col = par * half + owp * cout
        brow[0, col:col + cout] = b
        for i in range(kh):
            for j in range(kw):
                wi = ow + j
                wb[i, wi * cin:(wi + 1) * cin, col:col + cout] = w[:, :, i, j].T
    return jnp.asarray(wb), jnp.asarray(brow)


def _fc1_block_weights(w, b, *, c_in, hp, wp, k_pad, n_pad):
    """fc1 as `hp` banded blocks over pooled rows; lanes are (w, c), torch order (c, h, w)."""
    w = np.asarray(w, np.float32)                    # [n1, c_in*hp*wp]
    n1 = w.shape[0]
    w4 = w.reshape(n1, c_in, hp, wp).transpose(2, 3, 1, 0)   # [hp, wp, c, n1]
    blk = np.zeros((hp, k_pad, n_pad), np.float32)
    blk[:, :wp * c_in, :n1] = w4.reshape(hp, wp * c_in, n1)
    brow = np.zeros((1, n_pad), np.float32)
    brow[0, :n1] = np.asarray(b, np.float32)
    return jnp.asarray(blk), jnp.asarray(brow)


def _fc_pad(w, b, *, k_pad, n_pad):
    """torch Linear weight [N, K] -> zero-padded [k_pad, n_pad] (x @ W layout)."""
    w = np.asarray(w, np.float32)
    n, k = w.shape
    wpad = np.zeros((k_pad, n_pad), np.float32)
    wpad[:k, :n] = w.T
    brow = np.zeros((1, n_pad), np.float32)
    brow[0, :n] = np.asarray(b, np.float32)
    return jnp.asarray(wpad), jnp.asarray(brow)


def prepare_params(params, *, image_hw=28):
    """Build band/padded kernel weights once (host NumPy); call outside jit."""
    w1c, b1c = params["conv1_w"], params["conv1_b"]
    w2c, b2c = params["conv2_w"], params["conv2_b"]
    cout1, cin1, _, kw1 = w1c.shape
    cout2, _, _, kw2 = w2c.shape

    wi1 = image_hw
    wo1 = wi1 - kw1 + 1
    wp1 = wo1 // 2
    wi2 = wp1
    wo2 = wi2 - kw2 + 1
    wp2 = wo2 // 2

    half1 = _round_up(wp1 * cout1, 128)      # pooled conv1 lane width -> 256
    half2 = _round_up(wp2 * cout2, 128)      # pooled conv2 lane width -> 256
    assert params["fc1_w"].shape[1] == cout2 * wp2 * wp2, "fc1 size mismatch"

    wb1, bb1 = _conv_band_weights_split(w1c, b1c, w_in=wi1,
                                        k_pad=wi1 * cin1, half=half1)
    wb2, bb2 = _conv_band_weights_split(w2c, b2c, w_in=wi2,
                                        k_pad=half1, half=half2)

    n1 = params["fc1_w"].shape[0]
    n2 = params["fc2_w"].shape[0]
    n3 = params["fc3_w"].shape[0]
    n1p, n2p, n3p = (_round_up(n, 128) for n in (n1, n2, n3))
    fw1, fb1 = _fc1_block_weights(params["fc1_w"], params["fc1_b"],
                                  c_in=cout2, hp=wp2, wp=wp2,
                                  k_pad=half2, n_pad=n1p)
    fw2, fb2 = _fc_pad(params["fc2_w"], params["fc2_b"], k_pad=n1p, n_pad=n2p)
    fw3, fb3 = _fc_pad(params["fc3_w"], params["fc3_b"], k_pad=n2p, n_pad=n3p)
    return dict(wb1=wb1, bb1=bb1, wb2=wb2, bb2=bb2,
                fw1=fw1, fb1=fb1, fw2=fw2, fb2=fb2, fw3=fw3, fb3=fb3)


# ---------------------------------------------------------------------------
# Pallas wrapper
# ---------------------------------------------------------------------------

def _choose_tb(batch, block_b):
    tb = min(block_b, _round_up(batch, 8))
    # >= 2 grid steps when the batch allows it so both v7x TensorCores get work.
    if batch >= 16 and -(-batch // tb) < 2:
        tb = _round_up(-(-batch // 2), 8)
    return max(8, min(tb, block_b))


def _resident_spec(arr):
    zeros = (0,) * arr.ndim
    return pl.BlockSpec(arr.shape, lambda i: zeros)


def simple_convnet_forward(kp, x, *, num_classes=10, block_b=64):
    """x: [B, Cin, H, W] float32 (NCHW, 28x28x1 for this module). Returns [B, 10]."""
    b, cin, h, w = x.shape
    tb = _choose_tb(b, block_b)
    pb = _round_up(b, tb)

    # NCHW -> per-tile h-major rows: row (g*H + h)*TB + t_local, lanes = (w, cin).
    xr = jnp.transpose(x, (0, 2, 3, 1)).reshape(b, h, w * cin)
    if pb > b:
        xr = jnp.concatenate(
            [xr, jnp.zeros((pb - b, h, w * cin), xr.dtype)], axis=0)
    xh = (xr.reshape(pb // tb, tb, h, w * cin)
            .transpose(0, 2, 1, 3)
            .reshape((pb // tb) * h * tb, w * cin))

    n_out = kp["fw3"].shape[1]
    out = pl.pallas_call(
        _convnet_kernel,
        out_shape=jax.ShapeDtypeStruct((pb, n_out), jnp.float32),
        grid_spec=pltpu.PrefetchScalarGridSpec(
            num_scalar_prefetch=0,
            grid=(pb // tb,),
            in_specs=[
                pl.BlockSpec((h * tb, w * cin), lambda i: (i, 0)),   # image tile
                _resident_spec(kp["wb1"]), _resident_spec(kp["bb1"]),
                _resident_spec(kp["wb2"]), _resident_spec(kp["bb2"]),
                _resident_spec(kp["fw1"]), _resident_spec(kp["fb1"]),
                _resident_spec(kp["fw2"]), _resident_spec(kp["fb2"]),
                _resident_spec(kp["fw3"]), _resident_spec(kp["fb3"]),
            ],
            out_specs=pl.BlockSpec((tb, n_out), lambda i: (i, 0)),
        ),
        compiler_params=pltpu.CompilerParams(
            dimension_semantics=("parallel",),
            vmem_limit_bytes=48 * 1024 * 1024),
    )(xh, kp["wb1"], kp["bb1"], kp["wb2"], kp["bb2"],
      kp["fw1"], kp["fb1"], kp["fw2"], kp["fb2"], kp["fw3"], kp["fb3"])
    return out[:b, :num_classes]


# ---------------------------------------------------------------------------
# Params + pure-XLA reference (sanity check only)
# ---------------------------------------------------------------------------

def init_params(key):
    ks = jax.random.split(key, 10)
    s = 0.05
    return {
        "conv1_w": s * jax.random.normal(ks[0], (16, 1, 3, 3), jnp.float32),
        "conv1_b": s * jax.random.normal(ks[1], (16,), jnp.float32),
        "conv2_w": s * jax.random.normal(ks[2], (32, 16, 3, 3), jnp.float32),
        "conv2_b": s * jax.random.normal(ks[3], (32,), jnp.float32),
        "fc1_w":   s * jax.random.normal(ks[4], (128, 32 * 5 * 5), jnp.float32),
        "fc1_b":   s * jax.random.normal(ks[5], (128,), jnp.float32),
        "fc2_w":   s * jax.random.normal(ks[6], (64, 128), jnp.float32),
        "fc2_b":   s * jax.random.normal(ks[7], (64,), jnp.float32),
        "fc3_w":   s * jax.random.normal(ks[8], (10, 64), jnp.float32),
        "fc3_b":   s * jax.random.normal(ks[9], (10,), jnp.float32),
    }


def reference_forward(params, x):
    def conv(x, w, b):
        y = jax.lax.conv_general_dilated(
            x, w, (1, 1), "VALID",
            dimension_numbers=("NCHW", "OIHW", "NCHW"))
        return jnp.maximum(y + b[None, :, None, None], 0.0)

    def pool(x):
        return jax.lax.reduce_window(x, -jnp.inf, jax.lax.max,
                                     (1, 1, 2, 2), (1, 1, 2, 2), "VALID")

    h = pool(conv(x, params["conv1_w"], params["conv1_b"]))
    h = pool(conv(h, params["conv2_w"], params["conv2_b"]))
    h = h.reshape(h.shape[0], -1)
    h = jnp.maximum(h @ params["fc1_w"].T + params["fc1_b"], 0.0)
    h = jnp.maximum(h @ params["fc2_w"].T + params["fc2_b"], 0.0)
    return h @ params["fc3_w"].T + params["fc3_b"]


if __name__ == "__main__":
    key = jax.random.PRNGKey(0)
    k_params, k_x = jax.random.split(key)
    params = init_params(k_params)
    kp = prepare_params(params)          # one-time host-side prep (outside jit)

    # Smallest shape consistent with fc1 = 32*5*5: spatial 28x28, Cin=1.
    x = jax.random.normal(k_x, (2, 1, 28, 28), jnp.float32)

    fwd = jax.jit(simple_convnet_forward)
    out = jax.block_until_ready(fwd(kp, x))
    assert out.shape == (2, 10) and out.dtype == jnp.float32

    ref = jax.jit(reference_forward)(params, x)
    err = float(jnp.max(jnp.abs(out - ref)))
    assert err < 5e-3, f"mismatch vs XLA reference: max abs err = {err}"
    print("KERNEL_OK")
</pallas_src>

<mosaic_0001>
module attributes {stable_mosaic.version = 11 : i64} {
  func.func @_convnet_kernel(%arg0: i32, %arg1: memref<224x28xf32, #tpu.memory_space<vmem>>, %arg2: memref<3x28x512xf32, #tpu.memory_space<vmem>>, %arg3: memref<1x512xf32, #tpu.memory_space<vmem>>, %arg4: memref<3x256x512xf32, #tpu.memory_space<vmem>>, %arg5: memref<1x512xf32, #tpu.memory_space<vmem>>, %arg6: memref<5x256x128xf32, #tpu.memory_space<vmem>>, %arg7: memref<1x128xf32, #tpu.memory_space<vmem>>, %arg8: memref<128x128xf32, #tpu.memory_space<vmem>>, %arg9: memref<1x128xf32, #tpu.memory_space<vmem>>, %arg10: memref<128x128xf32, #tpu.memory_space<vmem>>, %arg11: memref<1x128xf32, #tpu.memory_space<vmem>>, %arg12: memref<8x128xf32, #tpu.memory_space<vmem>>) attributes {dimension_semantics = [#tpu.dimension_semantics<parallel>], iteration_bounds = array<i64: 1>, scalar_prefetch = 0 : i64, scratch_operands = 0 : i64, tpu.core_type = #tpu.core_type<tc>, window_params = [{transform_indices = @transform_0, window_bounds = array<i64: 224, 28>}, {pipeline_mode = #tpu.pipeline_mode<synchronous>, transform_indices = @transform_1, window_bounds = array<i64: 3, 28, 512>}, {pipeline_mode = #tpu.pipeline_mode<synchronous>, transform_indices = @transform_2, window_bounds = array<i64: 1, 512>}, {pipeline_mode = #tpu.pipeline_mode<synchronous>, transform_indices = @transform_3, window_bounds = array<i64: 3, 256, 512>}, {pipeline_mode = #tpu.pipeline_mode<synchronous>, transform_indices = @transform_4, window_bounds = array<i64: 1, 512>}, {pipeline_mode = #tpu.pipeline_mode<synchronous>, transform_indices = @transform_5, window_bounds = array<i64: 5, 256, 128>}, {pipeline_mode = #tpu.pipeline_mode<synchronous>, transform_indices = @transform_6, window_bounds = array<i64: 1, 128>}, {pipeline_mode = #tpu.pipeline_mode<synchronous>, transform_indices = @transform_7, window_bounds = array<i64: 128, 128>}, {pipeline_mode = #tpu.pipeline_mode<synchronous>, transform_indices = @transform_8, window_bounds = array<i64: 1, 128>}, {pipeline_mode = #tpu.pipeline_mode<synchronous>, transform_indices = @transform_9, window_bounds = array<i64: 128, 128>}, {pipeline_mode = #tpu.pipeline_mode<synchronous>, transform_indices = @transform_10, window_bounds = array<i64: 1, 128>}, {transform_indices = @transform_11, window_bounds = array<i64: 8, 128>}]} {
    %c0 = arith.constant 0 : index
    %c0_0 = arith.constant 0 : index
    %0 = vector.load %arg1[%c0, %c0_0] : memref<224x28xf32, #tpu.memory_space<vmem>>, vector<224x28xf32>
    %1 = vector.extract_strided_slice %0 {offsets = [0, 0], sizes = [208, 28], strides = [1, 1]} : vector<224x28xf32> to vector<208x28xf32>
    %c0_1 = arith.constant 0 : index
    %c0_2 = arith.constant 0 : index
    %c0_3 = arith.constant 0 : index
    %2 = vector.load %arg2[%c0_1, %c0_2, %c0_3] : memref<3x28x512xf32, #tpu.memory_space<vmem>>, vector<1x28x512xf32>
    %3 = vector.shape_cast %2 : vector<1x28x512xf32> to vector<28x512xf32>
    %cst = arith.constant dense<0.000000e+00> : vector<208x512xf32>
    %4 = tpu.matmul %1, %3, %cst {dimension_numbers = #tpu.dot_dimension_numbers<[1], [0], [0], [1], [0, 0, 1, 1], [], []>} : vector<208x28xf32>, vector<28x512xf32>, vector<208x512xf32> -> vector<208x512xf32>
    %5 = vector.extract_strided_slice %0 {offsets = [8, 0], sizes = [208, 28], strides = [1, 1]} : vector<224x28xf32> to vector<208x28xf32>
    %c1 = arith.constant 1 : index
    %c0_4 = arith.constant 0 : index
    %c0_5 = arith.constant 0 : index
    %6 = vector.load %arg2[%c1, %c0_4, %c0_5] : memref<3x28x512xf32, #tpu.memory_space<vmem>>, vector<1x28x512xf32>
    %7 = vector.shape_cast %6 : vector<1x28x512xf32> to vector<28x512xf32>
    %cst_6 = arith.constant dense<0.000000e+00> : vector<208x512xf32>
    %8 = tpu.matmul %5, %7, %cst_6 {dimension_numbers = #tpu.dot_dimension_numbers<[1], [0], [0], [1], [0, 0, 1, 1], [], []>} : vector<208x28xf32>, vector<28x512xf32>, vector<208x512xf32> -> vector<208x512xf32>
    %9 = arith.addf %4, %8 : vector<208x512xf32>
    %10 = vector.extract_strided_slice %0 {offsets = [16, 0], sizes = [208, 28], strides = [1, 1]} : vector<224x28xf32> to vector<208x28xf32>
    %c2 = arith.constant 2 : index
    %c0_7 = arith.constant 0 : index
    %c0_8 = arith.constant 0 : index
    %11 = vector.load %arg2[%c2, %c0_7, %c0_8] : memref<3x28x512xf32, #tpu.memory_space<vmem>>, vector<1x28x512xf32>
    %12 = vector.shape_cast %11 : vector<1x28x512xf32> to vector<28x512xf32>
    %cst_9 = arith.constant dense<0.000000e+00> : vector<208x512xf32>
    %13 = tpu.matmul %10, %12, %cst_9 {dimension_numbers = #tpu.dot_dimension_numbers<[1], [0], [0], [1], [0, 0, 1, 1], [], []>} : vector<208x28xf32>, vector<28x512xf32>, vector<208x512xf32> -> vector<208x512xf32>
    %14 = arith.addf %9, %13 : vector<208x512xf32>
    %c0_10 = arith.constant 0 : index
    %c0_11 = arith.constant 0 : index
    %15 = vector.load %arg3[%c0_10, %c0_11] : memref<1x512xf32, #tpu.memory_space<vmem>>, vector<1x512xf32>
    %16 = vector.broadcast %15 : vector<1x512xf32> to vector<208x512xf32>
    %17 = arith.addf %14, %16 : vector<208x512xf32>
    %cst_12 = arith.constant 0.000000e+00 : f32
    %18 = vector.broadcast %cst_12 : f32 to vector<208x512xf32>
    %19 = arith.maximumf %17, %18 : vector<208x512xf32>
    %20 = vector.extract_strided_slice %19 {offsets = [0, 0], sizes = [8, 512], strides = [1, 1]} : vector<208x512xf32> to vector<8x512xf32>
    %21 = vector.extract_strided_slice %19 {offsets = [8, 0], sizes = [8, 512], strides = [1, 1]} : vector<208x512xf32> to vector<8x512xf32>
    %22 = arith.maximumf %20, %21 : vector<8x512xf32>
    %23 = vector.extract_strided_slice %22 {offsets = [0, 0], sizes = [8, 256], strides = [1, 1]} : vector<8x512xf32> to vector<8x256xf32>
    %24 = vector.extract_strided_slice %22 {offsets = [0, 256], sizes = [8, 256], strides = [1, 1]} : vector<8x512xf32> to vector<8x256xf32>
    %25 = arith.maximumf %23, %24 : vector<8x256xf32>
    %26 = vector.extract_strided_slice %19 {offsets = [16, 0], sizes = [8, 512], strides = [1, 1]} : vector<208x512xf32> to vector<8x512xf32>
    %27 = vector.extract_strided_slice %19 {offsets = [24, 0], sizes = [8, 512], strides = [1, 1]} : vector<208x512xf32> to vector<8x512xf32>
    %28 = arith.maximumf %26, %27 : vector<8x512xf32>
    %29 = vector.extract_strided_slice %28 {offsets = [0, 0], sizes = [8, 256], strides = [1, 1]} : vector<8x512xf32> to vector<8x256xf32>
    %30 = vector.extract_strided_slice %28 {offsets = [0, 256], sizes = [8, 256], strides = [1, 1]} : vector<8x512xf32> to vector<8x256xf32>
    %31 = arith.maximumf %29, %30 : vector<8x256xf32>
    %32 = vector.extract_strided_slice %19 {offsets = [32, 0], sizes = [8, 512], strides = [1, 1]} : vector<208x512xf32> to vector<8x512xf32>
    %33 = vector.extract_strided_slice %19 {offsets = [40, 0], sizes = [8, 512], strides = [1, 1]} : vector<208x512xf32> to vector<8x512xf32>
    %34 = arith.maximumf %32, %33 : vector<8x512xf32>
    %35 = vector.extract_strided_slice %34 {offsets = [0, 0], sizes = [8, 256], strides = [1, 1]} : vector<8x512xf32> to vector<8x256xf32>
    %36 = vector.extract_strided_slice %34 {offsets = [0, 256], sizes = [8, 256], strides = [1, 1]} : vector<8x512xf32> to vector<8x256xf32>
    %37 = arith.maximumf %35, %36 : vector<8x256xf32>
    %38 = vector.extract_strided_slice %19 {offsets = [48, 0], sizes = [8, 512], strides = [1, 1]} : vector<208x512xf32> to vector<8x512xf32>
    %39 = vector.extract_strided_slice %19 {offsets = [56, 0], sizes = [8, 512], strides = [1, 1]} : vector<208x512xf32> to vector<8x512xf32>
    %40 = arith.maximumf %38, %39 : vector<8x512xf32>
    %41 = vector.extract_strided_slice %40 {offsets = [0, 0], sizes = [8, 256], strides = [1, 1]} : vector<8x512xf32> to vector<8x256xf32>
    %42 = vector.extract_strided_slice %40 {offsets = [0, 256], sizes = [8, 256], strides = [1, 1]} : vector<8x512xf32> to vector<8x256xf32>
    %43 = arith.maximumf %41, %42 : vector<8x256xf32>
    %44 = vector.extract_strided_slice %19 {offsets = [64, 0], sizes = [8, 512], strides = [1, 1]} : vector<208x512xf32> to vector<8x512xf32>
    %45 = vector.extract_strided_slice %19 {offsets = [72, 0], sizes = [8, 512], strides = [1, 1]} : vector<208x512xf32> to vector<8x512xf32>
    %46 = arith.maximumf %44, %45 : vector<8x512xf32>
    %47 = vector.extract_strided_slice %46 {offsets = [0, 0], sizes = [8, 256], strides = [1, 1]} : vector<8x512xf32> to vector<8x256xf32>
    %48 = vector.extract_strided_slice %46 {offsets = [0, 256], sizes = [8, 256], strides = [1, 1]} : vector<8x512xf32> to vector<8x256xf32>
    %49 = arith.maximumf %47, %48 : vector<8x256xf32>
    %50 = vector.extract_strided_slice %19 {offsets = [80, 0], sizes = [8, 512], strides = [1, 1]} : vector<208x512xf32> to vector<8x512xf32>
    %51 = vector.extract_strided_slice %19 {offsets = [88, 0], sizes = [8, 512], strides = [1, 1]} : vector<208x512xf32> to vector<8x512xf32>
    %52 = arith.maximumf %50, %51 : vector<8x512xf32>
    %53 = vector.extract_strided_slice %52 {offsets = [0, 0], sizes = [8, 256], strides = [1, 1]} : vector<8x512xf32> to vector<8x256xf32>
    %54 = vector.extract_strided_slice %52 {offsets = [0, 256], sizes = [8, 256], strides = [1, 1]} : vector<8x512xf32> to vector<8x256xf32>
    %55 = arith.maximumf %53, %54 : vector<8x256xf32>
    %56 = vector.extract_strided_slice %19 {offsets = [96, 0], sizes = [8, 512], strides = [1, 1]} : vector<208x512xf32> to vector<8x512xf32>
    %57 = vector.extract_strided_slice %19 {offsets = [104, 0], sizes = [8, 512], strides = [1, 1]} : vector<208x512xf32> to vector<8x512xf32>
    %58 = arith.maximumf %56, %57 : vector<8x512xf32>
    %59 = vector.extract_strided_slice %58 {offsets = [0, 0], sizes = [8, 256], strides = [1, 1]} : vector<8x512xf32> to vector<8x256xf32>
    %60 = vector.extract_strided_slice %58 {offsets = [0, 256], sizes = [8, 256], strides = [1, 1]} : vector<8x512xf32> to vector<8x256xf32>
    %61 = arith.maximumf %59, %60 : vector<8x256xf32>
    %62 = vector.extract_strided_slice %19 {offsets = [112, 0], sizes = [8, 512], strides = [1, 1]} : vector<208x512xf32> to vector<8x512xf32>
    %63 = vector.extract_strided_slice %19 {offsets = [120, 0], sizes = [8, 512], strides = [1, 1]} : vector<208x512xf32> to vector<8x512xf32>
    %64 = arith.maximumf %62, %63 : vector<8x512xf32>
    %65 = vector.extract_strided_slice %64 {offsets = [0, 0], sizes = [8, 256], strides = [1, 1]} : vector<8x512xf32> to vector<8x256xf32>
    %66 = vector.extract_strided_slice %64 {offsets = [0, 256], sizes = [8, 256], strides = [1, 1]} : vector<8x512xf32> to vector<8x256xf32>
    %67 = arith.maximumf %65, %66 : vector<8x256xf32>
    %68 = vector.extract_strided_slice %19 {offsets = [128, 0], sizes = [8, 512], strides = [1, 1]} : vector<208x512xf32> to vector<8x512xf32>
    %69 = vector.extract_strided_slice %19 {offsets = [136, 0], sizes = [8, 512], strides = [1, 1]} : vector<208x512xf32> to vector<8x512xf32>
    %70 = arith.maximumf %68, %69 : vector<8x512xf32>
    %71 = vector.extract_strided_slice %70 {offsets = [0, 0], sizes = [8, 256], strides = [1, 1]} : vector<8x512xf32> to vector<8x256xf32>
    %72 = vector.extract_strided_slice %70 {offsets = [0, 256], sizes = [8, 256], strides = [1, 1]} : vector<8x512xf32> to vector<8x256xf32>
    %73 = arith.maximumf %71, %72 : vector<8x256xf32>
    %74 = vector.extract_strided_slice %19 {offsets = [144, 0], sizes = [8, 512], strides = [1, 1]} : vector<208x512xf32> to vector<8x512xf32>
    %75 = vector.extract_strided_slice %19 {offsets = [152, 0], sizes = [8, 512], strides = [1, 1]} : vector<208x512xf32> to vector<8x512xf32>
    %76 = arith.maximumf %74, %75 : vector<8x512xf32>
    %77 = vector.extract_strided_slice %76 {offsets = [0, 0], sizes = [8, 256], strides = [1, 1]} : vector<8x512xf32> to vector<8x256xf32>
    %78 = vector.extract_strided_slice %76 {offsets = [0, 256], sizes = [8, 256], strides = [1, 1]} : vector<8x512xf32> to vector<8x256xf32>
    %79 = arith.maximumf %77, %78 : vector<8x256xf32>
    %80 = vector.extract_strided_slice %19 {offsets = [160, 0], sizes = [8, 512], strides = [1, 1]} : vector<208x512xf32> to vector<8x512xf32>
    %81 = vector.extract_strided_slice %19 {offsets = [168, 0], sizes = [8, 512], strides = [1, 1]} : vector<208x512xf32> to vector<8x512xf32>
    %82 = arith.maximumf %80, %81 : vector<8x512xf32>
    %83 = vector.extract_strided_slice %82 {offsets = [0, 0], sizes = [8, 256], strides = [1, 1]} : vector<8x512xf32> to vector<8x256xf32>
    %84 = vector.extract_strided_slice %82 {offsets = [0, 256], sizes = [8, 256], strides = [1, 1]} : vector<8x512xf32> to vector<8x256xf32>
    %85 = arith.maximumf %83, %84 : vector<8x256xf32>
    %86 = vector.extract_strided_slice %19 {offsets = [176, 0], sizes = [8, 512], strides = [1, 1]} : vector<208x512xf32> to vector<8x512xf32>
    %87 = vector.extract_strided_slice %19 {offsets = [184, 0], sizes = [8, 512], strides = [1, 1]} : vector<208x512xf32> to vector<8x512xf32>
    %88 = arith.maximumf %86, %87 : vector<8x512xf32>
    %89 = vector.extract_strided_slice %88 {offsets = [0, 0], sizes = [8, 256], strides = [1, 1]} : vector<8x512xf32> to vector<8x256xf32>
    %90 = vector.extract_strided_slice %88 {offsets = [0, 256], sizes = [8, 256], strides = [1, 1]} : vector<8x512xf32> to vector<8x256xf32>
    %91 = arith.maximumf %89, %90 : vector<8x256xf32>
    %92 = vector.extract_strided_slice %19 {offsets = [192, 0], sizes = [8, 512], strides = [1, 1]} : vector<208x512xf32> to vector<8x512xf32>
    %93 = vector.extract_strided_slice %19 {offsets = [200, 0], sizes = [8, 512], strides = [1, 1]} : vector<208x512xf32> to vector<8x512xf32>
    %94 = arith.maximumf %92, %93 : vector<8x512xf32>
    %95 = vector.extract_strided_slice %94 {offsets = [0, 0], sizes = [8, 256], strides = [1, 1]} : vector<8x512xf32> to vector<8x256xf32>
    %96 = vector.extract_strided_slice %94 {offsets = [0, 256], sizes = [8, 256], strides = [1, 1]} : vector<8x512xf32> to vector<8x256xf32>
    %97 = arith.maximumf %95, %96 : vector<8x256xf32>
    %98 = tpu.concatenate %25, %31, %37, %43, %49, %55, %61, %67, %73, %79, %85, %91, %97 in 0 : vector<8x256xf32>, vector<8x256xf32>, vector<8x256xf32>, vector<8x256xf32>, vector<8x256xf32>, vector<8x256xf32>, vector<8x256xf32>, vector<8x256xf32>, vector<8x256xf32>, vector<8x256xf32>, vector<8x256xf32>, vector<8x256xf32>, vector<8x256xf32> -> vector<104x256xf32>
    %99 = vector.extract_strided_slice %98 {offsets = [0, 0], sizes = [88, 256], strides = [1, 1]} : vector<104x256xf32> to vector<88x256xf32>
    %c0_13 = arith.constant 0 : index
    %c0_14 = arith.constant 0 : index
    %c0_15 = arith.constant 0 : index
    %100 = vector.load %arg4[%c0_13, %c0_14, %c0_15] : memref<3x256x512xf32, #tpu.memory_space<vmem>>, vector<1x256x512xf32>
    %101 = vector.shape_cast %100 : vector<1x256x512xf32> to vector<256x512xf32>
    %cst_16 = arith.constant dense<0.000000e+00> : vector<88x512xf32>
    %102 = tpu.matmul %99, %101, %cst_16 {dimension_numbers = #tpu.dot_dimension_numbers<[1], [0], [0], [1], [0, 0, 1, 1], [], []>} : vector<88x256xf32>, vector<256x512xf32>, vector<88x512xf32> -> vector<88x512xf32>
    %103 = vector.extract_strided_slice %98 {offsets = [8, 0], sizes = [88, 256], strides = [1, 1]} : vector<104x256xf32> to vector<88x256xf32>
    %c1_17 = arith.constant 1 : index
    %c0_18 = arith.constant 0 : index
    %c0_19 = arith.constant 0 : index
    %104 = vector.load %arg4[%c1_17, %c0_18, %c0_19] : memref<3x256x512xf32, #tpu.memory_space<vmem>>, vector<1x256x512xf32>
    %105 = vector.shape_cast %104 : vector<1x256x512xf32> to vector<256x512xf32>
    %cst_20 = arith.constant dense<0.000000e+00> : vector<88x512xf32>
    %106 = tpu.matmul %103, %105, %cst_20 {dimension_numbers = #tpu.dot_dimension_numbers<[1], [0], [0], [1], [0, 0, 1, 1], [], []>} : vector<88x256xf32>, vector<256x512xf32>, vector<88x512xf32> -> vector<88x512xf32>
    %107 = arith.addf %102, %106 : vector<88x512xf32>
    %108 = vector.extract_strided_slice %98 {offsets = [16, 0], sizes = [88, 256], strides = [1, 1]} : vector<104x256xf32> to vector<88x256xf32>
    %c2_21 = arith.constant 2 : index
    %c0_22 = arith.constant 0 : index
    %c0_23 = arith.constant 0 : index
    %109 = vector.load %arg4[%c2_21, %c0_22, %c0_23] : memref<3x256x512xf32, #tpu.memory_space<vmem>>, vector<1x256x512xf32>
    %110 = vector.shape_cast %109 : vector<1x256x512xf32> to vector<256x512xf32>
    %cst_24 = arith.constant dense<0.000000e+00> : vector<88x512xf32>
    %111 = tpu.matmul %108, %110, %cst_24 {dimension_numbers = #tpu.dot_dimension_numbers<[1], [0], [0], [1], [0, 0, 1, 1], [], []>} : vector<88x256xf32>, vector<256x512xf32>, vector<88x512xf32> -> vector<88x512xf32>
    %112 = arith.addf %107, %111 : vector<88x512xf32>
    %c0_25 = arith.constant 0 : index
    %c0_26 = arith.constant 0 : index
    %113 = vector.load %arg5[%c0_25, %c0_26] : memref<1x512xf32, #tpu.memory_space<vmem>>, vector<1x512xf32>
    %114 = vector.broadcast %113 : vector<1x512xf32> to vector<88x512xf32>
    %115 = arith.addf %112, %114 : vector<88x512xf32>
    %cst_27 = arith.constant 0.000000e+00 : f32
    %116 = vector.broadcast %cst_27 : f32 to vector<88x512xf32>
    %117 = arith.maximumf %115, %116 : vector<88x512xf32>
    %118 = vector.extract_strided_slice %117 {offsets = [0, 0], sizes = [8, 512], strides = [1, 1]} : vector<88x512xf32> to vector<8x512xf32>
    %119 = vector.extract_strided_slice %117 {offsets = [8, 0], sizes = [8, 512], strides = [1, 1]} : vector<88x512xf32> to vector<8x512xf32>
    %120 = arith.maximumf %118, %119 : vector<8x512xf32>
    %121 = vector.extract_strided_slice %120 {offsets = [0, 0], sizes = [8, 256], strides = [1, 1]} : vector<8x512xf32> to vector<8x256xf32>
    %122 = vector.extract_strided_slice %120 {offsets = [0, 256], sizes = [8, 256], strides = [1, 1]} : vector<8x512xf32> to vector<8x256xf32>
    %123 = arith.maximumf %121, %122 : vector<8x256xf32>
    %124 = vector.extract_strided_slice %117 {offsets = [16, 0], sizes = [8, 512], strides = [1, 1]} : vector<88x512xf32> to vector<8x512xf32>
    %125 = vector.extract_strided_slice %117 {offsets = [24, 0], sizes = [8, 512], strides = [1, 1]} : vector<88x512xf32> to vector<8x512xf32>
    %126 = arith.maximumf %124, %125 : vector<8x512xf32>
    %127 = vector.extract_strided_slice %126 {offsets = [0, 0], sizes = [8, 256], strides = [1, 1]} : vector<8x512xf32> to vector<8x256xf32>
    %128 = vector.extract_strided_slice %126 {offsets = [0, 256], sizes = [8, 256], strides = [1, 1]} : vector<8x512xf32> to vector<8x256xf32>
    %129 = arith.maximumf %127, %128 : vector<8x256xf32>
    %130 = vector.extract_strided_slice %117 {offsets = [32, 0], sizes = [8, 512], strides = [1, 1]} : vector<88x512xf32> to vector<8x512xf32>
    %131 = vector.extract_strided_slice %117 {offsets = [40, 0], sizes = [8, 512], strides = [1, 1]} : vector<88x512xf32> to vector<8x512xf32>
    %132 = arith.maximumf %130, %131 : vector<8x512xf32>
    %133 = vector.extract_strided_slice %132 {offsets = [0, 0], sizes = [8, 256], strides = [1, 1]} : vector<8x512xf32> to vector<8x256xf32>
    %134 = vector.extract_strided_slice %132 {offsets = [0, 256], sizes = [8, 256], strides = [1, 1]} : vector<8x512xf32> to vector<8x256xf32>
    %135 = arith.maximumf %133, %134 : vector<8x256xf32>
    %136 = vector.extract_strided_slice %117 {offsets = [48, 0], sizes = [8, 512], strides = [1, 1]} : vector<88x512xf32> to vector<8x512xf32>
    %137 = vector.extract_strided_slice %117 {offsets = [56, 0], sizes = [8, 512], strides = [1, 1]} : vector<88x512xf32> to vector<8x512xf32>
    %138 = arith.maximumf %136, %137 : vector<8x512xf32>
    %139 = vector.extract_strided_slice %138 {offsets = [0, 0], sizes = [8, 256], strides = [1, 1]} : vector<8x512xf32> to vector<8x256xf32>
    %140 = vector.extract_strided_slice %138 {offsets = [0, 256], sizes = [8, 256], strides = [1, 1]} : vector<8x512xf32> to vector<8x256xf32>
    %141 = arith.maximumf %139, %140 : vector<8x256xf32>
    %142 = vector.extract_strided_slice %117 {offsets = [64, 0], sizes = [8, 512], strides = [1, 1]} : vector<88x512xf32> to vector<8x512xf32>
    %143 = vector.extract_strided_slice %117 {offsets = [72, 0], sizes = [8, 512], strides = [1, 1]} : vector<88x512xf32> to vector<8x512xf32>
    %144 = arith.maximumf %142, %143 : vector<8x512xf32>
    %145 = vector.extract_strided_slice %144 {offsets = [0, 0], sizes = [8, 256], strides = [1, 1]} : vector<8x512xf32> to vector<8x256xf32>
    %146 = vector.extract_strided_slice %144 {offsets = [0, 256], sizes = [8, 256], strides = [1, 1]} : vector<8x512xf32> to vector<8x256xf32>
    %147 = arith.maximumf %145, %146 : vector<8x256xf32>
    %148 = tpu.concatenate %123, %129, %135, %141, %147 in 0 : vector<8x256xf32>, vector<8x256xf32>, vector<8x256xf32>, vector<8x256xf32>, vector<8x256xf32> -> vector<40x256xf32>
    %149 = vector.extract_strided_slice %148 {offsets = [0, 0], sizes = [8, 256], strides = [1, 1]} : vector<40x256xf32> to vector<8x256xf32>
    %c0_28 = arith.constant 0 : index
    %c0_29 = arith.constant 0 : index
    %c0_30 = arith.constant 0 : index
    %150 = vector.load %arg6[%c0_28, %c0_29, %c0_30] : memref<5x256x128xf32, #tpu.memory_space<vmem>>, vector<1x256x128xf32>
    %151 = vector.shape_cast %150 : vector<1x256x128xf32> to vector<256x128xf32>
    %cst_31 = arith.constant dense<0.000000e+00> : vector<8x128xf32>
    %152 = tpu.matmul %149, %151, %cst_31 {dimension_numbers = #tpu.dot_dimension_numbers<[1], [0], [0], [1], [0, 0, 1, 1], [], []>} : vector<8x256xf32>, vector<256x128xf32>, vector<8x128xf32> -> vector<8x128xf32>
    %153 = vector.extract_strided_slice %148 {offsets = [8, 0], sizes = [8, 256], strides = [1, 1]} : vector<40x256xf32> to vector<8x256xf32>
    %c1_32 = arith.constant 1 : index
    %c0_33 = arith.constant 0 : index
    %c0_34 = arith.constant 0 : index
    %154 = vector.load %arg6[%c1_32, %c0_33, %c0_34] : memref<5x256x128xf32, #tpu.memory_space<vmem>>, vector<1x256x128xf32>
    %155 = vector.shape_cast %154 : vector<1x256x128xf32> to vector<256x128xf32>
    %cst_35 = arith.constant dense<0.000000e+00> : vector<8x128xf32>
    %156 = tpu.matmul %153, %155, %cst_35 {dimension_numbers = #tpu.dot_dimension_numbers<[1], [0], [0], [1], [0, 0, 1, 1], [], []>} : vector<8x256xf32>, vector<256x128xf32>, vector<8x128xf32> -> vector<8x128xf32>
    %157 = arith.addf %152, %156 : vector<8x128xf32>
    %158 = vector.extract_strided_slice %148 {offsets = [16, 0], sizes = [8, 256], strides = [1, 1]} : vector<40x256xf32> to vector<8x256xf32>
    %c2_36 = arith.constant 2 : index
    %c0_37 = arith.constant 0 : index
    %c0_38 = arith.constant 0 : index
    %159 = vector.load %arg6[%c2_36, %c0_37, %c0_38] : memref<5x256x128xf32, #tpu.memory_space<vmem>>, vector<1x256x128xf32>
    %160 = vector.shape_cast %159 : vector<1x256x128xf32> to vector<256x128xf32>
    %cst_39 = arith.constant dense<0.000000e+00> : vector<8x128xf32>
    %161 = tpu.matmul %158, %160, %cst_39 {dimension_numbers = #tpu.dot_dimension_numbers<[1], [0], [0], [1], [0, 0, 1, 1], [], []>} : vector<8x256xf32>, vector<256x128xf32>, vector<8x128xf32> -> vector<8x128xf32>
    %162 = arith.addf %157, %161 : vector<8x128xf32>
    %163 = vector.extract_strided_slice %148 {offsets = [24, 0], sizes = [8, 256], strides = [1, 1]} : vector<40x256xf32> to vector<8x256xf32>
    %c3 = arith.constant 3 : index
    %c0_40 = arith.constant 0 : index
    %c0_41 = arith.constant 0 : index
    %164 = vector.load %arg6[%c3, %c0_40, %c0_41] : memref<5x256x128xf32, #tpu.memory_space<vmem>>, vector<1x256x128xf32>
    %165 = vector.shape_cast %164 : vector<1x256x128xf32> to vector<256x128xf32>
    %cst_42 = arith.constant dense<0.000000e+00> : vector<8x128xf32>
    %166 = tpu.matmul %163, %165, %cst_42 {dimension_numbers = #tpu.dot_dimension_numbers<[1], [0], [0], [1], [0, 0, 1, 1], [], []>} : vector<8x256xf32>, vector<256x128xf32>, vector<8x128xf32> -> vector<8x128xf32>
    %167 = arith.addf %162, %166 : vector<8x128xf32>
    %168 = vector.extract_strided_slice %148 {offsets = [32, 0], sizes = [8, 256], strides = [1, 1]} : vector<40x256xf32> to vector<8x256xf32>
    %c4 = arith.constant 4 : index
    %c0_43 = arith.constant 0 : index
    %c0_44 = arith.constant 0 : index
    %169 = vector.load %arg6[%c4, %c0_43, %c0_44] : memref<5x256x128xf32, #tpu.memory_space<vmem>>, vector<1x256x128xf32>
    %170 = vector.shape_cast %169 : vector<1x256x128xf32> to vector<256x128xf32>
    %cst_45 = arith.constant dense<0.000000e+00> : vector<8x128xf32>
    %171 = tpu.matmul %168, %170, %cst_45 {dimension_numbers = #tpu.dot_dimension_numbers<[1], [0], [0], [1], [0, 0, 1, 1], [], []>} : vector<8x256xf32>, vector<256x128xf32>, vector<8x128xf32> -> vector<8x128xf32>
    %172 = arith.addf %167, %171 : vector<8x128xf32>
    %c0_46 = arith.constant 0 : index
    %c0_47 = arith.constant 0 : index
    %173 = vector.load %arg7[%c0_46, %c0_47] : memref<1x128xf32, #tpu.memory_space<vmem>>, vector<1x128xf32>
    %174 = vector.broadcast %173 : vector<1x128xf32> to vector<8x128xf32>
    %175 = arith.addf %172, %174 : vector<8x128xf32>
    %cst_48 = arith.constant 0.000000e+00 : f32
    %176 = vector.broadcast %cst_48 : f32 to vector<8x128xf32>
    %177 = arith.maximumf %175, %176 : vector<8x128xf32>
    %c0_49 = arith.constant 0 : index
    %c0_50 = arith.constant 0 : index
    %178 = vector.load %arg8[%c0_49, %c0_50] : memref<128x128xf32, #tpu.memory_space<vmem>>, vector<128x128xf32>
    %cst_51 = arith.constant dense<0.000000e+00> : vector<8x128xf32>
    %179 = tpu.matmul %177, %178, %cst_51 {dimension_numbers = #tpu.dot_dimension_numbers<[1], [0], [0], [1], [0, 0, 1, 1], [], []>} : vector<8x128xf32>, vector<128x128xf32>, vector<8x128xf32> -> vector<8x128xf32>
    %c0_52 = arith.constant 0 : index
    %c0_53 = arith.constant 0 : index
    %180 = vector.load %arg9[%c0_52, %c0_53] : memref<1x128xf32, #tpu.memory_space<vmem>>, vector<1x128xf32>
    %181 = vector.broadcast %180 : vector<1x128xf32> to vector<8x128xf32>
    %182 = arith.addf %179, %181 : vector<8x128xf32>
    %cst_54 = arith.constant 0.000000e+00 : f32
    %183 = vector.broadcast %cst_54 : f32 to vector<8x128xf32>
    %184 = arith.maximumf %182, %183 : vector<8x128xf32>
    %c0_55 = arith.constant 0 : index
    %c0_56 = arith.constant 0 : index
    %185 = vector.load %arg10[%c0_55, %c0_56] : memref<128x128xf32, #tpu.memory_space<vmem>>, vector<128x128xf32>
    %cst_57 = arith.constant dense<0.000000e+00> : vector<8x128xf32>
    %186 = tpu.matmul %184, %185, %cst_57 {dimension_numbers = #tpu.dot_dimension_numbers<[1], [0], [0], [1], [0, 0, 1, 1], [], []>} : vector<8x128xf32>, vector<128x128xf32>, vector<8x128xf32> -> vector<8x128xf32>
    %c0_58 = arith.constant 0 : index
    %c0_59 = arith.constant 0 : index
    %187 = vector.load %arg11[%c0_58, %c0_59] : memref<1x128xf32, #tpu.memory_space<vmem>>, vector<1x128xf32>
    %188 = vector.broadcast %187 : vector<1x128xf32> to vector<8x128xf32>
    %189 = arith.addf %186, %188 : vector<8x128xf32>
    %c0_60 = arith.constant 0 : index
    %c0_61 = arith.constant 0 : index
    %190 = vector.load %arg12[%c0_60, %c0_61] : memref<8x128xf32, #tpu.memory_space<vmem>>, vector<8x128xf32>
    tpu.vector_store %arg12[%c0_60, %c0_61], %189 {strides = array<i32>} : memref<8x128xf32, #tpu.memory_space<vmem>>, vector<8x128xf32>,
    return
  }
  func.func @transform_0(%arg0: i32) -> (i32, i32) {
    %c0_i32 = arith.constant 0 : i32
    %c0_i32_0 = arith.constant 0 : i32
    return %arg0, %c0_i32 : i32, i32
  }
  func.func @transform_1(%arg0: i32) -> (i32, i32, i32) {
    %c0_i32 = arith.constant 0 : i32
    %c0_i32_0 = arith.constant 0 : i32
    %c0_i32_1 = arith.constant 0 : i32
    %c0_i32_2 = arith.constant 0 : i32
    return %c0_i32, %c0_i32_0, %c0_i32_1 : i32, i32, i32
  }
  func.func @transform_2(%arg0: i32) -> (i32, i32) {
    %c0_i32 = arith.constant 0 : i32
    %c0_i32_0 = arith.constant 0 : i32
    %c0_i32_1 = arith.constant 0 : i32
    return %c0_i32, %c0_i32_0 : i32, i32
  }
  func.func @transform_3(%arg0: i32) -> (i32, i32, i32) {
    %c0_i32 = arith.constant 0 : i32
    %c0_i32_0 = arith.constant 0 : i32
    %c0_i32_1 = arith.constant 0 : i32
    %c0_i32_2 = arith.constant 0 : i32
    return %c0_i32, %c0_i32_0, %c0_i32_1 : i32, i32, i32
  }
  func.func @transform_4(%arg0: i32) -> (i32, i32) {
    %c0_i32 = arith.constant 0 : i32
    %c0_i32_0 = arith.constant 0 : i32
    %c0_i32_1 = arith.constant 0 : i32
    return %c0_i32, %c0_i32_0 : i32, i32
  }
  func.func @transform_5(%arg0: i32) -> (i32, i32, i32) {
    %c0_i32 = arith.constant 0 : i32
    %c0_i32_0 = arith.constant 0 : i32
    %c0_i32_1 = arith.constant 0 : i32
    %c0_i32_2 = arith.constant 0 : i32
    return %c0_i32, %c0_i32_0, %c0_i32_1 : i32, i32, i32
  }
  func.func @transform_6(%arg0: i32) -> (i32, i32) {
    %c0_i32 = arith.constant 0 : i32
    %c0_i32_0 = arith.constant 0 : i32
    %c0_i32_1 = arith.constant 0 : i32
    return %c0_i32, %c0_i32_0 : i32, i32
  }
  func.func @transform_7(%arg0: i32) -> (i32, i32) {
    %c0_i32 = arith.constant 0 : i32
    %c0_i32_0 = arith.constant 0 : i32
    %c0_i32_1 = arith.constant 0 : i32
    return %c0_i32, %c0_i32_0 : i32, i32
  }
  func.func @transform_8(%arg0: i32) -> (i32, i32) {
    %c0_i32 = arith.constant 0 : i32
    %c0_i32_0 = arith.constant 0 : i32
    %c0_i32_1 = arith.constant 0 : i32
    return %c0_i32, %c0_i32_0 : i32, i32
  }
  func.func @transform_9(%arg0: i32) -> (i32, i32) {
    %c0_i32 = arith.constant 0 : i32
    %c0_i32_0 = arith.constant 0 : i32
    %c0_i32_1 = arith.constant 0 : i32
    return %c0_i32, %c0_i32_0 : i32, i32
  }
  func.func @transform_10(%arg0: i32) -> (i32, i32) {
    %c0_i32 = arith.constant 0 : i32
    %c0_i32_0 = arith.constant 0 : i32
    %c0_i32_1 = arith.constant 0 : i32
    return %c0_i32, %c0_i32_0 : i32, i32
  }
  func.func @transform_11(%arg0: i32) -> (i32, i32) {
    %c0_i32 = arith.constant 0 : i32
    %c0_i32_0 = arith.constant 0 : i32
    return %arg0, %c0_i32 : i32, i32
  }
}

</mosaic_0001>

<bundles_post_ra>
// kernel: simple_convnet_forward.1
= control target key start
LH: loop header
LB: loop body
LE: loop exit
PB: predicated region body
PF: predicated region fallthrough
CT: control target
= control target key end

     0   :  { %16 = vsyncpa [#allocation3], 0  ;;  %s7283_s0 = inlined_call_operand.vmem [shape: f32[224,28], index: 0, kind: input, shape index: {}]   ;;  %s7284_s1 = inlined_call_operand.hbm [shape: f32[3,28,512], index: 1, kind: input, shape index: {}]   ;;  %s7285_s2 = inlined_call_operand.hbm [shape: f32[1,512], index: 2, kind: input, shape index: {}]   ;;  %s7286_s3 = inlined_call_operand.hbm [shape: f32[3,256,512], index: 3, kind: input, shape index: {}]   ;;  %s7287_s4 = inlined_call_operand.hbm [shape: f32[1,512], index: 4, kind: input, shape index: {}]   ;;  %s7288_s5 = inlined_call_operand.hbm [shape: f32[5,256,128], index: 5, kind: input, shape index: {}]   ;;  %s7289_s6 = inlined_call_operand.hbm [shape: f32[1,128], index: 6, kind: input, shape index: {}]   ;;  %s7290_s7 = inlined_call_operand.hbm [shape: f32[128,128], index: 7, kind: input, shape index: {}]   ;;  %s7291_s8 = inlined_call_operand.hbm [shape: f32[1,128], index: 8, kind: input, shape index: {}]   ;;  %s7292_s9 = inlined_call_operand.hbm [shape: f32[128,128], index: 9, kind: input, shape index: {}]   ;;  %s7293_s10 = inlined_call_operand.hbm [shape: f32[1,128], index: 10, kind: input, shape index: {}]   ;;  %s7294_s11 = inlined_call_operand.vmem [shape: f32[8,128], index: 11, kind: output, shape index: {}]  }
   0x1   :  { %17 = vsyncpa [#allocation5], 0 }
   0x2   :  { %18 = vsyncpa [#allocation8], 0 }
   0x3   :  { %19 = vsyncpa [#allocation11], 0 }
   0x4   :  { %20 = vsyncpa [#allocation14], 0 }
   0x5   :  { %21 = vsyncpa [#allocation17], 0  ;;  %s4849_s17 = smov [#allocation4]   ;;  %s4850_s19 = smov [#allocation7]  }
   0x6   :  { %s42_s18 = sshll.u32 %s4849_s17, 4  ;;  %s64_s20 = sshll.u32 %s4850_s19, 4  ;;  %s43_s18 = int_to_ptr.vmem [resolvable:$true] %s42_s18  ;;  %s65_s20 = int_to_ptr.vmem [resolvable:$true] %s64_s20 }
   0x7   :  { %s4645_s21 = scalar_lea.vmem %s43_s18, 64  ;;  %p4650_p1 = scmp.lt.s32.totalorder %s43_s18, %s43_s18 }
   0x8   :  { %p4646_p0 = scmp.ne.s32.totalorder %s43_s18, %s4645_s21  ;;  %p4651_p2 = scmp.lt.s32.totalorder %s4645_s21, %s4645_s21 }
   0xa   :  { %p4652_p3 = por %p4651_p2, %p4650_p1 }
   0xc   :  { %p4653_p4 = pnand %p4652_p3, %p4646_p0 }
   0xe   :  { %4656 = shalt.err (!%p4653_p4)
}
   0xf   :  { %45 = dma.hbm_to_vmem [thread:$0]  %s7285_s2, 64, %s43_s18, [#allocation5]  }
  0x10   :  { %s4665_s24 = scalar_lea.vmem %s65_s20, 64  ;;  %p4670_p6 = scmp.lt.s32.totalorder %s65_s20, %s65_s20 }
  0x11   :  { %p4666_p5 = scmp.ne.s32.totalorder %s65_s20, %s4665_s24  ;;  %p4671_p7 = scmp.lt.s32.totalorder %s4665_s24, %s4665_s24 }
  0x13   :  { %p4672_p8 = por %p4671_p7, %p4670_p6 }
  0x15   :  { %p4673_p9 = pnand %p4672_p8, %p4666_p5 }
  0x17   :  { %4676 = shalt.err (!%p4673_p9)
}
  0x18   :  { %67 = dma.hbm_to_vmem [thread:$0]  %s7287_s4, 64, %s65_s20, [#allocation8]  }
  0x19   :  { %s4851_s27 = smov [#allocation10]   ;;  %s4852_s29 = smov [#allocation13]  }
  0x1a   :  { %s86_s28 = sshll.u32 %s4851_s27, 4  ;;  %s108_s30 = sshll.u32 %s4852_s29, 4  ;;  %s87_s28 = int_to_ptr.vmem [resolvable:$true] %s86_s28  ;;  %s109_s30 = int_to_ptr.vmem [resolvable:$true] %s108_s30 }
  0x1b   :  { %s4685_s12 = scalar_lea.vmem %s87_s28, 16  ;;  %s4689_s2 = scalar_lea.vmem %s87_s28, 32 }
  0x1c   :  { %p4686_p10 = scmp.ne.s32.totalorder %s87_s28, %s4685_s12  ;;  %p4690_p11 = scmp.lt.s32.totalorder %s87_s28, %s87_s28 }
  0x1d   :  { %p4691_p12 = scmp.lt.s32.totalorder %s4689_s2, %s4685_s12 }
  0x1f   :  { %p4692_p13 = por %p4691_p12, %p4690_p11 }
  0x21   :  { %p4693_p0 = pnand %p4692_p13, %p4686_p10 }
  0x23   :  { %4696 = shalt.err (!%p4693_p0)
}
  0x24   :  { %89 = dma.hbm_to_vmem [thread:$0]  %s7289_s6, 16, %s87_s28, [#allocation11]  }
  0x25   :  { %s4705_s15 = scalar_lea.vmem %s109_s30, 16  ;;  %s4709_s4 = scalar_lea.vmem %s109_s30, 32 }
  0x26   :  { %p4706_p1 = scmp.ne.s32.totalorder %s109_s30, %s4705_s15  ;;  %p4710_p2 = scmp.lt.s32.totalorder %s109_s30, %s109_s30 }
  0x27   :  { %p4711_p3 = scmp.lt.s32.totalorder %s4709_s4, %s4705_s15 }
  0x29   :  { %p4712_p4 = por %p4711_p3, %p4710_p2 }
  0x2b   :  { %p4713_p5 = pnand %p4712_p4, %p4706_p1 }
  0x2d   :  { %4716 = shalt.err (!%p4713_p5)
}
  0x2e   :  { %111 = dma.hbm_to_vmem [thread:$0]  %s7291_s8, 16, %s109_s30, [#allocation14]  }
  0x2f   :  { %s4853_s18 = smov [#allocation2]  }
  0x30   :  { %s29_s19 = sshll.u32 %s4853_s18, 4  ;;  %s30_s19 = int_to_ptr.vmem [resolvable:$true] %s29_s19 }
  0x31   :  { %s4725_s20 = scalar_lea.vmem %s30_s19, 6144  ;;  %p4730_p7 = scmp.lt.s32.totalorder %s30_s19, %s30_s19 }
  0x32   :  { %p4726_p6 = scmp.ne.s32.totalorder %s30_s19, %s4725_s20  ;;  %p4731_p8 = scmp.lt.s32.totalorder %s4725_s20, %s4725_s20 }
  0x34   :  { %p4732_p9 = por %p4731_p8, %p4730_p7 }
  0x36   :  { %p4733_p10 = pnand %p4732_p9, %p4726_p6 }
  0x38   :  { %4736 = shalt.err (!%p4733_p10)
}
  0x39   :  { %s4854_s6 = smov 512   ;;  %s4855_s21 = smov 32  }
  0x3a   :  { %35 = dma.hbm_to_vmem [thread:$0]  %s7284_s1, 6144, %s30_s19, [#allocation3], %s4854_s6, %s4854_s6, %s4855_s21  }
  0x3b   :  { %s4856_s24 = smov [#allocation6]   ;;  %s4857_s8 = smov [#allocation9]  }
  0x3c   :  { %s51_s25 = sshll.u32 %s4856_s24, 4  ;;  %s73_s26 = sshll.u32 %s4857_s8, 4  ;;  %s52_s25 = int_to_ptr.vmem [resolvable:$true] %s51_s25  ;;  %s74_s26 = int_to_ptr.vmem [resolvable:$true] %s73_s26 }
  0x3d   :  { %s4745_s27 = scalar_lea.vmem %s52_s25, 49152  ;;  %p4750_p12 = scmp.lt.s32.totalorder %s52_s25, %s52_s25 }
  0x3e   :  { %p4746_p11 = scmp.ne.s32.totalorder %s52_s25, %s4745_s27  ;;  %p4751_p13 = scmp.lt.s32.totalorder %s4745_s27, %s4745_s27 }
  0x40   :  { %p4752_p0 = por %p4751_p13, %p4750_p12 }
  0x42   :  { %p4753_p1 = pnand %p4752_p0, %p4746_p11 }
  0x44   :  { %4756 = shalt.err (!%p4753_p1)
}
  0x45   :  { %57 = dma.hbm_to_vmem [thread:$0]  %s7286_s3, 49152, %s52_s25, [#allocation5], %s4854_s6, %s4854_s6, %s4855_s21  }
  0x46   :  { %s4765_s30 = scalar_lea.vmem %s74_s26, 20480  ;;  %p4770_p3 = scmp.lt.s32.totalorder %s74_s26, %s74_s26 }
  0x47   :  { %p4766_p2 = scmp.ne.s32.totalorder %s74_s26, %s4765_s30  ;;  %p4771_p4 = scmp.lt.s32.totalorder %s4765_s30, %s4765_s30 }
  0x49   :  { %p4772_p5 = por %p4771_p4, %p4770_p3 }
  0x4b   :  { %p4773_p6 = pnand %p4772_p5, %p4766_p2 }
  0x4d   :  { %4776 = shalt.err (!%p4773_p6)
}
  0x4e   :  { %s4858_s1 = smov 128   ;;  %s4859_s12 = smov 8  }
  0x4f   :  { %79 = dma.hbm_to_vmem [thread:$0]  %s7288_s5, 20480, %s74_s26, [#allocation8], %s4858_s1, %s4858_s1, %s4859_s12  }
  0x50   :  { %s4860_s14 = smov [#allocation12]   ;;  %s4861_s4 = smov [#allocation15]  }
  0x51   :  { %s95_s15 = sshll.u32 %s4860_s14, 4  ;;  %s117_s16 = sshll.u32 %s4861_s4, 4  ;;  %s96_s15 = int_to_ptr.vmem [resolvable:$true] %s95_s15  ;;  %s118_s16 = int_to_ptr.vmem [resolvable:$true] %s117_s16 }
  0x52   :  { %s4785_s3 = scalar_lea.vmem %s96_s15, 2048  ;;  %p4790_p8 = scmp.lt.s32.totalorder %s96_s15, %s96_s15 }
  0x53   :  { %p4786_p7 = scmp.ne.s32.totalorder %s96_s15, %s4785_s3  ;;  %p4791_p9 = scmp.lt.s32.totalorder %s4785_s3, %s4785_s3 }
  0x55   :  { %p4792_p10 = por %p4791_p9, %p4790_p8 }
  0x57   :  { %p4793_p11 = pnand %p4792_p10, %p4786_p7 }
  0x59   :  { %4796 = shalt.err (!%p4793_p11)
}
  0x5a   :  { %101 = dma.hbm_to_vmem [thread:$0]  %s7290_s7, 2048, %s96_s15, [#allocation11], %s4858_s1, %s4858_s1, %s4859_s12  }
  0x5b   :  { %s4805_s19 = scalar_lea.vmem %s118_s16, 2048  ;;  %p4810_p13 = scmp.lt.s32.totalorder %s118_s16, %s118_s16 }
  0x5c   :  { %p4806_p12 = scmp.ne.s32.totalorder %s118_s16, %s4805_s19  ;;  %p4811_p0 = scmp.lt.s32.totalorder %s4805_s19, %s4805_s19 }
  0x5e   :  { %p4812_p1 = por %p4811_p0, %p4810_p13 }
  0x60   :  { %p4813_p2 = pnand %p4812_p1, %p4806_p12 }
  0x62   :  { %4816 = shalt.err (!%p4813_p2)
}
  0x63   :  { %123 = dma.hbm_to_vmem [thread:$0]  %s7292_s9, 2048, %s118_s16, [#allocation14], %s4858_s1, %s4858_s1, %s4859_s12  }
  0x64   :  { %s4862_s6 = smov [#allocation16]  }
  0x65   :  { %s130_s21 = sshll.u32 %s4862_s6, 4  ;;  %s131_s21 = int_to_ptr.vmem [resolvable:$true] %s130_s21 }
  0x66   :  { %s4825_s22 = scalar_lea.vmem %s131_s21, 16  ;;  %s4829_s23 = scalar_lea.vmem %s131_s21, 32 }
  0x67   :  { %p4826_p3 = scmp.ne.s32.totalorder %s131_s21, %s4825_s22  ;;  %p4830_p4 = scmp.lt.s32.totalorder %s131_s21, %s131_s21 }
  0x68   :  { %p4831_p5 = scmp.lt.s32.totalorder %s4829_s23, %s4825_s22 }
  0x6a   :  { %p4832_p6 = por %p4831_p5, %p4830_p4 }
  0x6c   :  { %p4833_p7 = pnand %p4832_p6, %p4826_p3 }
  0x6e   :  { %4836 = shalt.err (!%p4833_p7)
}
  0x6f   :  { %133 = dma.hbm_to_vmem [thread:$0]  %s7293_s10, 16, %s131_s21, [#allocation17]  }
  0x70   :  { %4837 = dma.done.wait [#allocation3], 6144  }
  0x71   :  { %4838 = vsyncadd [#allocation3], 4294961152 }
  0x72   :  { %4839 = dma.done.wait [#allocation5], 49216  }
  0x73   :  { %4840 = vsyncadd [#allocation5], 4294918080 }
  0x74   :  { %4841 = dma.done.wait [#allocation8], 20544  }
  0x75   :  { %4842 = vsyncadd [#allocation8], 4294946752 }
  0x76   :  { %4843 = dma.done.wait [#allocation11], 2064  }
  0x77   :  { %4844 = vsyncadd [#allocation11], 4294965232 }
  0x78   :  { %4845 = dma.done.wait [#allocation14], 2064  }
  0x79   :  { %4846 = vsyncadd [#allocation14], 4294965232 }
  0x7a   :  { %4847 = dma.done.wait [#allocation17], 16  }
  0x7b   :  { %4848 = vsyncadd [#allocation17], 4294967280  ;;  %v7295_v0 = vmov 0.0   ;;  %vm304_vm0 = vcmask 1043456   ;;  %v222_v1 = vld [vmem:[#allocation2 + $0xe8] sm:$0xf] }
  0x7c   :  { %381 = vmatprep.mubr.f32.mxu0 %v7295_v0  ;;  %513 = vmatprep.mubr.f32.mxu1 %v7295_v0  ;;  %v221_v2 = vld [vmem:[#allocation2 + $0xe0] sm:$0xf]  ;;  %v218_v3 = vld [vmem:[#allocation2 + $0xc8] sm:$0xff]  ;;  %vm225_vm1 = vcmask 228352   ;;  %v4969_v10 = vld [vmem:[%s7283_s0 + $0xb8] sm:$0xff]  ;;  %vm4864_vm2 = vmmov 0  }
  0x7d   :  { %4158 = vmatprep.subr.msk.mxu0 %vm304_vm0, %v222_v1  ;;  %4608 = vmatprep.subr.msk.mxu1 %vm304_vm0, %v222_v1  ;;  %v217_v4 = vld [vmem:[#allocation2 + $0xc0] sm:$0xff]  ;;  %v214_v5 = vld [vmem:[#allocation2 + $0xa8] sm:$0xff]  ;;  %v224_v11 = vld [vmem:[#allocation2 + $0xf8] sm:$0xf] }
  0x7e   :  { %4159 = vmatpush1.msk.msra.mxu0 %vm304_vm0, %v221_v2  ;;  %4612 = vmatpush1.msk.msra.mxu1 %vm304_vm0, %v221_v2  ;;  %v213_v6 = vld [vmem:[#allocation2 + $0xa0] sm:$0xff]  ;;  %v210_v7 = vld [vmem:[#allocation2 + $0x88] sm:$0xff]  ;;  %v223_v12 = vld [vmem:[#allocation2 + $0xf0] sm:$0xf] }
  0x7f   :  { %343 = vmatprep.subr.mxu0 %v218_v3  ;;  %4609 = vmatprep.subr.mxu1 %v218_v3  ;;  %v209_v8 = vld [vmem:[#allocation2 + $0x80] sm:$0xff]  ;;  %v4964_v9 = vld [vmem:[%s7283_s0 + $0x8] sm:$0xff]  ;;  %v220_v13 = vld [vmem:[#allocation2 + $0xd8] sm:$0xff] }
  0x80   :  { %344 = vmatpush1.msra.mxu0 %v217_v4  ;;  %4613 = vmatpush1.msra.mxu1 %v217_v4  ;;  %v4980_v14 = vld [vmem:[%s7283_s0 + $0x10] sm:$0xff]  ;;  %v4985_v15 = vld [vmem:[%s7283_s0 + $0xc0] sm:$0xff]  ;;  %v205_v16 = vld [vmem:[#allocation2 + $0x68] sm:$0xf] }
  0x81   :  { %345 = vmatprep.subr.mxu0 %v214_v5  ;;  %4610 = vmatprep.subr.mxu1 %v214_v5  ;;  %v219_v17 = vld [vmem:[#allocation2 + $0xd0] sm:$0xff]  ;;  %v216_v18 = vld [vmem:[#allocation2 + $0xb8] sm:$0xff]  ;;  %v204_v20 = vld [vmem:[#allocation2 + $0x60] sm:$0xf] }
  0x82   :  { %346 = vmatpush1.msra.mxu0 %v213_v6  ;;  %4614 = vmatpush1.msra.mxu1 %v213_v6  ;;  %v215_v19 = vld [vmem:[#allocation2 + $0xb0] sm:$0xff]  ;;  %v4998_v21 = vld [vmem:[%s7283_s0 + $0x18] sm:$0xff]  ;;  %v5003_v22 = vld [vmem:[%s7283_s0 + $0xc8] sm:$0xff] }
  0x83   :  { %347 = vmatprep.subr.mxu0 %v210_v7  ;;  %4611 = vmatprep.subr.mxu1 %v210_v7  ;;  %v212_v23 = vld [vmem:[#allocation2 + $0x98] sm:$0xff]  ;;  %v201_v24 = vld [vmem:[#allocation2 + $0x48] sm:$0xff]  ;;  %v211_v25 = vld [vmem:[#allocation2 + $0x90] sm:$0xff] }
  0x84   :  { %348 = vmatpush1.msra.mxu0 %v209_v8  ;;  %4615 = vmatpush1.msra.mxu1 %v209_v8  ;;  %v200_v26 = vld [vmem:[#allocation2 + $0x40] sm:$0xff]  ;;  %v5021_v28 = vld [vmem:[%s7283_s0 + $0xd0] sm:$0xff]  ;;  %v207_v29 = vld [vmem:[#allocation2 + $0x78] sm:$0xf] }
  0x85   :  { %4160 = vmatmul.mubr.msk.f32.vlgmr.msra.gmra.mxu0 %vm225_vm1, %v4964_v9  ;;  %4182 = vmatmul.mubr.msk.f32.vlgmr.msra.gmra.mxu1 %vm225_vm1, %v4969_v10  ;;  %v5016_v27 = vld [vmem:[%s7283_s0 + $0x20] sm:$0xff]  ;;  %v197_v30 = vld [vmem:[#allocation2 + $0x28] sm:$0xff]  ;;  %v206_v33 = vld [vmem:[#allocation2 + $0x70] sm:$0xf] }
  0x86   :  { %4186 = vmatprep.subr.msk.mxu1 %vm304_vm0, %v224_v11  ;;  %387 = vmatprep.mubr.f32.mxu0 %v7295_v0  ;;  %v196_v31 = vld [vmem:[#allocation2 + $0x20] sm:$0xff]  ;;  %v5032_v32 = vld [vmem:[%s7283_s0 + $0x28] sm:$0xff]  ;;  %v203_v34 = vld [vmem:[#allocation2 + $0x58] sm:$0xff] }
  0x87   :  { %4187 = vmatpush1.msk.msra.mxu1 %vm304_vm0, %v223_v12  ;;  %519 = vmatprep.mubr.f32.mxu1 %v7295_v0  ;;  %v202_v35 = vld [vmem:[#allocation2 + $0x50] sm:$0xff]  ;;  %v193_v36 = vld [vmem:[#allocation2 + $0x8] sm:$0xff]  ;;  %v199_v38 = vld [vmem:[#allocation2 + $0x38] sm:$0xff] }
  0x88   :  { %564 = vmatprep.subr.mxu1 %v220_v13  ;;  %4214 = vmatprep.subr.msk.mxu0 %vm304_vm0, %v205_v16  ;;  %v5044_v37 = vld [vmem:[%s7283_s0 + $0x30] sm:$0xff]  ;;  %v192_v39 = vld [vmem:[#allocation2] sm:$0xff]  ;;  %v1230_v41 = vld [vmem:[#allocation2 + $0x168] sm:$0xf] }
  0x89   :  { %4161 = vmatmul.mubr.msk.f32.gmra.mxu0 %vm225_vm1, %v4980_v14  ;;  %4183 = vmatmul.mubr.msk.f32.gmra.mxu1 %vm225_vm1, %v4985_v15  ;;  %v198_v40 = vld [vmem:[#allocation2 + $0x30] sm:$0xff]  ;;  %v5056_v42 = vld [vmem:[%s7283_s0 + $0x38] sm:$0xff]  ;;  %v5068_v45 = vld [vmem:[%s7283_s0 + $0x40] sm:$0xff] }
  0x8a   :  { %565 = vmatpush1.msra.mxu1 %v219_v17  ;;  %393 = vmatprep.mubr.f32.mxu0 %v7295_v0  ;;  %v195_v43 = vld [vmem:[#allocation2 + $0x18] sm:$0xff]  ;;  %v194_v44 = vld [vmem:[#allocation2 + $0x10] sm:$0xff]  ;;  %v5079_v47 = vld [vmem:[%s7283_s0 + $0x48] sm:$0xff] }
  0x8b   :  { %525 = vmatprep.mubr.f32.mxu1 %v7295_v0  ;;  %566 = vmatprep.subr.mxu1 %v216_v18  ;;  %v1232_v46 = vld [vmem:[#allocation2 + $0x178] sm:$0xf]  ;;  %v5091_v48 = vld [vmem:[%s7283_s0 + $0x50] sm:$0xff]  ;;  %v5113_v50 = vld [vmem:[%s7283_s0 + $0x60] sm:$0xff] }
  0x8c   :  { %567 = vmatpush1.msra.mxu1 %v215_v19  ;;  %4215 = vmatpush1.msk.msra.mxu0 %vm304_vm0, %v204_v20  ;;  %v5102_v49 = vld [vmem:[%s7283_s0 + $0x58] sm:$0xff]  ;;  %v5124_v51 = vld [vmem:[%s7283_s0 + $0x68] sm:$0xff]  ;;  %v5135_v52 = vld [vmem:[%s7283_s0 + $0x70] sm:$0xff] }
  0x8d   :  { %4162 = vmatmul.mubr.msk.f32.gmra.mxu0 %vm225_vm1, %v4998_v21  ;;  %4184 = vmatmul.mubr.msk.f32.gmra.mxu1 %vm225_vm1, %v5003_v22  ;;  %v5146_v53 = vld [vmem:[%s7283_s0 + $0x78] sm:$0xff]  ;;  %v5157_v54 = vld [vmem:[%s7283_s0 + $0x80] sm:$0xff]  ;;  %v5168_v55 = vld [vmem:[%s7283_s0 + $0x88] sm:$0xff] }
  0x8e   :  { %399 = vmatprep.mubr.f32.mxu0 %v7295_v0  ;;  %531 = vmatprep.mubr.f32.mxu1 %v7295_v0  ;;  %v5179_v56 = vld [vmem:[%s7283_s0 + $0x90] sm:$0xff]  ;;  %v5190_v57 = vld [vmem:[%s7283_s0 + $0x98] sm:$0xff]  ;;  %v5201_v58 = vld [vmem:[%s7283_s0 + $0xa0] sm:$0xff] }
  0x8f   :  { %568 = vmatprep.subr.mxu1 %v212_v23  ;;  %800 = vmatprep.subr.mxu0 %v201_v24  ;;  %v5212_v59 = vld [vmem:[%s7283_s0 + $0xa8] sm:$0xff]  ;;  %v5223_v60 = vld [vmem:[%s7283_s0 + $0xb0] sm:$0xff]  ;;  %v164_v61 = vld [vmem:[%s7283_s0] sm:$0xff] }
  0x90   :  { %569 = vmatpush1.msra.mxu1 %v211_v25  ;;  %801 = vmatpush1.msra.mxu0 %v200_v26  ;;  %v1229_v62 = vld [vmem:[#allocation2 + $0x160] sm:$0xf]  ;;  %v1226_v63 = vld [vmem:[#allocation2 + $0x148] sm:$0xff]  ;;  %v1231_v6 = vld [vmem:[#allocation2 + $0x170] sm:$0xf] }
  0x91   :  { %4163 = vmatmul.mubr.msk.f32.gmra.mxu0 %vm225_vm1, %v5016_v27  ;;  %4185 = vmatmul.mubr.msk.f32.gmra.mxu1 %vm225_vm1, %v5021_v28  ;;  %v1225_v1 = vld [vmem:[#allocation2 + $0x140] sm:$0xff]  ;;  %v1222_v2 = vld [vmem:[#allocation2 + $0x128] sm:$0xff]  ;;  %v1228_v7 = vld [vmem:[#allocation2 + $0x158] sm:$0xff] }
  0x92   :  { %405 = vmatprep.mubr.f32.mxu0 %v7295_v0  ;;  %602 = vmatprep.mubr.f32.mxu1 %v7295_v0  ;;  %v1221_v3 = vld [vmem:[#allocation2 + $0x120] sm:$0xff]  ;;  %v1218_v4 = vld [vmem:[#allocation2 + $0x108] sm:$0xff]  ;;  %v1227_v8 = vld [vmem:[#allocation2 + $0x150] sm:$0xff] }
  0x93   :  { %4242 = vmatprep.subr.msk.mxu1 %vm304_vm0, %v207_v29  ;;  %802 = vmatprep.subr.mxu0 %v197_v30  ;;  %v1217_v5 = vld [vmem:[#allocation2 + $0x100] sm:$0xff]  ;;  %v1224_v11 = vld [vmem:[#allocation2 + $0x138] sm:$0xff]  ;;  %v1223_v12 = vld [vmem:[#allocation2 + $0x130] sm:$0xff] }
  0x94   :  { %803 = vmatpush1.msra.mxu0 %v196_v31  ;;  %v1220_v13 = vld [vmem:[#allocation2 + $0x118] sm:$0xff]  ;;  %v1219_v16 = vld [vmem:[#allocation2 + $0x110] sm:$0xff] }
  0x95   :  { %4164 = vmatmul.mubr.msk.f32.gmra.mxu0 %vm225_vm1, %v5032_v32  ;;  %4188 = vmatmul.mubr.msk.f32.vlgmr.msra.gmra.mxu1 %vm225_vm1, %v4964_v9 }
  0x96   :  { %4243 = vmatpush1.msk.msra.mxu1 %vm304_vm0, %v206_v33  ;;  %411 = vmatprep.mubr.f32.mxu0 %v7295_v0 }
  0x97   :  { %608 = vmatprep.mubr.f32.mxu1 %v7295_v0  ;;  %1021 = vmatprep.subr.mxu1 %v203_v34 }
  0x98   :  { %1022 = vmatpush1.msra.mxu1 %v202_v35  ;;  %804 = vmatprep.subr.mxu0 %v193_v36 }
  0x99   :  { %4165 = vmatmul.mubr.msk.f32.gmra.mxu0 %vm225_vm1, %v5044_v37  ;;  %4189 = vmatmul.mubr.msk.f32.gmra.mxu1 %vm225_vm1, %v4980_v14 }
  0x9a   :  { %417 = vmatprep.mubr.f32.mxu0 %v7295_v0  ;;  %614 = vmatprep.mubr.f32.mxu1 %v7295_v0 }
  0x9b   :  { %1023 = vmatprep.subr.mxu1 %v199_v38  ;;  %805 = vmatpush1.msra.mxu0 %v192_v39 }
  0x9c   :  { %1024 = vmatpush1.msra.mxu1 %v198_v40  ;;  %4270 = vmatprep.subr.msk.mxu0 %vm304_vm0, %v1230_v41 }
  0x9d   :  { %4166 = vmatmul.mubr.msk.f32.gmra.mxu0 %vm225_vm1, %v5056_v42  ;;  %4190 = vmatmul.mubr.msk.f32.gmra.mxu1 %vm225_vm1, %v4998_v21 }
  0x9e   :  { %423 = vmatprep.mubr.f32.mxu0 %v7295_v0  ;;  %620 = vmatprep.mubr.f32.mxu1 %v7295_v0 }
  0x9f   :  { %1025 = vmatprep.subr.mxu1 %v195_v43 }
  0xa0   :  { %1026 = vmatpush1.msra.mxu1 %v194_v44 }
  0xa1   :  { %4167 = vmatmul.mubr.msk.f32.gmra.mxu0 %vm225_vm1, %v5068_v45  ;;  %4191 = vmatmul.mubr.msk.f32.gmra.mxu1 %vm225_vm1, %v5016_v27 }
  0xa2   :  { %429 = vmatprep.mubr.f32.mxu0 %v7295_v0  ;;  %626 = vmatprep.mubr.f32.mxu1 %v7295_v0 }
  0xa3   :  { %4298 = vmatprep.subr.msk.mxu1 %vm304_vm0, %v1232_v46 }
  0xa5   :  { %4168 = vmatmul.mubr.msk.f32.gmra.mxu0 %vm225_vm1, %v5079_v47  ;;  %4192 = vmatmul.mubr.msk.f32.gmra.mxu1 %vm225_vm1, %v5032_v32 }
  0xa6   :  { %435 = vmatprep.mubr.f32.mxu0 %v7295_v0  ;;  %632 = vmatprep.mubr.f32.mxu1 %v7295_v0 }
  0xa9   :  { %4169 = vmatmul.mubr.msk.f32.gmra.mxu0 %vm225_vm1, %v5091_v48  ;;  %4193 = vmatmul.mubr.msk.f32.gmra.mxu1 %vm225_vm1, %v5044_v37 }
  0xaa   :  { %441 = vmatprep.mubr.f32.mxu0 %v7295_v0  ;;  %638 = vmatprep.mubr.f32.mxu1 %v7295_v0 }
  0xad   :  { %4170 = vmatmul.mubr.msk.f32.gmra.mxu0 %vm225_vm1, %v5102_v49  ;;  %4194 = vmatmul.mubr.msk.f32.gmra.mxu1 %vm225_vm1, %v5056_v42 }
  0xae   :  { %447 = vmatprep.mubr.f32.mxu0 %v7295_v0  ;;  %644 = vmatprep.mubr.f32.mxu1 %v7295_v0 }
  0xb1   :  { %4171 = vmatmul.mubr.msk.f32.gmra.mxu0 %vm225_vm1, %v5113_v50  ;;  %4195 = vmatmul.mubr.msk.f32.gmra.mxu1 %vm225_vm1, %v5068_v45 }
  0xb2   :  { %453 = vmatprep.mubr.f32.mxu0 %v7295_v0  ;;  %650 = vmatprep.mubr.f32.mxu1 %v7295_v0 }
  0xb5   :  { %4172 = vmatmul.mubr.msk.f32.gmra.mxu0 %vm225_vm1, %v5124_v51  ;;  %4196 = vmatmul.mubr.msk.f32.gmra.mxu1 %vm225_vm1, %v5079_v47 }
  0xb6   :  { %459 = vmatprep.mubr.f32.mxu0 %v7295_v0  ;;  %656 = vmatprep.mubr.f32.mxu1 %v7295_v0 }
  0xb9   :  { %4173 = vmatmul.mubr.msk.f32.gmra.mxu0 %vm225_vm1, %v5135_v52  ;;  %4197 = vmatmul.mubr.msk.f32.gmra.mxu1 %vm225_vm1, %v5091_v48 }
  0xba   :  { %465 = vmatprep.mubr.f32.mxu0 %v7295_v0  ;;  %662 = vmatprep.mubr.f32.mxu1 %v7295_v0 }
  0xbd   :  { %4174 = vmatmul.mubr.msk.f32.gmra.mxu0 %vm225_vm1, %v5146_v53  ;;  %4198 = vmatmul.mubr.msk.f32.gmra.mxu1 %vm225_vm1, %v5102_v49 }
  0xbe   :  { %471 = vmatprep.mubr.f32.mxu0 %v7295_v0  ;;  %668 = vmatprep.mubr.f32.mxu1 %v7295_v0 }
  0xc1   :  { %4175 = vmatmul.mubr.msk.f32.gmra.mxu0 %vm225_vm1, %v5157_v54  ;;  %4199 = vmatmul.mubr.msk.f32.gmra.mxu1 %vm225_vm1, %v5113_v50 }
  0xc2   :  { %477 = vmatprep.mubr.f32.mxu0 %v7295_v0  ;;  %674 = vmatprep.mubr.f32.mxu1 %v7295_v0 }
  0xc5   :  { %4176 = vmatmul.mubr.msk.f32.gmra.mxu0 %vm225_vm1, %v5168_v55  ;;  %4200 = vmatmul.mubr.msk.f32.gmra.mxu1 %vm225_vm1, %v5124_v51 }
  0xc6   :  { %483 = vmatprep.mubr.f32.mxu0 %v7295_v0  ;;  %680 = vmatprep.mubr.f32.mxu1 %v7295_v0 }
  0xc9   :  { %4177 = vmatmul.mubr.msk.f32.gmra.mxu0 %vm225_vm1, %v5179_v56  ;;  %4201 = vmatmul.mubr.msk.f32.gmra.mxu1 %vm225_vm1, %v5135_v52 }
  0xca   :  { %489 = vmatprep.mubr.f32.mxu0 %v7295_v0  ;;  %686 = vmatprep.mubr.f32.mxu1 %v7295_v0 }
  0xcd   :  { %4178 = vmatmul.mubr.msk.f32.gmra.mxu0 %vm225_vm1, %v5190_v57  ;;  %4202 = vmatmul.mubr.msk.f32.gmra.mxu1 %vm225_vm1, %v5146_v53 }
  0xce   :  { %495 = vmatprep.mubr.f32.mxu0 %v7295_v0  ;;  %692 = vmatprep.mubr.f32.mxu1 %v7295_v0 }
  0xd1   :  { %4179 = vmatmul.mubr.msk.f32.gmra.mxu0 %vm225_vm1, %v5201_v58  ;;  %4203 = vmatmul.mubr.msk.f32.gmra.mxu1 %vm225_vm1, %v5157_v54 }
  0xd2   :  { %501 = vmatprep.mubr.f32.mxu0 %v7295_v0  ;;  %698 = vmatprep.mubr.f32.mxu1 %v7295_v0 }
  0xd5   :  { %4180 = vmatmul.mubr.msk.f32.gmra.mxu0 %vm225_vm1, %v5212_v59  ;;  %4204 = vmatmul.mubr.msk.f32.gmra.mxu1 %vm225_vm1, %v5168_v55 }
  0xd6   :  { %507 = vmatprep.mubr.f32.mxu0 %v7295_v0  ;;  %704 = vmatprep.mubr.f32.mxu1 %v7295_v0 }
  0xd9   :  { %4181 = vmatmul.mubr.msk.f32.gmra.mxu0 %vm225_vm1, %v5223_v60  ;;  %4205 = vmatmul.mubr.msk.f32.gmra.mxu1 %vm225_vm1, %v5179_v56 }
  0xda   :  { %710 = vmatprep.mubr.f32.mxu1 %v7295_v0  ;;  %838 = vmatprep.mubr.f32.mxu0 %v7295_v0 }
  0xdd   :  { %4206 = vmatmul.mubr.msk.f32.gmra.mxu1 %vm225_vm1, %v5190_v57  ;;  %4216 = vmatmul.mubr.msk.f32.vlgmr.msra.gmra.mxu0 %vm225_vm1, %v164_v61 }
  0xde   :  { %716 = vmatprep.mubr.f32.mxu1 %v7295_v0  ;;  %844 = vmatprep.mubr.f32.mxu0 %v7295_v0 }
  0xdf   :  { %4271 = vmatpush1.msk.msra.mxu0 %vm304_vm0, %v1229_v62 }
  0xe0   :  { %1274 = vmatprep.subr.mxu0 %v1226_v63 }
  0xe1   :  { %4207 = vmatmul.mubr.msk.f32.gmra.mxu1 %vm225_vm1, %v5201_v58  ;;  %4217 = vmatmul.mubr.msk.f32.gmra.mxu0 %vm225_vm1, %v4964_v9 }
  0xe2   :  { %722 = vmatprep.mubr.f32.mxu1 %v7295_v0  ;;  %850 = vmatprep.mubr.f32.mxu0 %v7295_v0 }
  0xe3   :  { %1275 = vmatpush1.msra.mxu0 %v1225_v1 }
  0xe4   :  { %1276 = vmatprep.subr.mxu0 %v1222_v2 }
  0xe5   :  { %4208 = vmatmul.mubr.msk.f32.gmra.mxu1 %vm225_vm1, %v5212_v59  ;;  %4218 = vmatmul.mubr.msk.f32.gmra.mxu0 %vm225_vm1, %v4980_v14 }
  0xe6   :  { %728 = vmatprep.mubr.f32.mxu1 %v7295_v0  ;;  %856 = vmatprep.mubr.f32.mxu0 %v7295_v0 }
  0xe7   :  { %1277 = vmatpush1.msra.mxu0 %v1221_v3 }
  0xe8   :  { %1278 = vmatprep.subr.mxu0 %v1218_v4 }
  0xe9   :  { %4209 = vmatmul.mubr.msk.f32.gmra.mxu1 %vm225_vm1, %v5223_v60  ;;  %4219 = vmatmul.mubr.msk.f32.gmra.mxu0 %vm225_vm1, %v4998_v21 }
  0xea   :  { %734 = vmatprep.mubr.f32.mxu1 %v7295_v0  ;;  %862 = vmatprep.mubr.f32.mxu0 %v7295_v0 }
  0xeb   :  { %1279 = vmatpush1.msra.mxu0 %v1217_v5 }
  0xed   :  { %4210 = vmatmul.mubr.msk.f32.gmra.mxu1 %vm225_vm1, %v4969_v10  ;;  %4220 = vmatmul.mubr.msk.f32.gmra.mxu0 %vm225_vm1, %v5016_v27 }
  0xee   :  { %740 = vmatprep.mubr.f32.mxu1 %v7295_v0  ;;  %868 = vmatprep.mubr.f32.mxu0 %v7295_v0 }
  0xf1   :  { %4211 = vmatmul.mubr.msk.f32.gmra.mxu1 %vm225_vm1, %v4985_v15  ;;  %4221 = vmatmul.mubr.msk.f32.gmra.mxu0 %vm225_vm1, %v5032_v32 }
  0xf2   :  { %746 = vmatprep.mubr.f32.mxu1 %v7295_v0  ;;  %874 = vmatprep.mubr.f32.mxu0 %v7295_v0 }
  0xf5   :  { %4212 = vmatmul.mubr.msk.f32.gmra.mxu1 %vm225_vm1, %v5003_v22  ;;  %4222 = vmatmul.mubr.msk.f32.gmra.mxu0 %vm225_vm1, %v5044_v37 }
  0xf6   :  { %752 = vmatprep.mubr.f32.mxu1 %v7295_v0  ;;  %880 = vmatprep.mubr.f32.mxu0 %v7295_v0 }
  0xf9   :  { %4213 = vmatmul.mubr.msk.f32.gmra.mxu1 %vm225_vm1, %v5021_v28  ;;  %4223 = vmatmul.mubr.msk.f32.gmra.mxu0 %vm225_vm1, %v5056_v42 }
  0xfa   :  { %886 = vmatprep.mubr.f32.mxu0 %v7295_v0  ;;  %1059 = vmatprep.mubr.f32.mxu1 %v7295_v0 }
  0xfd   :  { %4224 = vmatmul.mubr.msk.f32.gmra.mxu0 %vm225_vm1, %v5068_v45  ;;  %4244 = vmatmul.mubr.msk.f32.vlgmr.msra.gmra.mxu1 %vm225_vm1, %v164_v61 }
  0xfe   :  { %4299 = vmatpush1.msk.msra.mxu1 %vm304_vm0, %v1231_v6  ;;  %892 = vmatprep.mubr.f32.mxu0 %v7295_v0 }
  0xff   :  { %1065 = vmatprep.mubr.f32.mxu1 %v7295_v0  ;;  %1495 = vmatprep.subr.mxu1 %v1228_v7 }
 0x100   :  { %1496 = vmatpush1.msra.mxu1 %v1227_v8 }
 0x101   :  { %4225 = vmatmul.mubr.msk.f32.gmra.mxu0 %vm225_vm1, %v5079_v47  ;;  %4245 = vmatmul.mubr.msk.f32.gmra.mxu1 %vm225_vm1, %v4964_v9 }
 0x102   :  { %898 = vmatprep.mubr.f32.mxu0 %v7295_v0  ;;  %1071 = vmatprep.mubr.f32.mxu1 %v7295_v0 }
 0x103   :  { %1497 = vmatprep.subr.mxu1 %v1224_v11 }
 0x104   :  { %1498 = vmatpush1.msra.mxu1 %v1223_v12  ;;  %v2292_v12 = vld [vmem:[#allocation6 + $0x5e8] sm:$0xff] }
 0x105   :  { %4226 = vmatmul.mubr.msk.f32.gmra.mxu0 %vm225_vm1, %v5091_v48  ;;  %4246 = vmatmul.mubr.msk.f32.gmra.mxu1 %vm225_vm1, %v4980_v14 }
 0x106   :  { %904 = vmatprep.mubr.f32.mxu0 %v7295_v0  ;;  %1077 = vmatprep.mubr.f32.mxu1 %v7295_v0 }
 0x107   :  { %1499 = vmatprep.subr.mxu1 %v1220_v13  ;;  %v2294_v13 = vld [vmem:[#allocation6 + $0x5f8] sm:$0xff]  ;;  %2359 = vmatprep.subr.mxu0 %v2292_v12 }
 0x108   :  { %1500 = vmatpush1.msra.mxu1 %v1219_v16 }
 0x109   :  { %4227 = vmatmul.mubr.msk.f32.gmra.mxu0 %vm225_vm1, %v5102_v49  ;;  %4247 = vmatmul.mubr.msk.f32.gmra.mxu1 %vm225_vm1, %v4998_v21 }
 0x10a   :  { %910 = vmatprep.mubr.f32.mxu0 %v7295_v0  ;;  %1083 = vmatprep.mubr.f32.mxu1 %v7295_v0 }
 0x10b   :  { %2488 = vmatprep.subr.mxu1 %v2294_v13  ;;  %v2284_v13 = vld [vmem:[#allocation6 + $0x5a8] sm:$0xff] }
 0x10d   :  { %4228 = vmatmul.mubr.msk.f32.gmra.mxu0 %vm225_vm1, %v5113_v50  ;;  %4248 = vmatmul.mubr.msk.f32.gmra.mxu1 %vm225_vm1, %v5016_v27 }
 0x10e   :  { %916 = vmatprep.mubr.f32.mxu0 %v7295_v0  ;;  %1089 = vmatprep.mubr.f32.mxu1 %v7295_v0 }
 0x111   :  { %4229 = vmatmul.mubr.msk.f32.gmra.mxu0 %vm225_vm1, %v5124_v51  ;;  %4249 = vmatmul.mubr.msk.f32.gmra.mxu1 %vm225_vm1, %v5032_v32 }
 0x112   :  { %922 = vmatprep.mubr.f32.mxu0 %v7295_v0  ;;  %1095 = vmatprep.mubr.f32.mxu1 %v7295_v0 }
 0x115   :  { %4230 = vmatmul.mubr.msk.f32.gmra.mxu0 %vm225_vm1, %v5135_v52  ;;  %4250 = vmatmul.mubr.msk.f32.gmra.mxu1 %vm225_vm1, %v5044_v37 }
 0x116   :  { %928 = vmatprep.mubr.f32.mxu0 %v7295_v0  ;;  %1101 = vmatprep.mubr.f32.mxu1 %v7295_v0 }
 0x119   :  { %4231 = vmatmul.mubr.msk.f32.gmra.mxu0 %vm225_vm1, %v5146_v53  ;;  %4251 = vmatmul.mubr.msk.f32.gmra.mxu1 %vm225_vm1, %v5056_v42 }
 0x11a   :  { %934 = vmatprep.mubr.f32.mxu0 %v7295_v0  ;;  %1107 = vmatprep.mubr.f32.mxu1 %v7295_v0 }
 0x11d   :  { %4232 = vmatmul.mubr.msk.f32.gmra.mxu0 %vm225_vm1, %v5157_v54  ;;  %4252 = vmatmul.mubr.msk.f32.gmra.mxu1 %vm225_vm1, %v5068_v45 }
 0x11e   :  { %940 = vmatprep.mubr.f32.mxu0 %v7295_v0  ;;  %1113 = vmatprep.mubr.f32.mxu1 %v7295_v0 }
 0x121   :  { %4233 = vmatmul.mubr.msk.f32.gmra.mxu0 %vm225_vm1, %v5168_v55  ;;  %4253 = vmatmul.mubr.msk.f32.gmra.mxu1 %vm225_vm1, %v5079_v47 }
 0x122   :  { %946 = vmatprep.mubr.f32.mxu0 %v7295_v0  ;;  %1119 = vmatprep.mubr.f32.mxu1 %v7295_v0 }
 0x125   :  { %4234 = vmatmul.mubr.msk.f32.gmra.mxu0 %vm225_vm1, %v5179_v56  ;;  %4254 = vmatmul.mubr.msk.f32.gmra.mxu1 %vm225_vm1, %v5091_v48 }
 0x126   :  { %952 = vmatprep.mubr.f32.mxu0 %v7295_v0  ;;  %1125 = vmatprep.mubr.f32.mxu1 %v7295_v0 }
 0x129   :  { %4235 = vmatmul.mubr.msk.f32.gmra.mxu0 %vm225_vm1, %v5190_v57  ;;  %4255 = vmatmul.mubr.msk.f32.gmra.mxu1 %vm225_vm1, %v5102_v49 }
 0x12a   :  { %958 = vmatprep.mubr.f32.mxu0 %v7295_v0  ;;  %1131 = vmatprep.mubr.f32.mxu1 %v7295_v0 }
 0x12d   :  { %4236 = vmatmul.mubr.msk.f32.gmra.mxu0 %vm225_vm1, %v5201_v58  ;;  %4256 = vmatmul.mubr.msk.f32.gmra.mxu1 %vm225_vm1, %v5113_v50 }
 0x12e   :  { %964 = vmatprep.mubr.f32.mxu0 %v7295_v0  ;;  %1137 = vmatprep.mubr.f32.mxu1 %v7295_v0 }
 0x131   :  { %4237 = vmatmul.mubr.msk.f32.gmra.mxu0 %vm225_vm1, %v5212_v59  ;;  %4257 = vmatmul.mubr.msk.f32.gmra.mxu1 %vm225_vm1, %v5124_v51 }
 0x132   :  { %970 = vmatprep.mubr.f32.mxu0 %v7295_v0  ;;  %1143 = vmatprep.mubr.f32.mxu1 %v7295_v0 }
 0x135   :  { %4238 = vmatmul.mubr.msk.f32.gmra.mxu0 %vm225_vm1, %v5223_v60  ;;  %4258 = vmatmul.mubr.msk.f32.gmra.mxu1 %vm225_vm1, %v5135_v52 }
 0x136   :  { %976 = vmatprep.mubr.f32.mxu0 %v7295_v0  ;;  %1149 = vmatprep.mubr.f32.mxu1 %v7295_v0 }
 0x139   :  { %4239 = vmatmul.mubr.msk.f32.gmra.mxu0 %vm225_vm1, %v4969_v10  ;;  %4259 = vmatmul.mubr.msk.f32.gmra.mxu1 %vm225_vm1, %v5146_v53 }
 0x13a   :  { %982 = vmatprep.mubr.f32.mxu0 %v7295_v0  ;;  %1155 = vmatprep.mubr.f32.mxu1 %v7295_v0 }
 0x13d   :  { %4240 = vmatmul.mubr.msk.f32.gmra.mxu0 %vm225_vm1, %v4985_v15  ;;  %4260 = vmatmul.mubr.msk.f32.gmra.mxu1 %vm225_vm1, %v5157_v54 }
 0x13e   :  { %988 = vmatprep.mubr.f32.mxu0 %v7295_v0  ;;  %1161 = vmatprep.mubr.f32.mxu1 %v7295_v0 }
 0x141   :  { %4241 = vmatmul.mubr.msk.f32.gmra.mxu0 %vm225_vm1, %v5003_v22  ;;  %4261 = vmatmul.mubr.msk.f32.gmra.mxu1 %vm225_vm1, %v5168_v55 }
 0x142   :  { %1167 = vmatprep.mubr.f32.mxu1 %v7295_v0  ;;  %1312 = vmatprep.mubr.f32.mxu0 %v7295_v0 }
 0x145   :  { %v5390_v9 = vpop.f32.mrf.mxu0  ;;  %v5392_v17 = vpop.f32.mrf.mxu1  ;;  %4262 = vmatmul.mubr.msk.f32.gmra.mxu1 %vm225_vm1, %v5179_v56  ;;  %4272 = vmatmul.mubr.msk.f32.vlgmr.msra.gmra.mxu0 %vm225_vm1, %v4980_v14 }
 0x146   :  { %7310 = vst [vmem:[#allocation24_spill] sm:$0xff] %v5392_v17  ;;  %1173 = vmatprep.mubr.f32.mxu1 %v7295_v0  ;;  %1318 = vmatprep.mubr.f32.mxu0 %v7295_v0  ;;  %v7332_v17 = vmov 0.0  }
 0x147   :  { %v5400_v18 = vpop.f32.mrf.mxu0  ;;  %v5402_v19 = vpop.f32.mrf.mxu1 }
 0x148   :  { %7311 = vst [vmem:[#allocation25_spill] sm:$0xff] %v5400_v18  ;;  %7312 = vst [vmem:[#allocation26_spill] sm:$0xff] %v5402_v19 }
 0x149   :  { %v5404_v20 = vpop.f32.mrf.mxu0  ;;  %v5406_v23 = vpop.f32.mrf.mxu1  ;;  %4263 = vmatmul.mubr.msk.f32.gmra.mxu1 %vm225_vm1, %v5190_v57  ;;  %4273 = vmatmul.mubr.msk.f32.gmra.mxu0 %vm225_vm1, %v4998_v21 }
 0x14a   :  { %7313 = vst [vmem:[#allocation27_spill] sm:$0xff] %v5406_v23  ;;  %1179 = vmatprep.mubr.f32.mxu1 %v7295_v0  ;;  %1324 = vmatprep.mubr.f32.mxu0 %v7295_v0 }
 0x14b   :  { %v5414_v24 = vpop.f32.mrf.mxu0  ;;  %v5416_v25 = vpop.f32.mrf.mxu1 }
 0x14c   :  { %7314 = vst [vmem:[#allocation28_spill] sm:$0xff] %v5416_v25 }
 0x14d   :  { %v5418_v26 = vpop.f32.mrf.mxu0  ;;  %v5420_v28 = vpop.f32.mrf.mxu1  ;;  %4264 = vmatmul.mubr.msk.f32.gmra.mxu1 %vm225_vm1, %v5201_v58  ;;  %4274 = vmatmul.mubr.msk.f32.gmra.mxu0 %vm225_vm1, %v5016_v27 }
 0x14e   :  { %7315 = vst [vmem:[#allocation29_spill] sm:$0xff] %v5420_v28  ;;  %1185 = vmatprep.mubr.f32.mxu1 %v7295_v0  ;;  %1330 = vmatprep.mubr.f32.mxu0 %v7295_v0  ;;  %v2290_v28 = vld [vmem:[#allocation6 + $0x5d8] sm:$0xff] }
 0x14f   :  { %v5428_v29 = vpop.f32.mrf.mxu0  ;;  %v5430_v30 = vpop.f32.mrf.mxu1 }
 0x150   :  { %7316 = vst [vmem:[#allocation30_spill] sm:$0xff] %v5430_v30 }
 0x151   :  { %v5432_v31 = vpop.f32.mrf.mxu0  ;;  %v5434_v33 = vpop.f32.mrf.mxu1  ;;  %4265 = vmatmul.mubr.msk.f32.gmra.mxu1 %vm225_vm1, %v5212_v59  ;;  %4275 = vmatmul.mubr.msk.f32.gmra.mxu0 %vm225_vm1, %v5032_v32 }
 0x152   :  { %7317 = vst [vmem:[#allocation31_spill] sm:$0xff] %v5434_v33  ;;  %1191 = vmatprep.mubr.f32.mxu1 %v7295_v0  ;;  %1336 = vmatprep.mubr.f32.mxu0 %v7295_v0  ;;  %v2288_v33 = vld [vmem:[#allocation6 + $0x5c8] sm:$0xff] }
 0x153   :  { %v5442_v34 = vpop.f32.mrf.mxu0  ;;  %v5444_v35 = vpop.f32.mrf.mxu1 }
 0x154   :  { %7318 = vst [vmem:[#allocation32_spill] sm:$0xff] %v5444_v35  ;;  %v2293_v35 = vld [vmem:[#allocation6 + $0x5f0] sm:$0xff] }
 0x155   :  { %v5446_v36 = vpop.f32.mrf.mxu0  ;;  %v5448_v38 = vpop.f32.mrf.mxu1  ;;  %4266 = vmatmul.mubr.msk.f32.gmra.mxu1 %vm225_vm1, %v5223_v60  ;;  %4276 = vmatmul.mubr.msk.f32.gmra.mxu0 %vm225_vm1, %v5044_v37 }
 0x156   :  { %1197 = vmatprep.mubr.f32.mxu1 %v7295_v0  ;;  %1342 = vmatprep.mubr.f32.mxu0 %v7295_v0 }
 0x157   :  { %v5456_v39 = vpop.f32.mrf.mxu0  ;;  %v5458_v40 = vpop.f32.mrf.mxu1 }
 0x159   :  { %v5460_v41 = vpop.f32.mrf.mxu0  ;;  %v5462_v43 = vpop.f32.mrf.mxu1  ;;  %4267 = vmatmul.mubr.msk.f32.gmra.mxu1 %vm225_vm1, %v4969_v10  ;;  %4277 = vmatmul.mubr.msk.f32.gmra.mxu0 %vm225_vm1, %v5056_v42 }
 0x15a   :  { %1203 = vmatprep.mubr.f32.mxu1 %v7295_v0  ;;  %1348 = vmatprep.mubr.f32.mxu0 %v7295_v0 }
 0x15b   :  { %v5470_v44 = vpop.f32.mrf.mxu0  ;;  %v5472_v46 = vpop.f32.mrf.mxu1 }
 0x15d   :  { %v5474_v61 = vpop.f32.mrf.mxu0  ;;  %v5476_v62 = vpop.f32.mrf.mxu1  ;;  %4268 = vmatmul.mubr.msk.f32.gmra.mxu1 %vm225_vm1, %v4985_v15  ;;  %4278 = vmatmul.mubr.msk.f32.gmra.mxu0 %vm225_vm1, %v5068_v45 }
 0x15e   :  { %7319 = vst [vmem:[#allocation33_spill] sm:$0xff] %v5476_v62  ;;  %1209 = vmatprep.mubr.f32.mxu1 %v7295_v0  ;;  %1354 = vmatprep.mubr.f32.mxu0 %v7295_v0  ;;  %v2308_v62 = vld [vmem:[#allocation6 + $0x668] sm:$0xff] }
 0x15f   :  { %v5484_v10 = vpop.f32.mrf.mxu0  ;;  %v5486_v63 = vpop.f32.mrf.mxu1 }
 0x160   :  { %7320 = vst [vmem:[#allocation34_spill] sm:$0xff] %v5486_v63 }
 0x161   :  { %v5488_v1 = vpop.f32.mrf.mxu0  ;;  %v5490_v2 = vpop.f32.mrf.mxu1  ;;  %4269 = vmatmul.mubr.msk.f32.gmra.mxu1 %vm225_vm1, %v5003_v22  ;;  %4279 = vmatmul.mubr.msk.f32.gmra.mxu0 %vm225_vm1, %v5079_v47 }
 0x162   :  { %7321 = vst [vmem:[#allocation35_spill] sm:$0xff] %v5490_v2  ;;  %1360 = vmatprep.mubr.f32.mxu0 %v7295_v0  ;;  %1533 = vmatprep.mubr.f32.mxu1 %v7295_v0  ;;  %v2321_v2 = vld [vmem:[#allocation6 + $0x6d0] sm:$0xff] }
 0x163   :  { %v5498_v15 = vpop.f32.mrf.mxu0  ;;  %v5500_v3 = vpop.f32.mrf.mxu1 }
 0x164   :  { %7322 = vst [vmem:[#allocation36_spill] sm:$0xff] %v5500_v3  ;;  %v2323_v3 = vld [vmem:[#allocation6 + $0x6e0] sm:$0xff] }
 0x165   :  { %v5502_v4 = vpop.f32.mrf.mxu0  ;;  %v5504_v5 = vpop.f32.mrf.mxu1  ;;  %4280 = vmatmul.mubr.msk.f32.gmra.mxu0 %vm225_vm1, %v5091_v48  ;;  %4300 = vmatmul.mubr.msk.f32.vlgmr.msra.gmra.mxu1 %vm225_vm1, %v4980_v14 }
 0x166   :  { %7323 = vst [vmem:[#allocation37_spill] sm:$0xff] %v5504_v5  ;;  %1366 = vmatprep.mubr.f32.mxu0 %v7295_v0  ;;  %1539 = vmatprep.mubr.f32.mxu1 %v7295_v0 }
 0x167   :  { %v5512_v22 = vpop.f32.mrf.mxu0  ;;  %v5514_v6 = vpop.f32.mrf.mxu1  ;;  %2489 = vmatpush1.msra.mxu1 %v2293_v35 }
 0x168   :  { %7324 = vst [vmem:[#allocation38_spill] sm:$0xff] %v5514_v6  ;;  %2490 = vmatprep.subr.mxu1 %v2290_v28 }
 0x169   :  { %v5516_v7 = vpop.f32.mrf.mxu0  ;;  %v5518_v8 = vpop.f32.mrf.mxu1  ;;  %4281 = vmatmul.mubr.msk.f32.gmra.mxu0 %vm225_vm1, %v5102_v49  ;;  %4301 = vmatmul.mubr.msk.f32.gmra.mxu1 %vm225_vm1, %v4998_v21  ;;  %v2291_v21 = vld [vmem:[#allocation6 + $0x5e0] sm:$0xff] }
 0x16a   :  { %7325 = vst [vmem:[#allocation39_spill] sm:$0xff] %v5518_v8  ;;  %1372 = vmatprep.mubr.f32.mxu0 %v7295_v0  ;;  %1545 = vmatprep.mubr.f32.mxu1 %v7295_v0  ;;  %v2351_v8 = vld [vmem:[#allocation6 + $0x7c0] sm:$0xff] }
 0x16b   :  { %v5526_v14 = vpop.f32.mrf.mxu0  ;;  %v5528_v11 = vpop.f32.mrf.mxu1  ;;  %2360 = vmatpush1.msra.mxu0 %v2291_v21  ;;  %v2286_v21 = vld [vmem:[#allocation6 + $0x5b8] sm:$0xff] }
 0x16c   :  { %7326 = vst [vmem:[#allocation40_spill] sm:$0xff] %v5528_v11  ;;  %2361 = vmatprep.subr.mxu0 %v2288_v33  ;;  %v2280_v33 = vld [vmem:[#allocation6 + $0x588] sm:$0xff]  ;;  %v2281_v11 = vld [vmem:[#allocation6 + $0x590] sm:$0xff] }
 0x16d   :  { %v5530_v16 = vpop.f32.mrf.mxu0  ;;  %v5532_v30 = vpop.f32.mrf.mxu1  ;;  %4282 = vmatmul.mubr.msk.f32.gmra.mxu0 %vm225_vm1, %v5113_v50  ;;  %4302 = vmatmul.mubr.msk.f32.gmra.mxu1 %vm225_vm1, %v5016_v27  ;;  %v2287_v27 = vld [vmem:[#allocation6 + $0x5c0] sm:$0xff] }
 0x16e   :  { %7327 = vst [vmem:[#allocation41_spill] sm:$0xff] %v5532_v30  ;;  %1378 = vmatprep.mubr.f32.mxu0 %v7295_v0  ;;  %1551 = vmatprep.mubr.f32.mxu1 %v7295_v0  ;;  %v2289_v0 = vld [vmem:[#allocation6 + $0x5d0] sm:$0xff] }
 0x16f   :  { %v5540_v18 = vpop.f32.mrf.mxu0  ;;  %v5542_v25 = vpop.f32.mrf.mxu1  ;;  %2362 = vmatpush1.msra.mxu0 %v2287_v27  ;;  %2491 = vmatpush1.msra.mxu1 %v2289_v0  ;;  %v2285_v30 = vld [vmem:[#allocation6 + $0x5b0] sm:$0xff]  ;;  %v2282_v27 = vld [vmem:[#allocation6 + $0x598] sm:$0xff] }
 0x170   :  { %7328 = vst [vmem:[#allocation42_spill] sm:$0xff] %v5540_v18  ;;  %7329 = vst [vmem:[#allocation43_spill] sm:$0xff] %v5542_v25  ;;  %2363 = vmatprep.subr.mxu0 %v2284_v13  ;;  %2492 = vmatprep.subr.mxu1 %v2286_v21  ;;  %v2276_v21 = vld [vmem:[#allocation6 + $0x568] sm:$0xff]  ;;  %v2311_v18 = vld [vmem:[#allocation6 + $0x680] sm:$0xff] }
 0x171   :  { %v5544_v23 = vpop.f32.mrf.mxu0  ;;  %v5546_v19 = vpop.f32.mrf.mxu1  ;;  %4283 = vmatmul.mubr.msk.f32.gmra.mxu0 %vm225_vm1, %v5124_v51  ;;  %4303 = vmatmul.mubr.msk.f32.gmra.mxu1 %vm225_vm1, %v5032_v32  ;;  %v2283_v32 = vld [vmem:[#allocation6 + $0x5a0] sm:$0xff] }
 0x172   :  { %7330 = vst [vmem:[#allocation44_spill] sm:$0xff] %v5544_v23  ;;  %7331 = vst [vmem:[#allocation45_spill] sm:$0xff] %v5546_v19  ;;  %1384 = vmatprep.mubr.f32.mxu0 %v7332_v17  ;;  %1557 = vmatprep.mubr.f32.mxu1 %v7332_v17  ;;  %v2316_v23 = vld [vmem:[#allocation6 + $0x6a8] sm:$0xff] }
 0x173   :  { %v5554_v12 = vpop.f32.mrf.mxu0  ;;  %v5556_v35 = vpop.f32.mrf.mxu1  ;;  %2364 = vmatpush1.msra.mxu0 %v2283_v32  ;;  %2493 = vmatpush1.msra.mxu1 %v2285_v30  ;;  %v2278_v32 = vld [vmem:[#allocation6 + $0x578] sm:$0xff] }
 0x174   :  { %7333 = vst [vmem:[#allocation46_spill] sm:$0xff] %v5554_v12  ;;  %7334 = vst [vmem:[#allocation47_spill] sm:$0xff] %v5556_v35  ;;  %2365 = vmatprep.subr.mxu0 %v2280_v33  ;;  %2494 = vmatprep.subr.mxu1 %v2282_v27  ;;  %v2272_v27 = vld [vmem:[#allocation6 + $0x548] sm:$0xff] }
 0x175   :  { %v5558_v19 = vpop.f32.mrf.mxu0  ;;  %v5560_v25 = vpop.f32.mrf.mxu1  ;;  %4284 = vmatmul.mubr.msk.f32.gmra.mxu0 %vm225_vm1, %v5135_v52  ;;  %4304 = vmatmul.mubr.msk.f32.gmra.mxu1 %vm225_vm1, %v5044_v37  ;;  %v2279_v37 = vld [vmem:[#allocation6 + $0x580] sm:$0xff] }
 0x176   :  { %7335 = vst [vmem:[#allocation48_spill] sm:$0xff] %v5558_v19  ;;  %7336 = vst [vmem:[#allocation49_spill] sm:$0xff] %v5560_v25  ;;  %1390 = vmatprep.mubr.f32.mxu0 %v7332_v17  ;;  %1563 = vmatprep.mubr.f32.mxu1 %v7332_v17 }
 0x177   :  { %v5568_v28 = vpop.f32.mrf.mxu0  ;;  %v5570_v0 = vpop.f32.mrf.mxu1  ;;  %2366 = vmatpush1.msra.mxu0 %v2279_v37  ;;  %2495 = vmatpush1.msra.mxu1 %v2281_v11  ;;  %v2274_v37 = vld [vmem:[#allocation6 + $0x558] sm:$0xff] }
 0x178   :  { %7337 = vst [vmem:[#allocation50_spill] sm:$0xff] %v5568_v28  ;;  %7338 = vst [vmem:[#allocation51_spill] sm:$0xff] %v5570_v0  ;;  %2367 = vmatprep.subr.mxu0 %v2276_v21  ;;  %2496 = vmatprep.subr.mxu1 %v2278_v32  ;;  %v2268_v32 = vld [vmem:[#allocation6 + $0x528] sm:$0xff]  ;;  %v2335_v28 = vld [vmem:[#allocation6 + $0x740] sm:$0xff] }
 0x179   :  { %v5572_v25 = vpop.f32.mrf.mxu0  ;;  %v5574_v35 = vpop.f32.mrf.mxu1  ;;  %4285 = vmatmul.mubr.msk.f32.gmra.mxu0 %vm225_vm1, %v5146_v53  ;;  %4305 = vmatmul.mubr.msk.f32.gmra.mxu1 %vm225_vm1, %v5056_v42  ;;  %v2275_v42 = vld [vmem:[#allocation6 + $0x560] sm:$0xff] }
 0x17a   :  { %7339 = vst [vmem:[#allocation52_spill] sm:$0xff] %v5572_v25  ;;  %7340 = vst [vmem:[#allocation53_spill] sm:$0xff] %v5574_v35  ;;  %1396 = vmatprep.mubr.f32.mxu0 %v7332_v17  ;;  %1569 = vmatprep.mubr.f32.mxu1 %v7332_v17 }
 0x17b   :  { %v5582_v13 = vpop.f32.mrf.mxu0  ;;  %v5584_v30 = vpop.f32.mrf.mxu1  ;;  %2368 = vmatpush1.msra.mxu0 %v2275_v42  ;;  %v2270_v42 = vld [vmem:[#allocation6 + $0x538] sm:$0xff] }
 0x17c   :  { %7341 = vst [vmem:[#allocation54_spill] sm:$0xff] %v5582_v13  ;;  %7342 = vst [vmem:[#allocation55_spill] sm:$0xff] %v5584_v30  ;;  %v2277_v13 = vld [vmem:[#allocation6 + $0x570] sm:$0xff]  ;;  %2369 = vmatprep.subr.mxu0 %v2272_v27 }
 0x17d   :  { %v5586_v35 = vpop.f32.mrf.mxu0  ;;  %v5588_v0 = vpop.f32.mrf.mxu1  ;;  %4286 = vmatmul.mubr.msk.f32.gmra.mxu0 %vm225_vm1, %v5157_v54  ;;  %4306 = vmatmul.mubr.msk.f32.gmra.mxu1 %vm225_vm1, %v5068_v45  ;;  %v2271_v45 = vld [vmem:[#allocation6 + $0x540] sm:$0xff] }
 0x17e   :  { %7343 = vst [vmem:[#allocation56_spill] sm:$0xff] %v5586_v35  ;;  %7344 = vst [vmem:[#allocation57_spill] sm:$0xff] %v5588_v0  ;;  %1402 = vmatprep.mubr.f32.mxu0 %v7332_v17  ;;  %1575 = vmatprep.mubr.f32.mxu1 %v7332_v17 }
 0x17f   :  { %v5596_v33 = vpop.f32.mrf.mxu0  ;;  %v5598_v11 = vpop.f32.mrf.mxu1  ;;  %2497 = vmatpush1.msra.mxu1 %v2277_v13  ;;  %2370 = vmatpush1.msra.mxu0 %v2271_v45  ;;  %v2266_v45 = vld [vmem:[#allocation6 + $0x518] sm:$0xff] }
 0x180   :  { %7345 = vst [vmem:[#allocation58_spill] sm:$0xff] %v5596_v33  ;;  %7346 = vst [vmem:[#allocation59_spill] sm:$0xff] %v5598_v11  ;;  %v2273_v33 = vld [vmem:[#allocation6 + $0x550] sm:$0xff]  ;;  %2498 = vmatprep.subr.mxu1 %v2274_v37  ;;  %2371 = vmatprep.subr.mxu0 %v2268_v32  ;;  %v2264_v37 = vld [vmem:[#allocation6 + $0x508] sm:$0xff] }
 0x181   :  { %v5600_v0 = vpop.f32.mrf.mxu0  ;;  %v5602_v30 = vpop.f32.mrf.mxu1  ;;  %4287 = vmatmul.mubr.msk.f32.gmra.mxu0 %vm225_vm1, %v5168_v55  ;;  %4307 = vmatmul.mubr.msk.f32.gmra.mxu1 %vm225_vm1, %v5079_v47  ;;  %v2267_v47 = vld [vmem:[#allocation6 + $0x520] sm:$0xff] }
 0x182   :  { %7347 = vst [vmem:[#allocation60_spill] sm:$0xff] %v5600_v0  ;;  %7348 = vst [vmem:[#allocation61_spill] sm:$0xff] %v5602_v30  ;;  %1408 = vmatprep.mubr.f32.mxu0 %v7332_v17  ;;  %1581 = vmatprep.mubr.f32.mxu1 %v7332_v17  ;;  %v2352_v0 = vld [vmem:[#allocation6 + $0x7c8] sm:$0xff] }
 0x183   :  { %v5610_v21 = vpop.f32.mrf.mxu0  ;;  %v5612_v13 = vpop.f32.mrf.mxu1  ;;  %2499 = vmatpush1.msra.mxu1 %v2273_v33  ;;  %2372 = vmatpush1.msra.mxu0 %v2267_v47  ;;  %v2262_v47 = vld [vmem:[#allocation6 + $0x4f8] sm:$0xff] }
 0x184   :  { %7349 = vst [vmem:[#allocation62_spill] sm:$0xff] %v5610_v21  ;;  %7350 = vst [vmem:[#allocation63_spill] sm:$0xff] %v5612_v13  ;;  %v2269_v21 = vld [vmem:[#allocation6 + $0x530] sm:$0xff]  ;;  %2500 = vmatprep.subr.mxu1 %v2270_v42  ;;  %2373 = vmatprep.subr.mxu0 %v2264_v37  ;;  %v2260_v42 = vld [vmem:[#allocation6 + $0x4e8] sm:$0xff] }
 0x185   :  { %v5614_v30 = vpop.f32.mrf.mxu0  ;;  %v5616_v11 = vpop.f32.mrf.mxu1  ;;  %4288 = vmatmul.mubr.msk.f32.gmra.mxu0 %vm225_vm1, %v5179_v56  ;;  %4308 = vmatmul.mubr.msk.f32.gmra.mxu1 %vm225_vm1, %v5091_v48  ;;  %v2263_v48 = vld [vmem:[#allocation6 + $0x500] sm:$0xff] }
 0x186   :  { %7351 = vst [vmem:[#allocation64_spill] sm:$0xff] %v5614_v30  ;;  %7352 = vst [vmem:[#allocation65_spill] sm:$0xff] %v5616_v11  ;;  %1414 = vmatprep.mubr.f32.mxu0 %v7332_v17  ;;  %1587 = vmatprep.mubr.f32.mxu1 %v7332_v17  ;;  %v2356_v30 = vld [vmem:[#allocation6 + $0x7e8] sm:$0xff] }
 0x187   :  { %v5624_v27 = vpop.f32.mrf.mxu0  ;;  %v5626_v33 = vpop.f32.mrf.mxu1  ;;  %2501 = vmatpush1.msra.mxu1 %v2269_v21  ;;  %2374 = vmatpush1.msra.mxu0 %v2263_v48  ;;  %v2258_v48 = vld [vmem:[#allocation6 + $0x4d8] sm:$0xff] }
 0x188   :  { %7353 = vst [vmem:[#allocation66_spill] sm:$0xff] %v5624_v27  ;;  %7354 = vst [vmem:[#allocation67_spill] sm:$0xff] %v5626_v33  ;;  %v2265_v27 = vld [vmem:[#allocation6 + $0x510] sm:$0xff]  ;;  %2502 = vmatprep.subr.mxu1 %v2266_v45  ;;  %2375 = vmatprep.subr.mxu0 %v2260_v42  ;;  %v2256_v45 = vld [vmem:[#allocation6 + $0x4c8] sm:$0xff] }
 0x189   :  { %v5628_v11 = vpop.f32.mrf.mxu0  ;;  %v5630_v13 = vpop.f32.mrf.mxu1  ;;  %4289 = vmatmul.mubr.msk.f32.gmra.mxu0 %vm225_vm1, %v5190_v57  ;;  %4309 = vmatmul.mubr.msk.f32.gmra.mxu1 %vm225_vm1, %v5102_v49  ;;  %v2259_v49 = vld [vmem:[#allocation6 + $0x4e0] sm:$0xff] }
 0x18a   :  { %7355 = vst [vmem:[#allocation68_spill] sm:$0xff] %v5628_v11  ;;  %7356 = vst [vmem:[#allocation69_spill] sm:$0xff] %v5630_v13  ;;  %1420 = vmatprep.mubr.f32.mxu0 %v7332_v17  ;;  %1593 = vmatprep.mubr.f32.mxu1 %v7332_v17 }
 0x18b   :  { %v5638_v32 = vpop.f32.mrf.mxu0  ;;  %v5640_v21 = vpop.f32.mrf.mxu1  ;;  %2503 = vmatpush1.msra.mxu1 %v2265_v27  ;;  %2376 = vmatpush1.msra.mxu0 %v2259_v49  ;;  %v2254_v49 = vld [vmem:[#allocation6 + $0x4b8] sm:$0xff] }
 0x18c   :  { %7357 = vst [vmem:[#allocation70_spill] sm:$0xff] %v5638_v32  ;;  %7358 = vst [vmem:[#allocation71_spill] sm:$0xff] %v5640_v21  ;;  %v2261_v32 = vld [vmem:[#allocation6 + $0x4f0] sm:$0xff]  ;;  %2504 = vmatprep.subr.mxu1 %v2262_v47  ;;  %2377 = vmatprep.subr.mxu0 %v2256_v45  ;;  %v2252_v47 = vld [vmem:[#allocation6 + $0x4a8] sm:$0xff] }
 0x18d   :  { %v5642_v13 = vpop.f32.mrf.mxu0  ;;  %v5644_v33 = vpop.f32.mrf.mxu1  ;;  %4290 = vmatmul.mubr.msk.f32.gmra.mxu0 %vm225_vm1, %v5201_v58  ;;  %4310 = vmatmul.mubr.msk.f32.gmra.mxu1 %vm225_vm1, %v5113_v50  ;;  %v2255_v50 = vld [vmem:[#allocation6 + $0x4c0] sm:$0xff] }
 0x18e   :  { %7359 = vst [vmem:[#allocation72_spill] sm:$0xff] %v5642_v13  ;;  %7360 = vst [vmem:[#allocation73_spill] sm:$0xff] %v5644_v33  ;;  %1426 = vmatprep.mubr.f32.mxu0 %v7332_v17  ;;  %1599 = vmatprep.mubr.f32.mxu1 %v7332_v17 }
 0x18f   :  { %v5652_v37 = vpop.f32.mrf.mxu0  ;;  %v5654_v27 = vpop.f32.mrf.mxu1  ;;  %2505 = vmatpush1.msra.mxu1 %v2261_v32  ;;  %2378 = vmatpush1.msra.mxu0 %v2255_v50  ;;  %v2250_v50 = vld [vmem:[#allocation6 + $0x498] sm:$0xff] }
 0x190   :  { %7361 = vst [vmem:[#allocation74_spill] sm:$0xff] %v5652_v37  ;;  %7362 = vst [vmem:[#allocation75_spill] sm:$0xff] %v5654_v27  ;;  %v2257_v37 = vld [vmem:[#allocation6 + $0x4d0] sm:$0xff]  ;;  %2506 = vmatprep.subr.mxu1 %v2258_v48  ;;  %2379 = vmatprep.subr.mxu0 %v2252_v47  ;;  %v2248_v48 = vld [vmem:[#allocation6 + $0x488] sm:$0xff] }
 0x191   :  { %v5656_v33 = vpop.f32.mrf.mxu0  ;;  %v5658_v21 = vpop.f32.mrf.mxu1  ;;  %4291 = vmatmul.mubr.msk.f32.gmra.mxu0 %vm225_vm1, %v5212_v59  ;;  %4311 = vmatmul.mubr.msk.f32.gmra.mxu1 %vm225_vm1, %v5124_v51  ;;  %v2251_v51 = vld [vmem:[#allocation6 + $0x4a0] sm:$0xff] }
 0x192   :  { %7363 = vst [vmem:[#allocation76_spill] sm:$0xff] %v5656_v33  ;;  %7364 = vst [vmem:[#allocation77_spill] sm:$0xff] %v5658_v21  ;;  %1432 = vmatprep.mubr.f32.mxu0 %v7332_v17  ;;  %1605 = vmatprep.mubr.f32.mxu1 %v7332_v17  ;;  %v2247_v47 = vld [vmem:[#allocation6 + $0x480] sm:$0xff] }
 0x193   :  { %v5666_v42 = vpop.f32.mrf.mxu0  ;;  %v5668_v32 = vpop.f32.mrf.mxu1  ;;  %2507 = vmatpush1.msra.mxu1 %v2257_v37  ;;  %2380 = vmatpush1.msra.mxu0 %v2251_v51  ;;  %v2231_v33 = vld [vmem:[#allocation6 + $0x400] sm:$0xff] }
 0x194   :  { %7365 = vst [vmem:[#allocation78_spill] sm:$0xff] %v5666_v42  ;;  %7366 = vst [vmem:[#allocation79_spill] sm:$0xff] %v5668_v32  ;;  %v2253_v42 = vld [vmem:[#allocation6 + $0x4b0] sm:$0xff]  ;;  %2508 = vmatprep.subr.mxu1 %v2254_v49  ;;  %2381 = vmatprep.subr.mxu0 %v2248_v48  ;;  %v2243_v48 = vld [vmem:[#allocation6 + $0x460] sm:$0xff] }
 0x195   :  { %v5670_v21 = vpop.f32.mrf.mxu0  ;;  %v5672_v27 = vpop.f32.mrf.mxu1  ;;  %4292 = vmatmul.mubr.msk.f32.gmra.mxu0 %vm225_vm1, %v5223_v60  ;;  %4312 = vmatmul.mubr.msk.f32.gmra.mxu1 %vm225_vm1, %v5135_v52  ;;  %v5691_v52 = vld [vmem:[%s7283_s0 + $0xb8] sm:$0xff] }
 0x196   :  { %7367 = vst [vmem:[#allocation80_spill] sm:$0xff] %v5670_v21  ;;  %7368 = vst [vmem:[#allocation81_spill] sm:$0xff] %v5672_v27  ;;  %1438 = vmatprep.mubr.f32.mxu0 %v7332_v17  ;;  %1611 = vmatprep.mubr.f32.mxu1 %v7332_v17  ;;  %v2249_v49 = vld [vmem:[#allocation6 + $0x490] sm:$0xff] }
 0x197   :  { %v5680_v45 = vpop.f32.mrf.mxu0  ;;  %v5682_v37 = vpop.f32.mrf.mxu1  ;;  %2509 = vmatpush1.msra.mxu1 %v2253_v42  ;;  %2382 = vmatpush1.msra.mxu0 %v2247_v47 }
 0x198   :  { %7369 = vst [vmem:[#allocation82_spill] sm:$0xff] %v5680_v45  ;;  %7370 = vst [vmem:[#allocation83_spill] sm:$0xff] %v5682_v37  ;;  %2510 = vmatprep.subr.mxu1 %v2250_v50  ;;  %v2246_v37 = vld [vmem:[#allocation6 + $0x478] sm:$0xff]  ;;  %v2245_v50 = vld [vmem:[#allocation6 + $0x470] sm:$0xff] }
 0x199   :  { %v5684_v60 = vpop.f32.mrf.mxu0  ;;  %v5686_v27 = vpop.f32.mrf.mxu1  ;;  %4293 = vmatmul.mubr.msk.f32.gmra.mxu0 %vm225_vm1, %v5691_v52  ;;  %4313 = vmatmul.mubr.msk.f32.gmra.mxu1 %vm225_vm1, %v5146_v53  ;;  %v5710_v53 = vld [vmem:[%s7283_s0 + $0xc0] sm:$0xff] }
 0x19a   :  { %7371 = vst [vmem:[#allocation84_spill] sm:$0xff] %v5684_v60  ;;  %7372 = vst [vmem:[#allocation85_spill] sm:$0xff] %v5686_v27  ;;  %1444 = vmatprep.mubr.f32.mxu0 %v7332_v17  ;;  %1617 = vmatprep.mubr.f32.mxu1 %v7332_v17  ;;  %v2244_v27 = vld [vmem:[#allocation6 + $0x468] sm:$0xff] }
 0x19b   :  { %v5699_v42 = vpop.f32.mrf.mxu0  ;;  %v5701_v51 = vpop.f32.mrf.mxu1  ;;  %2511 = vmatpush1.msra.mxu1 %v2249_v49  ;;  %2383 = vmatprep.subr.mxu0 %v2244_v27  ;;  %v2239_v27 = vld [vmem:[#allocation6 + $0x440] sm:$0xff] }
 0x19c   :  { %7373 = vst [vmem:[#allocation86_spill] sm:$0xff] %v5699_v42  ;;  %7374 = vst [vmem:[#allocation87_spill] sm:$0xff] %v5701_v51  ;;  %2512 = vmatprep.subr.mxu1 %v2246_v37  ;;  %2384 = vmatpush1.msra.mxu0 %v2243_v48  ;;  %v2242_v51 = vld [vmem:[#allocation6 + $0x458] sm:$0xff]  ;;  %v2241_v37 = vld [vmem:[#allocation6 + $0x450] sm:$0xff] }
 0x19d   :  { %v5703_v32 = vpop.f32.mrf.mxu1  ;;  %v5705_v60 = vpop.f32.mrf.mxu0  ;;  %4294 = vmatmul.mubr.msk.f32.gmra.mxu0 %vm225_vm1, %v5710_v53  ;;  %4314 = vmatmul.mubr.msk.f32.gmra.mxu1 %vm225_vm1, %v5157_v54  ;;  %v5729_v54 = vld [vmem:[%s7283_s0 + $0xc8] sm:$0xff] }
 0x19e   :  { %7375 = vst [vmem:[#allocation88_spill] sm:$0xff] %v5703_v32  ;;  %1450 = vmatprep.mubr.f32.mxu0 %v7332_v17  ;;  %1623 = vmatprep.mubr.f32.mxu1 %v7332_v17  ;;  %v2240_v32 = vld [vmem:[#allocation6 + $0x448] sm:$0xff] }
 0x19f   :  { %v5718_v47 = vpop.f32.mrf.mxu1  ;;  %v5720_v49 = vpop.f32.mrf.mxu0  ;;  %2513 = vmatpush1.msra.mxu1 %v2245_v50  ;;  %2385 = vmatprep.subr.mxu0 %v2240_v32  ;;  %v2235_v32 = vld [vmem:[#allocation6 + $0x420] sm:$0xff] }
 0x1a0   :  { %7376 = vst [vmem:[#allocation89_spill] sm:$0xff] %v5718_v47  ;;  %7377 = vst [vmem:[#allocation90_spill] sm:$0xff] %v5720_v49  ;;  %2514 = vmatprep.subr.mxu1 %v2242_v51  ;;  %2386 = vmatpush1.msra.mxu0 %v2239_v27  ;;  %v2236_v49 = vld [vmem:[#allocation6 + $0x428] sm:$0xff]  ;;  %v2237_v51 = vld [vmem:[#allocation6 + $0x430] sm:$0xff] }
 0x1a1   :  { %v5722_v42 = vpop.f32.mrf.mxu1  ;;  %v5724_v45 = vpop.f32.mrf.mxu0  ;;  %4295 = vmatmul.mubr.msk.f32.gmra.mxu0 %vm225_vm1, %v5729_v54  ;;  %4315 = vmatmul.mubr.msk.f32.gmra.mxu1 %vm225_vm1, %v5168_v55  ;;  %v5748_v55 = vld [vmem:[%s7283_s0 + $0xd0] sm:$0xff]  ;;  %v5759_v27 = vld [vmem:[%s7283_s0 + $0xd8] sm:$0xff] }
 0x1a2   :  { %7378 = vst [vmem:[#allocation91_spill] sm:$0xff] %v5722_v42  ;;  %1456 = vmatprep.mubr.f32.mxu0 %v7332_v17  ;;  %1629 = vmatprep.mubr.f32.mxu1 %v7332_v17  ;;  %v2238_v42 = vld [vmem:[#allocation6 + $0x438] sm:$0xff] }
 0x1a3   :  { %v5737_v48 = vpop.f32.mrf.mxu1  ;;  %v5739_v50 = vpop.f32.mrf.mxu0  ;;  %2515 = vmatpush1.msra.mxu1 %v2241_v37  ;;  %2387 = vmatprep.subr.mxu0 %v2236_v49 }
 0x1a4   :  { %7379 = vst [vmem:[#allocation92_spill] sm:$0xff] %v5737_v48  ;;  %2516 = vmatprep.subr.mxu1 %v2238_v42  ;;  %v2232_v48 = vld [vmem:[#allocation6 + $0x408] sm:$0xff]  ;;  %2388 = vmatpush1.msra.mxu0 %v2235_v32  ;;  %v2358_v42 = vld [vmem:[#allocation6 + $0x7f8] sm:$0xff] }
 0x1a5   :  { %v5741_v47 = vpop.f32.mrf.mxu1  ;;  %v5743_v21 = vpop.f32.mrf.mxu0  ;;  %4296 = vmatmul.mubr.msk.f32.gmra.mxu0 %vm225_vm1, %v5748_v55  ;;  %4316 = vmatmul.mubr.msk.f32.gmra.mxu1 %vm225_vm1, %v5179_v56  ;;  %v2234_v56 = vld [vmem:[#allocation6 + $0x418] sm:$0xff] }
 0x1a6   :  { %7380 = vst [vmem:[#allocation93_spill] sm:$0xff] %v5741_v47  ;;  %1462 = vmatprep.mubr.f32.mxu0 %v7332_v17  ;;  %1635 = vmatprep.mubr.f32.mxu1 %v7332_v17 }
 0x1a7   :  { %v5761_v37 = vpop.f32.mrf.mxu1  ;;  %v5763_v47 = vpop.f32.mrf.mxu0  ;;  %2517 = vmatpush1.msra.mxu1 %v2237_v51  ;;  %2389 = vmatprep.subr.mxu0 %v2232_v48  ;;  %v2355_v51 = vld [vmem:[#allocation6 + $0x7e0] sm:$0xff]  ;;  %v2354_v48 = vld [vmem:[#allocation6 + $0x7d8] sm:$0xff] }
 0x1a8   :  { %7381 = vst [vmem:[#allocation94_spill] sm:$0xff] %v5761_v37  ;;  %v2233_v37 = vld [vmem:[#allocation6 + $0x410] sm:$0xff]  ;;  %2518 = vmatprep.subr.mxu1 %v2234_v56  ;;  %2390 = vmatpush1.msra.mxu0 %v2231_v33  ;;  %v2348_v56 = vld [vmem:[#allocation6 + $0x7a8] sm:$0xff] }
 0x1a9   :  { %v5765_v13 = vpop.f32.mrf.mxu1  ;;  %v5767_v11 = vpop.f32.mrf.mxu0  ;;  %4297 = vmatmul.mubr.msk.f32.gmra.mxu0 %vm225_vm1, %v5759_v27  ;;  %4317 = vmatmul.mubr.msk.f32.gmra.mxu1 %vm225_vm1, %v5190_v57 }
 0x1aa   :  { %7382 = vst [vmem:[#allocation95_spill] sm:$0xff] %v5765_v13  ;;  %1641 = vmatprep.mubr.f32.mxu1 %v7332_v17  ;;  %2519 = vmatpush1.msra.mxu1 %v2233_v37  ;;  %v2357_v13 = vld [vmem:[#allocation6 + $0x7f0] sm:$0xff] }
 0x1ab   :  { %v5774_v49 = vpop.f32.mrf.mxu1  ;;  %v5776_v32 = vpop.f32.mrf.mxu0  ;;  %2391 = vmatprep.subr.mxu0 %v2356_v30  ;;  %2520 = vmatprep.subr.mxu1 %v2358_v42  ;;  %v2353_v30 = vld [vmem:[#allocation6 + $0x7d0] sm:$0xff] }
 0x1ac   :  { %7383 = vst [vmem:[#allocation96_spill] sm:$0xff] %v5774_v49  ;;  %2392 = vmatpush2.msra.mxu0 %v2355_v51  ;;  %2521 = vmatpush2.msra.mxu1 %v2357_v13  ;;  %v2347_v49 = vld [vmem:[#allocation6 + $0x7a0] sm:$0xff]  ;;  %v2349_v42 = vld [vmem:[#allocation6 + $0x7b0] sm:$0xff]  ;;  %v2344_v51 = vld [vmem:[#allocation6 + $0x788] sm:$0xff] }
 0x1ad   :  { %v5778_v35 = vpop.f32.mrf.mxu1  ;;  %v5780_v57 = vpop.f32.mrf.mxu0  ;;  %4318 = vmatmul.mubr.msk.f32.gmra.mxu1 %vm225_vm1, %v5201_v58  ;;  %2393 = vmatprep.subr.mxu0 %v2352_v0  ;;  %v2346_v13 = vld [vmem:[#allocation6 + $0x798] sm:$0xff] }
 0x1ae   :  { %7384 = vst [vmem:[#allocation97_spill] sm:$0xff] %v5778_v35  ;;  %1647 = vmatprep.mubr.f32.mxu1 %v7332_v17  ;;  %2522 = vmatprep.subr.mxu1 %v2354_v48  ;;  %v2350_v35 = vld [vmem:[#allocation6 + $0x7b8] sm:$0xff] }
 0x1af   :  { %v5785_v33 = vpop.f32.mrf.mxu1  ;;  %v5787_v37 = vpop.f32.mrf.mxu0  ;;  %2394 = vmatpush2.msra.mxu0 %v2351_v8  ;;  %2523 = vmatpush2.msra.mxu1 %v2353_v30  ;;  %v2343_v8 = vld [vmem:[#allocation6 + $0x780] sm:$0xff]  ;;  %v2342_v30 = vld [vmem:[#allocation6 + $0x778] sm:$0xff] }
 0x1b0   :  { %7385 = vst [vmem:[#allocation98_spill] sm:$0xff] %v5785_v33  ;;  %2395 = vmatprep.subr.mxu0 %v2348_v56  ;;  %2524 = vmatprep.subr.mxu1 %v2350_v35  ;;  %v2340_v33 = vld [vmem:[#allocation6 + $0x768] sm:$0xff] }
 0x1b1   :  { %v5789_v25 = vpop.f32.mrf.mxu1  ;;  %v5791_v58 = vpop.f32.mrf.mxu0  ;;  %4319 = vmatmul.mubr.msk.f32.gmra.mxu1 %vm225_vm1, %v5212_v59  ;;  %2396 = vmatpush2.msra.mxu0 %v2347_v49  ;;  %v4636_v56 = vld [vmem:[%s7283_s0 + $0xb0] sm:$0xff] }
 0x1b2   :  { %7386 = vst [vmem:[#allocation99_spill] sm:$0xff] %v5789_v25  ;;  %1653 = vmatprep.mubr.f32.mxu1 %v7332_v17  ;;  %2525 = vmatpush2.msra.mxu1 %v2349_v42  ;;  %v2345_v25 = vld [vmem:[#allocation6 + $0x790] sm:$0xff]  ;;  %v2336_v35 = vld [vmem:[#allocation6 + $0x748] sm:$0xff] }
 0x1b3   :  { %v5796_v0 = vpop.f32.mrf.mxu1  ;;  %v5798_v48 = vpop.f32.mrf.mxu0  ;;  %2397 = vmatprep.subr.mxu0 %v2344_v51  ;;  %2526 = vmatprep.subr.mxu1 %v2346_v13  ;;  %v2341_v51 = vld [vmem:[#allocation6 + $0x770] sm:$0xff] }
 0x1b4   :  { %7387 = vst [vmem:[#allocation100_spill] sm:$0xff] %v5796_v0  ;;  %v2339_v0 = vld [vmem:[#allocation6 + $0x760] sm:$0xff]  ;;  %2398 = vmatpush2.msra.mxu0 %v2343_v8  ;;  %2527 = vmatpush2.msra.mxu1 %v2345_v25  ;;  %v2337_v8 = vld [vmem:[#allocation6 + $0x750] sm:$0xff]  ;;  %v2334_v25 = vld [vmem:[#allocation6 + $0x738] sm:$0xff] }
 0x1b5   :  { %v5800_v6 = vpop.f32.mrf.mxu1  ;;  %v5802_v59 = vpop.f32.mrf.mxu0  ;;  %4320 = vmatmul.mubr.msk.f32.gmra.mxu1 %vm225_vm1, %v4636_v56  ;;  %2399 = vmatprep.subr.mxu0 %v2340_v33  ;;  %v2332_v56 = vld [vmem:[#allocation6 + $0x728] sm:$0xff] }
 0x1b6   :  { %7388 = vst [vmem:[#allocation101_spill] sm:$0xff] %v5800_v6  ;;  %1659 = vmatprep.mubr.f32.mxu1 %v7332_v17  ;;  %2528 = vmatprep.subr.mxu1 %v2342_v30  ;;  %v2338_v6 = vld [vmem:[#allocation6 + $0x758] sm:$0xff] }
 0x1b7   :  { %v5809_v49 = vpop.f32.mrf.mxu1  ;;  %v5811_v42 = vpop.f32.mrf.mxu0  ;;  %2400 = vmatpush2.msra.mxu0 %v2339_v0  ;;  %2529 = vmatpush2.msra.mxu1 %v2341_v51  ;;  %v2331_v0 = vld [vmem:[#allocation6 + $0x720] sm:$0xff] }
 0x1b8   :  { %7389 = vst [vmem:[#allocation102_spill] sm:$0xff] %v5809_v49  ;;  %2401 = vmatprep.subr.mxu0 %v2336_v35  ;;  %2530 = vmatprep.subr.mxu1 %v2338_v6  ;;  %v2333_v49 = vld [vmem:[#allocation6 + $0x730] sm:$0xff]  ;;  %v2330_v35 = vld [vmem:[#allocation6 + $0x718] sm:$0xff]  ;;  %v2327_v51 = vld [vmem:[#allocation6 + $0x700] sm:$0xff] }
 0x1b9   :  { %v5813_v5 = vpop.f32.mrf.mxu1  ;;  %v5815_v13 = vpop.f32.mrf.mxu0  ;;  %4321 = vmatmul.mubr.msk.f32.gmra.mxu1 %vm225_vm1, %v5691_v52  ;;  %2402 = vmatpush2.msra.mxu0 %v2335_v28  ;;  %v2324_v6 = vld [vmem:[#allocation6 + $0x6e8] sm:$0xff] }
 0x1ba   :  { %7390 = vst [vmem:[#allocation103_spill] sm:$0xff] %v5813_v5  ;;  %1665 = vmatprep.mubr.f32.mxu1 %v7332_v17  ;;  %2531 = vmatpush2.msra.mxu1 %v2337_v8  ;;  %v2328_v5 = vld [vmem:[#allocation6 + $0x708] sm:$0xff] }
 0x1bb   :  { %v5820_v33 = vpop.f32.mrf.mxu1  ;;  %v5822_v30 = vpop.f32.mrf.mxu0  ;;  %2403 = vmatprep.subr.mxu0 %v2332_v56  ;;  %2532 = vmatprep.subr.mxu1 %v2334_v25  ;;  %v2329_v56 = vld [vmem:[#allocation6 + $0x710] sm:$0xff] }
 0x1bc   :  { %7391 = vst [vmem:[#allocation104_spill] sm:$0xff] %v5820_v33  ;;  %2404 = vmatpush2.msra.mxu0 %v2331_v0  ;;  %2533 = vmatpush2.msra.mxu1 %v2333_v49  ;;  %v2326_v33 = vld [vmem:[#allocation6 + $0x6f8] sm:$0xff]  ;;  %v2325_v25 = vld [vmem:[#allocation6 + $0x6f0] sm:$0xff]  ;;  %v2320_v0 = vld [vmem:[#allocation6 + $0x6c8] sm:$0xff] }
 0x1bd   :  { %v5824_v19 = vpop.f32.mrf.mxu0  ;;  %v5826_v52 = vpop.f32.mrf.mxu1  ;;  %4322 = vmatmul.mubr.msk.f32.gmra.mxu1 %vm225_vm1, %v5710_v53  ;;  %2405 = vmatprep.subr.mxu0 %v2328_v5  ;;  %v2322_v49 = vld [vmem:[#allocation6 + $0x6d8] sm:$0xff] }
 0x1be   :  { %1671 = vmatprep.mubr.f32.mxu1 %v7332_v17  ;;  %2534 = vmatprep.subr.mxu1 %v2330_v35 }
 0x1bf   :  { %v5831_v28 = vpop.f32.mrf.mxu0  ;;  %v5833_v8 = vpop.f32.mrf.mxu1  ;;  %2406 = vmatpush2.msra.mxu0 %v2327_v51  ;;  %2535 = vmatpush2.msra.mxu1 %v2329_v56  ;;  %v2319_v51 = vld [vmem:[#allocation6 + $0x6c0] sm:$0xff] }
 0x1c0   :  { %2407 = vmatprep.subr.mxu0 %v2324_v6  ;;  %2536 = vmatprep.subr.mxu1 %v2326_v33  ;;  %v2318_v6 = vld [vmem:[#allocation6 + $0x6b8] sm:$0xff]  ;;  %v2315_v56 = vld [vmem:[#allocation6 + $0x6a0] sm:$0xff]  ;;  %v2312_v33 = vld [vmem:[#allocation6 + $0x688] sm:$0xff] }
 0x1c1   :  { %v5835_v12 = vpop.f32.mrf.mxu0  ;;  %v5837_v53 = vpop.f32.mrf.mxu1  ;;  %4323 = vmatmul.mubr.msk.f32.gmra.mxu1 %vm225_vm1, %v5729_v54  ;;  %2408 = vmatpush2.msra.mxu0 %v2323_v3 }
 0x1c2   :  { %1677 = vmatprep.mubr.f32.mxu1 %v7332_v17  ;;  %2537 = vmatpush2.msra.mxu1 %v2325_v25 }
 0x1c3   :  { %v5842_v5 = vpop.f32.mrf.mxu0  ;;  %v5844_v35 = vpop.f32.mrf.mxu1  ;;  %2409 = vmatprep.subr.mxu0 %v2320_v0  ;;  %2538 = vmatprep.subr.mxu1 %v2322_v49  ;;  %v2317_v0 = vld [vmem:[#allocation6 + $0x6b0] sm:$0xff] }
 0x1c4   :  { %2410 = vmatpush2.msra.mxu0 %v2319_v51  ;;  %2539 = vmatpush2.msra.mxu1 %v2321_v2  ;;  %v2313_v51 = vld [vmem:[#allocation6 + $0x690] sm:$0xff]  ;;  %v2310_v2 = vld [vmem:[#allocation6 + $0x678] sm:$0xff] }
 0x1c5   :  { %v5846_v63 = vpop.f32.mrf.mxu0  ;;  %v5848_v54 = vpop.f32.mrf.mxu1  ;;  %4324 = vmatmul.mubr.msk.f32.gmra.mxu1 %vm225_vm1, %v5748_v55  ;;  %2411 = vmatprep.subr.mxu0 %v2316_v23  ;;  %v2304_v23 = vld [vmem:[#allocation6 + $0x648] sm:$0xff] }
 0x1c6   :  { %7392 = vst [vmem:[#allocation105_spill] sm:$0xff] %v5848_v54  ;;  %1683 = vmatprep.mubr.f32.mxu1 %v7332_v17  ;;  %2540 = vmatprep.subr.mxu1 %v2318_v6  ;;  %v2314_v54 = vld [vmem:[#allocation6 + $0x698] sm:$0xff]  ;;  %v2307_v17 = vld [vmem:[#allocation6 + $0x660] sm:$0xff] }
 0x1c7   :  { %v5853_v3 = vpop.f32.mrf.mxu0  ;;  %v5855_v25 = vpop.f32.mrf.mxu1  ;;  %2412 = vmatpush2.msra.mxu0 %v2315_v56  ;;  %2541 = vmatpush2.msra.mxu1 %v2317_v0  ;;  %v2309_v56 = vld [vmem:[#allocation6 + $0x670] sm:$0xff]  ;;  %v2299_v0 = vld [vmem:[#allocation6 + $0x620] sm:$0xff] }
 0x1c8   :  { %7393 = vst [vmem:[#allocation106_spill] sm:$0xff] %v5853_v3  ;;  %7394 = vst [vmem:[#allocation107_spill] sm:$0xff] %v5855_v25  ;;  %2413 = vmatprep.subr.mxu0 %v2312_v33  ;;  %2542 = vmatprep.subr.mxu1 %v2314_v54  ;;  %v2300_v3 = vld [vmem:[#allocation6 + $0x628] sm:$0xff] }
 0x1c9   :  { %v5857_v55 = vpop.f32.mrf.mxu0  ;;  %v5859_v49 = vpop.f32.mrf.mxu1  ;;  %4325 = vmatmul.mubr.msk.f32.gmra.mxu1 %vm225_vm1, %v5759_v27  ;;  %2414 = vmatpush2.msra.mxu0 %v2311_v18  ;;  %v2305_v18 = vld [vmem:[#allocation6 + $0x650] sm:$0xff] }
 0x1ca   :  { %7395 = vst [vmem:[#allocation108_spill] sm:$0xff] %v5857_v55  ;;  %7396 = vst [vmem:[#allocation109_spill] sm:$0xff] %v5859_v49  ;;  %2415 = vmatprep.subr.mxu0 %v2308_v62  ;;  %v2303_v55 = vld [vmem:[#allocation6 + $0x640] sm:$0xff]  ;;  %2543 = vmatpush2.msra.mxu1 %v2313_v51  ;;  %v2306_v49 = vld [vmem:[#allocation6 + $0x658] sm:$0xff] }
 0x1cb   :  { %v5863_v25 = vpop.f32.mrf.mxu0  ;;  %v5865_v6 = vpop.f32.mrf.mxu1  ;;  %2416 = vmatpush2.msra.mxu0 %v2307_v17  ;;  %2544 = vmatprep.subr.mxu1 %v2310_v2  ;;  %v2301_v17 = vld [vmem:[#allocation6 + $0x630] sm:$0xff]  ;;  %v2295_v51 = vld [vmem:[#allocation6 + $0x600] sm:$0xff] }
 0x1cc   :  { %7397 = vst [vmem:[#allocation110_spill] sm:$0xff] %v5863_v25  ;;  %7398 = vst [vmem:[#allocation111_spill] sm:$0xff] %v5865_v6  ;;  %2417 = vmatprep.subr.mxu0 %v2304_v23  ;;  %2545 = vmatpush2.msra.mxu1 %v2309_v56  ;;  %v2302_v25 = vld [vmem:[#allocation6 + $0x638] sm:$0xff]  ;;  %v2296_v6 = vld [vmem:[#allocation6 + $0x608] sm:$0xff] }
 0x1cd   :  { %v5867_v27 = vpop.f32.mrf.mxu0  ;;  %v5869_v33 = vpop.f32.mrf.mxu1  ;;  %2418 = vmatpush2.msra.mxu0 %v2303_v55  ;;  %2546 = vmatprep.subr.mxu1 %v2306_v49  ;;  %v2297_v55 = vld [vmem:[#allocation6 + $0x610] sm:$0xff]  ;;  %v2165_v49 = vld [vmem:[#allocation6 + $0x1f8] sm:$0xff] }
 0x1ce   :  { %7399 = vst [vmem:[#allocation112_spill] sm:$0xff] %v5867_v27  ;;  %7400 = vst [vmem:[#allocation113_spill] sm:$0xff] %v5869_v33  ;;  %2419 = vmatprep.subr.mxu0 %v2300_v3  ;;  %2547 = vmatpush2.msra.mxu1 %v2305_v18  ;;  %v2298_v27 = vld [vmem:[#allocation6 + $0x618] sm:$0xff]  ;;  %v2163_v3 = vld [vmem:[#allocation6 + $0x1e8] sm:$0xff] }
 0x1cf   :  { %v5871_v54 = vpop.f32.mrf.mxu0  ;;  %v5873_v62 = vpop.f32.mrf.mxu1  ;;  %2420 = vmatpush2.msra.mxu0 %v2299_v0  ;;  %2548 = vmatprep.subr.mxu1 %v2302_v25 }
 0x1d0   :  { %7401 = vst [vmem:[#allocation114_spill] sm:$0xff] %v5873_v62  ;;  %2421 = vmatprep.subr.mxu0 %v2296_v6  ;;  %2549 = vmatpush2.msra.mxu1 %v2301_v17 }
 0x1d1   :  { %v5875_v33 = vpop.f32.mrf.mxu0  ;;  %v5877_v2 = vpop.f32.mrf.mxu1  ;;  %2422 = vmatpush2.msra.mxu0 %v2295_v51  ;;  %2550 = vmatprep.subr.mxu1 %v2298_v27 }
 0x1d2   :  { %7402 = vst [vmem:[#allocation115_spill] sm:$0xff] %v5875_v33  ;;  %7403 = vst [vmem:[#allocation116_spill] sm:$0xff] %v5877_v2  ;;  %2551 = vmatpush2.msra.mxu1 %v2297_v55  ;;  %2617 = vmatprep.subr.mxu0 %v2163_v3 }
 0x1d3   :  { %v5879_v23 = vpop.f32.mrf.mxu0  ;;  %v5881_v56 = vpop.f32.mrf.mxu1  ;;  %2746 = vmatprep.subr.mxu1 %v2165_v49 }
 0x1d4   :  { %7404 = vst [vmem:[#allocation117_spill] sm:$0xff] %v5879_v23  ;;  %7405 = vst [vmem:[#allocation118_spill] sm:$0xff] %v5881_v56 }
 0x1d5   :  { %v5883_v18 = vpop.f32.mrf.mxu0  ;;  %v5885_v0 = vpop.f32.mrf.mxu1 }
 0x1d6   :  { %7406 = vst [vmem:[#allocation119_spill] sm:$0xff] %v5883_v18  ;;  %7407 = vst [vmem:[#allocation120_spill] sm:$0xff] %v5885_v0 }
 0x1d7   :  { %v5887_v2 = vpop.f32.mrf.mxu0  ;;  %v5889_v25 = vpop.f32.mrf.mxu1 }
 0x1d8   :  { %7408 = vst [vmem:[#allocation121_spill] sm:$0xff] %v5887_v2  ;;  %7409 = vst [vmem:[#allocation122_spill] sm:$0xff] %v5889_v25 }
 0x1d9   :  { %v5891_v6 = vpop.f32.mrf.mxu0  ;;  %v5893_v17 = vpop.f32.mrf.mxu1 }
 0x1da   :  { %7410 = vst [vmem:[#allocation123_spill] sm:$0xff] %v5891_v6  ;;  %7411 = vst [vmem:[#allocation124_spill] sm:$0xff] %v5893_v17 }
 0x1db   :  { %v5895_v51 = vpop.f32.mrf.mxu0  ;;  %v5897_v27 = vpop.f32.mrf.mxu1 }
 0x1dc   :  { %7412 = vst [vmem:[#allocation125_spill] sm:$0xff] %v5895_v51  ;;  %7413 = vst [vmem:[#allocation126_spill] sm:$0xff] %v5897_v27 }
 0x1dd   :  { %v5899_v56 = vpop.f32.mrf.mxu0  ;;  %v5901_v55 = vpop.f32.mrf.mxu1 }
 0x1de   :  { %7414 = vst [vmem:[#allocation127_spill] sm:$0xff] %v5899_v56  ;;  %7415 = vst [vmem:[#allocation128_spill] sm:$0xff] %v5901_v55 }
 0x1df   :  { %v5903_v3 = vpop.f32.mrf.mxu0  ;;  %v5905_v0 = vpop.f32.mrf.mxu1 }
 0x1e0   :  { %7416 = vst [vmem:[#allocation129_spill] sm:$0xff] %v5903_v3  ;;  %7417 = vst [vmem:[#allocation130_spill] sm:$0xff] %v5905_v0 }
 0x1e1   :  { %v5907_v49 = vpop.f32.mrf.mxu0  ;;  %v5909_v2 = vpop.f32.mrf.mxu1 }
 0x1e2   :  { %7418 = vst [vmem:[#allocation131_spill] sm:$0xff] %v5907_v49  ;;  %7419 = vst [vmem:[#allocation132_spill] sm:$0xff] %v5909_v2 }
 0x1e3   :  { %v5911_v25 = vpop.f32.mrf.mxu0  ;;  %v5913_v6 = vpop.f32.mrf.mxu1 }
 0x1e4   :  { %7420 = vst [vmem:[#allocation133_spill] sm:$0xff] %v5911_v25  ;;  %7421 = vst [vmem:[#allocation134_spill] sm:$0xff] %v5913_v6 }
 0x1e5   :  { %v5915_v17 = vpop.f32.mrf.mxu0  ;;  %v5917_v51 = vpop.f32.mrf.mxu1 }
 0x1e6   :  { %7422 = vst [vmem:[#allocation135_spill] sm:$0xff] %v5915_v17  ;;  %7423 = vst [vmem:[#allocation136_spill] sm:$0xff] %v5917_v51 }
 0x1e7   :  { %v5919_v27 = vpop.f32.mrf.mxu0  ;;  %v5921_v56 = vpop.f32.mrf.mxu1 }
 0x1e8   :  { %7424 = vst [vmem:[#allocation137_spill] sm:$0xff] %v5919_v27  ;;  %7425 = vst [vmem:[#allocation138_spill] sm:$0xff] %v5921_v56 }
 0x1e9   :  { %v5923_v55 = vpop.f32.mrf.mxu0  ;;  %v5925_v3 = vpop.f32.mrf.mxu1 }
 0x1ea   :  { %7426 = vst [vmem:[#allocation139_spill] sm:$0xff] %v5923_v55  ;;  %7427 = vst [vmem:[#allocation140_spill] sm:$0xff] %v5925_v3 }
 0x1eb   :  { %v5927_v0 = vpop.f32.mrf.mxu0  ;;  %v5929_v49 = vpop.f32.mrf.mxu1 }
 0x1ec   :  { %7428 = vst [vmem:[#allocation141_spill] sm:$0xff] %v5927_v0  ;;  %7429 = vst [vmem:[#allocation142_spill] sm:$0xff] %v5929_v49 }
 0x1ed   :  { %v5931_v2 = vpop.f32.mrf.mxu0  ;;  %v5933_v25 = vpop.f32.mrf.mxu1 }
 0x1ee   :  { %7430 = vst [vmem:[#allocation143_spill] sm:$0xff] %v5931_v2  ;;  %7431 = vst [vmem:[#allocation144_spill] sm:$0xff] %v5933_v25 }
 0x1ef   :  { %v5935_v6 = vpop.f32.mrf.mxu0  ;;  %v5937_v17 = vpop.f32.mrf.mxu1 }
 0x1f0   :  { %7432 = vst [vmem:[#allocation145_spill] sm:$0xff] %v5935_v6  ;;  %7433 = vst [vmem:[#allocation146_spill] sm:$0xff] %v5937_v17  ;;  %v1796_v17 = vlaneseq }
 0x1f1   :  { %v5939_v51 = vpop.f32.mrf.mxu0  ;;  %v5941_v27 = vpop.f32.mrf.mxu1 }
 0x1f2   :  { %7434 = vst [vmem:[#allocation147_spill] sm:$0xff] %v5939_v51  ;;  %7435 = vst [vmem:[#allocation148_spill] sm:$0xff] %v5941_v27 }
 0x1f3   :  { %v5943_v56 = vpop.f32.mrf.mxu0  ;;  %v5945_v55 = vpop.f32.mrf.mxu1 }
 0x1f4   :  { %7436 = vst [vmem:[#allocation149_spill] sm:$0xff] %v5943_v56  ;;  %7437 = vst [vmem:[#allocation150_spill] sm:$0xff] %v5945_v55 }
 0x1f5   :  { %v5947_v3 = vpop.f32.mrf.mxu0  ;;  %v5949_v0 = vpop.f32.mrf.mxu1 }
 0x1f6   :  { %7438 = vst [vmem:[#allocation151_spill] sm:$0xff] %v5947_v3  ;;  %7439 = vst [vmem:[#allocation152_spill] sm:$0xff] %v5949_v0  ;;  %v5967_v3 = vshrl.u32 %v1796_v17, 7 }
 0x1f7   :  { %v5951_v49 = vpop.f32.mrf.mxu0  ;;  %v5953_v2 = vpop.f32.mrf.mxu1 }
 0x1f8   :  { %7440 = vst [vmem:[#allocation153_spill] sm:$0xff] %v5951_v49  ;;  %7441 = vst [vmem:[#allocation154_spill] sm:$0xff] %v5953_v2 }
 0x1f9   :  { %v5955_v25 = vpop.f32.mrf.mxu0  ;;  %v5957_v6 = vpop.f32.mrf.mxu1  ;;  %7448 = vst [vmem:[#allocation161_spill] sm:$0xff] %v5967_v3 }
 0x1fa   :  { %7442 = vst [vmem:[#allocation155_spill] sm:$0xff] %v5955_v25  ;;  %7443 = vst [vmem:[#allocation156_spill] sm:$0xff] %v5957_v6  ;;  %v7298_v6 = vsub.s32 0, %v5967_v3 }
 0x1fb   :  { %v5959_v51 = vpop.f32.mrf.mxu0  ;;  %v5961_v27 = vpop.f32.mrf.mxu1 }
 0x1fc   :  { %7444 = vst [vmem:[#allocation157_spill] sm:$0xff] %v5959_v51  ;;  %7445 = vst [vmem:[#allocation158_spill] sm:$0xff] %v5961_v27  ;;  %v1794_v27 = vld [vmem:[#allocation4] sm:$0xf] }
 0x1fd   :  { %v5963_v56 = vpop.f32.mrf.mxu0  ;;  %v5965_v55 = vpop.f32.mrf.mxu1 }
 0x1fe   :  { %7446 = vst [vmem:[#allocation159_spill] sm:$0xff] %v5963_v56  ;;  %7447 = vst [vmem:[#allocation160_spill] sm:$0xff] %v5965_v55  ;;  %v841_v55 = vadd.f32 %v5705_v60, %v5390_v9 }
 0x1ff   :  { %v5969_v0 = vpop.f32.mrf.mxu0  ;;  %v5971_v49 = vpop.f32.mrf.mxu1 }
 0x200   :  { %7449 = vst [vmem:[#allocation162_spill] sm:$0xff] %v5969_v0  ;;  %7450 = vst [vmem:[#allocation163_spill] sm:$0xff] %v5971_v49  ;;  %v5988_v49 = vrot.slane %v1794_v27, %v7298_v6 }
 0x201   :  { %v5973_v2 = vpop.f32.mrf.mxu0  ;;  %v5975_v25 = vpop.f32.mrf.mxu1 }
 0x202   :  { %7451 = vst [vmem:[#allocation164_spill] sm:$0xff] %v5973_v2  ;;  %7452 = vst [vmem:[#allocation165_spill] sm:$0xff] %v5975_v25 }
 0x203   :  { %v5978_v18 = vpop.f32.mrf.mxu0  ;;  %v5980_v51 = vpop.f32.mrf.mxu1 }
 0x204   :  { %7453 = vst [vmem:[#allocation166_spill] sm:$0xff] %v5978_v18  ;;  %7454 = vst [vmem:[#allocation167_spill] sm:$0xff] %v5980_v51  ;;  %v847_v18 = vadd.f32 %v5724_v45, %v5404_v20 }
 0x205   :  { %v5984_v17 = vpop.f32.mrf.mxu1  ;;  %v1314_v56 = vpop.f32.mrf.mxu0 }
 0x206   :  { %7455 = vst [vmem:[#allocation168_spill] sm:$0xff] %v5984_v17  ;;  %v1690_v0 = vadd.f32 %v1314_v56, %v841_v55  ;;  %v853_v55 = vadd.f32 %v5743_v21, %v5418_v26 }
 0x207   :  { %v5990_v2 = vpop.f32.mrf.mxu1  ;;  %v5992_v25 = vpop.f32.mrf.mxu0 }
 0x208   :  { %7456 = vst [vmem:[#allocation169_spill] sm:$0xff] %v5990_v2  ;;  %7457 = vst [vmem:[#allocation170_spill] sm:$0xff] %v5992_v25  ;;  %v1816_v9 = vadd.f32 %v5988_v49, %v1690_v0  ;;  %v7299_v0 = vsub.s32 1, %v5967_v3 }
 0x209   :  { %v5996_v51 = vpop.f32.mrf.mxu1  ;;  %v1320_v23 = vpop.f32.mrf.mxu0 }
 0x20a   :  { %7458 = vst [vmem:[#allocation171_spill] sm:$0xff] %v5996_v51  ;;  %v1694_v60 = vadd.f32 %v1320_v23, %v847_v18  ;;  %v1920_v33 = vmax.f32 %v1816_v9, 0.0  ;;  %v859_v23 = vadd.f32 %v5767_v11, %v5432_v31  ;;  %v865_v31 = vadd.f32 %v5780_v57, %v5446_v36 }
 0x20b   :  { %v5999_v17 = vpop.f32.mrf.mxu1  ;;  %v6001_v56 = vpop.f32.mrf.mxu0 }
 0x20c   :  { %7459 = vst [vmem:[#allocation172_spill] sm:$0xff] %v6001_v56  ;;  %v1820_v6 = vadd.f32 %v5988_v49, %v1694_v60  ;;  %v7300_v60 = vsub.s32 2, %v5967_v3 }
 0x20d   :  { %v6006_v2 = vpop.f32.mrf.mxu1  ;;  %v1326_v25 = vpop.f32.mrf.mxu0 }
 0x20e   :  { %7460 = vst [vmem:[#allocation173_spill] sm:$0xff] %v6006_v2  ;;  %v1924_v20 = vmax.f32 %v1820_v6, 0.0  ;;  %v1698_v45 = vadd.f32 %v1326_v25, %v853_v55  ;;  %v6045_v36 = vrot.slane %v1794_v27, %v7300_v60  ;;  %v7527_v2 = vld [vmem:[#allocation127_spill] sm:$0xff] }
 0x20f   :  { %v6008_v51 = vpop.f32.mrf.mxu1  ;;  %v6010_v62 = vpop.f32.mrf.mxu0 }
 0x210   :  { %7461 = vst [vmem:[#allocation174_spill] sm:$0xff] %v6008_v51  ;;  %v6014_v18 = vmax.f32 %v1920_v33, %v1924_v20  ;;  %v1824_v9 = vadd.f32 %v5988_v49, %v1698_v45  ;;  %v6031_v33 = vadd.f32 %v5739_v50, %v5414_v24  ;;  %v6035_v20 = vadd.f32 %v5763_v47, %v5428_v29 }
 0x211   :  { %v6017_v26 = vpop.f32.mrf.mxu1  ;;  %v1332_v21 = vpop.f32.mrf.mxu0  ;;  %v6039_v45 = vrot.slane %v1794_v27, %v7299_v0  ;;  %v7466_v24 = vsub.s32 3, %v5967_v3  ;;  %v6053_v29 = vadd.f32 %v5776_v32, %v5442_v34  ;;  %v6057_v47 = vadd.f32 %v5787_v37, %v5456_v39  ;;  %v7497_v3 = vld [vmem:[#allocation52_spill] sm:$0xff] }
 0x212   :  { %7462 = vst [vmem:[#allocation175_spill] sm:$0xff] %v6017_v26  ;;  %v1702_v6 = vadd.f32 %v1332_v21, %v859_v23  ;;  %7464 = vst [vmem:[#allocation177_spill] sm:$0xff] %v6031_v33  ;;  %v1928_v57 = vmax.f32 %v1824_v9, 0.0  ;;  %v871_v0 = vadd.f32 %v5791_v58, %v5460_v41  ;;  %v6063_v9 = vadd.f32 %v5798_v48, %v5470_v44  ;;  %v7510_v33 = vld [vmem:[#allocation120_spill] sm:$0xff] }
 0x213   :  { %v6022_v55 = vpop.f32.mrf.mxu1  ;;  %v6024_v56 = vpop.f32.mrf.mxu0  ;;  %v6049_v50 = vrot.slane %v1794_v27, %v7466_v24  ;;  %v877_v27 = vadd.f32 %v5802_v59, %v5474_v61  ;;  %v6073_v34 = vadd.f32 %v5811_v42, %v5484_v10  ;;  %v883_v39 = vadd.f32 %v5815_v13, %v5488_v1  ;;  %v7472_v59 = vld [vmem:[#allocation33_spill] sm:$0xff]  ;;  %v7474_v13 = vld [vmem:[#allocation42_spill] sm:$0xff]  ;;  %v7487_v24 = vld [vmem:[#allocation111_spill] sm:$0xff] }
 0x214   :  { %7463 = vst [vmem:[#allocation176_spill] sm:$0xff] %v6022_v55  ;;  %v1828_v11 = vadd.f32 %v5988_v49, %v1702_v6  ;;  %v6081_v41 = vadd.f32 %v5822_v30, %v5498_v15  ;;  %v6085_v44 = vadd.f32 %v5824_v19, %v5502_v4  ;;  %v6089_v61 = vadd.f32 %v5826_v52, %v5448_v38  ;;  %v7473_v42 = vld [vmem:[#allocation105_spill] sm:$0xff]  ;;  %v7475_v30 = vld [vmem:[#allocation106_spill] sm:$0xff] }
 0x215   :  { %v6041_v23 = vpop.f32.mrf.mxu1  ;;  %v1338_v21 = vpop.f32.mrf.mxu0  ;;  %v6093_v10 = vadd.f32 %v5831_v28, %v5512_v22  ;;  %v6099_v58 = vadd.f32 %v5833_v8, %v5458_v40  ;;  %v6103_v15 = vadd.f32 %v5835_v12, %v5516_v7  ;;  %v6108_v38 = vadd.f32 %v5837_v53, %v5462_v43  ;;  %v7477_v52 = vld [vmem:[#allocation34_spill] sm:$0xff]  ;;  %v7478_v28 = vld [vmem:[#allocation107_spill] sm:$0xff] }
 0x216   :  { %7465 = vst [vmem:[#allocation178_spill] sm:$0xff] %v6041_v23  ;;  %v1932_v6 = vmax.f32 %v1828_v11, 0.0  ;;  %v1706_v25 = vadd.f32 %v1338_v21, %v865_v31  ;;  %v6112_v22 = vadd.f32 %v5842_v5, %v5526_v14  ;;  %v6116_v48 = vadd.f32 %v5844_v35, %v5472_v46  ;;  %v7481_v5 = vld [vmem:[#allocation35_spill] sm:$0xff]  ;;  %v7482_v35 = vld [vmem:[#allocation109_spill] sm:$0xff]  ;;  %v7484_v21 = vld [vmem:[#allocation110_spill] sm:$0xff] }
 0x217   :  { %v6065_v31 = vpop.f32.mrf.mxu1  ;;  %v6067_v11 = vpop.f32.mrf.mxu0  ;;  %7469 = vst [vmem:[#allocation181_spill] sm:$0xff] %v6099_v58  ;;  %v6120_v40 = vadd.f32 %v5846_v63, %v5530_v16  ;;  %v6128_v43 = vadd.f32 %v7473_v42, %v7472_v59  ;;  %v6132_v14 = vadd.f32 %v7475_v30, %v7474_v13  ;;  %v6136_v46 = vadd.f32 %v7478_v28, %v7477_v52  ;;  %v7479_v63 = vld [vmem:[#allocation44_spill] sm:$0xff]  ;;  %v7498_v58 = vld [vmem:[#allocation115_spill] sm:$0xff] }
 0x218   :  { %7467 = vst [vmem:[#allocation179_spill] sm:$0xff] %v6065_v31  ;;  %v6077_v32 = vmax.f32 %v1928_v57, %v1932_v6  ;;  %v1832_v19 = vadd.f32 %v5988_v49, %v1706_v25  ;;  %7470 = vst [vmem:[#allocation182_spill] sm:$0xff] %v6116_v48  ;;  %v7480_v16 = vld [vmem:[#allocation108_spill] sm:$0xff]  ;;  %v7483_v25 = vld [vmem:[#allocation46_spill] sm:$0xff]  ;;  %v6175_v48 = vadd.f32 %v7498_v58, %v7497_v3 }
 0x219   :  { %v6095_v37 = vpop.f32.mrf.mxu1  ;;  %v1344_v1 = vpop.f32.mrf.mxu0  ;;  %7476 = vst [vmem:[#allocation33_spill] sm:$0xff] %v6132_v14  ;;  %v6141_v53 = vadd.f32 %v7480_v16, %v7479_v63  ;;  %v6149_v57 = vadd.f32 %v7484_v21, %v7483_v25  ;;  %v7486_v6 = vld [vmem:[#allocation36_spill] sm:$0xff]  ;;  %v7491_v16 = vld [vmem:[#allocation37_spill] sm:$0xff]  ;;  %v7493_v25 = vld [vmem:[#allocation50_spill] sm:$0xff] }
 0x21a   :  { %7468 = vst [vmem:[#allocation180_spill] sm:$0xff] %v6095_v37  ;;  %v1710_v4 = vadd.f32 %v1344_v1, %v871_v0  ;;  %v6145_v0 = vadd.f32 %v7482_v35, %v7481_v5  ;;  %v6153_v1 = vadd.f32 %v7487_v24, %v7486_v6  ;;  %v7490_v13 = vld [vmem:[#allocation112_spill] sm:$0xff]  ;;  %v1936_v52 = vmax.f32 %v1832_v19, 0.0  ;;  %v7492_v5 = vld [vmem:[#allocation113_spill] sm:$0xff]  ;;  %v7495_v6 = vld [vmem:[#allocation38_spill] sm:$0xff] }
 0x21b   :  { %v6122_v7 = vpop.f32.mrf.mxu1  ;;  %v6124_v12 = vpop.f32.mrf.mxu0  ;;  %7485 = vst [vmem:[#allocation105_spill] sm:$0xff] %v6149_v57  ;;  %v6163_v35 = vadd.f32 %v7492_v5, %v7491_v16  ;;  %v6167_v21 = vadd.f32 %v5871_v54, %v7493_v25  ;;  %v7496_v24 = vld [vmem:[#allocation114_spill] sm:$0xff]  ;;  %v7503_v16 = vld [vmem:[#allocation117_spill] sm:$0xff]  ;;  %v7505_v5 = vld [vmem:[#allocation40_spill] sm:$0xff] }
 0x21c   :  { %7471 = vst [vmem:[#allocation183_spill] sm:$0xff] %v6122_v7  ;;  %v1836_v8 = vadd.f32 %v5988_v49, %v1710_v4  ;;  %v7489_v4 = vld [vmem:[#allocation48_spill] sm:$0xff]  ;;  %v6171_v60 = vadd.f32 %v7496_v24, %v7495_v6  ;;  %v7506_v25 = vld [vmem:[#allocation118_spill] sm:$0xff]  ;;  %v7508_v58 = vld [vmem:[#allocation119_spill] sm:$0xff] }
 0x21d   :  { %v6155_v59 = vpop.f32.mrf.mxu1  ;;  %v1350_v42 = vpop.f32.mrf.mxu0  ;;  %v6159_v30 = vadd.f32 %v7490_v13, %v7489_v4  ;;  %7494 = vst [vmem:[#allocation106_spill] sm:$0xff] %v6167_v21  ;;  %v7502_v13 = vld [vmem:[#allocation54_spill] sm:$0xff]  ;;  %v6191_v6 = vadd.f32 %v7506_v25, %v7505_v5  ;;  %v7507_v3 = vld [vmem:[#allocation56_spill] sm:$0xff]  ;;  %v7518_v25 = vld [vmem:[#allocation123_spill] sm:$0xff] }
 0x21e   :  { %7488 = vst [vmem:[#allocation42_spill] sm:$0xff] %v6155_v59  ;;  %v1940_v28 = vmax.f32 %v1836_v8, 0.0  ;;  %v1714_v63 = vadd.f32 %v1350_v42, %v877_v27  ;;  %v7500_v27 = vld [vmem:[#allocation39_spill] sm:$0xff]  ;;  %v7501_v8 = vld [vmem:[#allocation116_spill] sm:$0xff]  ;;  %v6187_v54 = vadd.f32 %v7503_v16, %v7502_v13  ;;  %v6197_v59 = vadd.f32 %v7508_v58, %v7507_v3  ;;  %v7515_v16 = vld [vmem:[#allocation122_spill] sm:$0xff] }
 0x21f   :  { %v6177_v4 = vpop.f32.mrf.mxu1  ;;  %v6179_v19 = vpop.f32.mrf.mxu0  ;;  %v6183_v42 = vadd.f32 %v7501_v8, %v7500_v27  ;;  %v7511_v27 = vld [vmem:[#allocation58_spill] sm:$0xff]  ;;  %v7512_v8 = vld [vmem:[#allocation121_spill] sm:$0xff]  ;;  %v7514_v13 = vld [vmem:[#allocation43_spill] sm:$0xff] }
 0x220   :  { %7499 = vst [vmem:[#allocation34_spill] sm:$0xff] %v6177_v4  ;;  %7504 = vst [vmem:[#allocation107_spill] sm:$0xff] %v6187_v54  ;;  %v6193_v24 = vmax.f32 %v1936_v52, %v1940_v28  ;;  %v7509_v4 = vld [vmem:[#allocation41_spill] sm:$0xff]  ;;  %v6205_v37 = vadd.f32 %v7512_v8, %v7511_v27  ;;  %v6209_v31 = vadd.f32 %v7515_v16, %v7514_v13  ;;  %v7517_v28 = vld [vmem:[#allocation60_spill] sm:$0xff] }
 0x221   :  { %v6201_v7 = vadd.f32 %v7510_v33, %v7509_v4  ;;  %v6211_v5 = vpop.f32.mrf.mxu1  ;;  %v1356_v52 = vpop.f32.mrf.mxu0  ;;  %v6215_v23 = vadd.f32 %v7518_v25, %v7517_v28  ;;  %v7519_v3 = vld [vmem:[#allocation45_spill] sm:$0xff]  ;;  %v7520_v58 = vld [vmem:[#allocation124_spill] sm:$0xff]  ;;  %v1840_v33 = vadd.f32 %v5988_v49, %v1714_v63  ;;  %v7521_v27 = vld [vmem:[#allocation62_spill] sm:$0xff] }
 0x222   :  { %7513 = vst [vmem:[#allocation44_spill] sm:$0xff] %v6205_v37  ;;  %7516 = vst [vmem:[#allocation108_spill] sm:$0xff] %v6211_v5  ;;  %v6219_v55 = vadd.f32 %v7520_v58, %v7519_v3  ;;  %v1718_v4 = vadd.f32 %v1356_v52, %v883_v39  ;;  %v7522_v8 = vld [vmem:[#allocation125_spill] sm:$0xff]  ;;  %v7524_v13 = vld [vmem:[#allocation47_spill] sm:$0xff] }
 0x223   :  { %v6224_v26 = vadd.f32 %v7522_v8, %v7521_v27  ;;  %v7525_v16 = vld [vmem:[#allocation126_spill] sm:$0xff]  ;;  %v7526_v5 = vld [vmem:[#allocation64_spill] sm:$0xff]  ;;  %v7528_v28 = vld [vmem:[#allocation49_spill] sm:$0xff]  ;;  %v6238_v3 = vpop.f32.mrf.mxu1  ;;  %v6240_v63 = vpop.f32.mrf.mxu0 }
 0x224   :  { %v6228_v51 = vadd.f32 %v7525_v16, %v7524_v13  ;;  %v6232_v37 = vadd.f32 %v7527_v2, %v7526_v5  ;;  %v7529_v25 = vld [vmem:[#allocation128_spill] sm:$0xff]  ;;  %7531 = vst [vmem:[#allocation46_spill] sm:$0xff] %v6238_v3  ;;  %v7532_v39 = vld [vmem:[#allocation66_spill] sm:$0xff]  ;;  %v7533_v52 = vld [vmem:[#allocation129_spill] sm:$0xff]  ;;  %v1844_v5 = vadd.f32 %v5988_v49, %v1718_v4 }
 0x225   :  { %7523 = vst [vmem:[#allocation35_spill] sm:$0xff] %v6224_v26  ;;  %v6236_v54 = vadd.f32 %v7529_v25, %v7528_v28  ;;  %v6244_v58 = vadd.f32 %v7533_v52, %v7532_v39  ;;  %v7535_v27 = vld [vmem:[#allocation51_spill] sm:$0xff]  ;;  %v7536_v8 = vld [vmem:[#allocation130_spill] sm:$0xff]  ;;  %v7538_v16 = vld [vmem:[#allocation68_spill] sm:$0xff] }
 0x226   :  { %v6248_v13 = vadd.f32 %v7536_v8, %v7535_v27  ;;  %v7539_v26 = vld [vmem:[#allocation131_spill] sm:$0xff]  ;;  %v7541_v28 = vld [vmem:[#allocation53_spill] sm:$0xff]  ;;  %v7542_v25 = vld [vmem:[#allocation132_spill] sm:$0xff]  ;;  %v1948_v4 = vmax.f32 %v1844_v5, 0.0 }
 0x227   :  { %7530 = vst [vmem:[#allocation109_spill] sm:$0xff] %v6236_v54  ;;  %7534 = vst [vmem:[#allocation110_spill] sm:$0xff] %v6244_v58  ;;  %v6252_v2 = vadd.f32 %v7539_v26, %v7538_v16  ;;  %v6257_v21 = vadd.f32 %v7542_v25, %v7541_v28  ;;  %v7544_v3 = vld [vmem:[#allocation70_spill] sm:$0xff]  ;;  %v7545_v57 = vld [vmem:[#allocation133_spill] sm:$0xff]  ;;  %v1362_v26 = vpop.f32.mrf.mxu0  ;;  %v1535_v16 = vpop.f32.mrf.mxu1 }
 0x228   :  { %7537 = vst [vmem:[#allocation36_spill] sm:$0xff] %v6248_v13  ;;  %v6261_v14 = vadd.f32 %v7545_v57, %v7544_v3  ;;  %v7547_v39 = vld [vmem:[#allocation55_spill] sm:$0xff]  ;;  %v7548_v52 = vld [vmem:[#allocation134_spill] sm:$0xff]  ;;  %v7550_v27 = vld [vmem:[#allocation72_spill] sm:$0xff]  ;;  %v1722_v54 = vadd.f32 %v1362_v26, %v6085_v44  ;;  %v1692_v28 = vadd.f32 %v1535_v16, %v6089_v61 }
 0x229   :  { %7540 = vst [vmem:[#allocation111_spill] sm:$0xff] %v6252_v2  ;;  %7543 = vst [vmem:[#allocation48_spill] sm:$0xff] %v6257_v21  ;;  %v6265_v58 = vadd.f32 %v7548_v52, %v7547_v39  ;;  %v7551_v8 = vld [vmem:[#allocation135_spill] sm:$0xff]  ;;  %v1944_v2 = vmax.f32 %v1840_v33, 0.0  ;;  %v7553_v25 = vld [vmem:[#allocation57_spill] sm:$0xff]  ;;  %v6289_v5 = vpop.f32.mrf.mxu0  ;;  %v6291_v44 = vpop.f32.mrf.mxu1 }
 0x22a   :  { %7546 = vst [vmem:[#allocation112_spill] sm:$0xff] %v6261_v14  ;;  %v6269_v13 = vadd.f32 %v7551_v8, %v7550_v27  ;;  %v7554_v21 = vld [vmem:[#allocation136_spill] sm:$0xff]  ;;  %v7556_v3 = vld [vmem:[#allocation74_spill] sm:$0xff]  ;;  %v7557_v14 = vld [vmem:[#allocation137_spill] sm:$0xff] }
 0x22b   :  { %7549 = vst [vmem:[#allocation37_spill] sm:$0xff] %v6265_v58  ;;  %v6275_v57 = vadd.f32 %v7554_v21, %v7553_v25  ;;  %v6279_v39 = vadd.f32 %v7557_v14, %v7556_v3  ;;  %v7559_v52 = vld [vmem:[#allocation59_spill] sm:$0xff]  ;;  %v7560_v58 = vld [vmem:[#allocation138_spill] sm:$0xff]  ;;  %v7562_v8 = vld [vmem:[#allocation76_spill] sm:$0xff] }
 0x22c   :  { %7552 = vst [vmem:[#allocation113_spill] sm:$0xff] %v6269_v13  ;;  %v6283_v27 = vadd.f32 %v7560_v58, %v7559_v52  ;;  %v7563_v13 = vld [vmem:[#allocation139_spill] sm:$0xff]  ;;  %7565 = vst [vmem:[#allocation115_spill] sm:$0xff] %v6291_v44  ;;  %v7566_v61 = vld [vmem:[#allocation61_spill] sm:$0xff]  ;;  %v6305_v52 = vmax.f32 %v1944_v2, %v1948_v4 }
 0x22d   :  { %7555 = vst [vmem:[#allocation50_spill] sm:$0xff] %v6275_v57  ;;  %7558 = vst [vmem:[#allocation38_spill] sm:$0xff] %v6279_v39  ;;  %v6287_v33 = vadd.f32 %v7563_v13, %v7562_v8  ;;  %v7567_v26 = vld [vmem:[#allocation140_spill] sm:$0xff]  ;;  %v7569_v16 = vld [vmem:[#allocation78_spill] sm:$0xff] }
 0x22e   :  { %7561 = vst [vmem:[#allocation114_spill] sm:$0xff] %v6283_v27  ;;  %v6295_v21 = vadd.f32 %v7567_v26, %v7566_v61  ;;  %v7570_v25 = vld [vmem:[#allocation141_spill] sm:$0xff]  ;;  %v7572_v3 = vld [vmem:[#allocation63_spill] sm:$0xff]  ;;  %v7573_v39 = vld [vmem:[#allocation142_spill] sm:$0xff] }
 0x22f   :  { %7564 = vst [vmem:[#allocation52_spill] sm:$0xff] %v6287_v33  ;;  %v6299_v14 = vadd.f32 %v7570_v25, %v7569_v16  ;;  %v6303_v58 = vadd.f32 %v7573_v39, %v7572_v3  ;;  %7575 = vst [vmem:[#allocation117_spill] sm:$0xff] %v6305_v52  ;;  %v7576_v13 = vld [vmem:[#allocation80_spill] sm:$0xff]  ;;  %v7577_v8 = vld [vmem:[#allocation143_spill] sm:$0xff]  ;;  %v1368_v39 = vpop.f32.mrf.mxu0  ;;  %v1541_v3 = vpop.f32.mrf.mxu1 }
 0x230   :  { %7568 = vst [vmem:[#allocation39_spill] sm:$0xff] %v6295_v21  ;;  %v6309_v33 = vadd.f32 %v7577_v8, %v7576_v13  ;;  %v7579_v27 = vld [vmem:[#allocation65_spill] sm:$0xff]  ;;  %v7580_v44 = vld [vmem:[#allocation144_spill] sm:$0xff]  ;;  %v7582_v61 = vld [vmem:[#allocation82_spill] sm:$0xff] }
 0x231   :  { %7571 = vst [vmem:[#allocation116_spill] sm:$0xff] %v6299_v14  ;;  %7574 = vst [vmem:[#allocation54_spill] sm:$0xff] %v6303_v58  ;;  %v6313_v57 = vadd.f32 %v7580_v44, %v7579_v27  ;;  %v7583_v26 = vld [vmem:[#allocation145_spill] sm:$0xff]  ;;  %v7585_v16 = vld [vmem:[#allocation67_spill] sm:$0xff]  ;;  %v1848_v27 = vadd.f32 %v5988_v49, %v1722_v54  ;;  %v1726_v44 = vadd.f32 %v1368_v39, %v6103_v15 }
 0x232   :  { %7578 = vst [vmem:[#allocation40_spill] sm:$0xff] %v6309_v33  ;;  %v6317_v21 = vadd.f32 %v7583_v26, %v7582_v61  ;;  %v7586_v25 = vld [vmem:[#allocation146_spill] sm:$0xff]  ;;  %v7588_v2 = vld [vmem:[#allocation84_spill] sm:$0xff]  ;;  %v7589_v4 = vld [vmem:[#allocation147_spill] sm:$0xff] }
 0x233   :  { %7581 = vst [vmem:[#allocation118_spill] sm:$0xff] %v6313_v57  ;;  %v6321_v14 = vadd.f32 %v7586_v25, %v7585_v16  ;;  %v6325_v58 = vadd.f32 %v7589_v4, %v7588_v2  ;;  %v7591_v13 = vld [vmem:[#allocation69_spill] sm:$0xff]  ;;  %v7592_v8 = vld [vmem:[#allocation148_spill] sm:$0xff]  ;;  %v7594_v61 = vld [vmem:[#allocation86_spill] sm:$0xff]  ;;  %v1818_v57 = vadd.f32 %v6045_v36, %v1692_v28  ;;  %v1696_v2 = vadd.f32 %v1541_v3, %v6108_v38  ;;  %v6343_v4 = vpop.f32.mrf.mxu0 }
 0x234   :  { %7584 = vst [vmem:[#allocation56_spill] sm:$0xff] %v6317_v21  ;;  %v6329_v33 = vadd.f32 %v7592_v8, %v7591_v13  ;;  %v7595_v26 = vld [vmem:[#allocation149_spill] sm:$0xff]  ;;  %v7597_v16 = vld [vmem:[#allocation71_spill] sm:$0xff]  ;;  %v7598_v25 = vld [vmem:[#allocation150_spill] sm:$0xff]  ;;  %v6345_v13 = vpop.f32.mrf.mxu1  ;;  %v1852_v28 = vadd.f32 %v5988_v49, %v1726_v44  ;;  %v1952_v44 = vmax.f32 %v1848_v27, 0.0 }
 0x235   :  { %7587 = vst [vmem:[#allocation119_spill] sm:$0xff] %v6321_v14  ;;  %7590 = vst [vmem:[#allocation41_spill] sm:$0xff] %v6325_v58  ;;  %v6335_v21 = vadd.f32 %v7595_v26, %v7594_v61  ;;  %v6339_v14 = vadd.f32 %v7598_v25, %v7597_v16  ;;  %v7601_v8 = vld [vmem:[#allocation24_spill] sm:$0xff]  ;;  %v7602_v54 = vld [vmem:[#allocation151_spill] sm:$0xff] }
 0x236   :  { %7593 = vst [vmem:[#allocation120_spill] sm:$0xff] %v6329_v33  ;;  %7600 = vst [vmem:[#allocation43_spill] sm:$0xff] %v6345_v13  ;;  %v6349_v33 = vadd.f32 %v7602_v54, %v7601_v8  ;;  %v7604_v15 = vld [vmem:[#allocation73_spill] sm:$0xff]  ;;  %v7605_v39 = vld [vmem:[#allocation152_spill] sm:$0xff]  ;;  %v1956_v52 = vmax.f32 %v1852_v28, 0.0 }
 0x237   :  { %7596 = vst [vmem:[#allocation58_spill] sm:$0xff] %v6335_v21  ;;  %7599 = vst [vmem:[#allocation121_spill] sm:$0xff] %v6339_v14  ;;  %v6353_v61 = vadd.f32 %v7605_v39, %v7604_v15  ;;  %v7607_v26 = vld [vmem:[#allocation26_spill] sm:$0xff]  ;;  %v7608_v21 = vld [vmem:[#allocation153_spill] sm:$0xff]  ;;  %v1822_v15 = vadd.f32 %v6045_v36, %v1696_v2  ;;  %v1374_v39 = vpop.f32.mrf.mxu0 }
 0x238   :  { %7603 = vst [vmem:[#allocation122_spill] sm:$0xff] %v6349_v33  ;;  %v6357_v16 = vadd.f32 %v7608_v21, %v7607_v26  ;;  %v7610_v25 = vld [vmem:[#allocation75_spill] sm:$0xff]  ;;  %v7611_v38 = vld [vmem:[#allocation154_spill] sm:$0xff]  ;;  %v7616_v8 = vld [vmem:[#allocation77_spill] sm:$0xff] }
 0x239   :  { %7606 = vst [vmem:[#allocation60_spill] sm:$0xff] %v6353_v61  ;;  %v6362_v3 = vadd.f32 %v7611_v38, %v7610_v25  ;;  %v7613_v14 = vld [vmem:[#allocation27_spill] sm:$0xff]  ;;  %v7617_v54 = vld [vmem:[#allocation156_spill] sm:$0xff]  ;;  %v1547_v61 = vpop.f32.mrf.mxu1  ;;  %v7620_v26 = vld [vmem:[#allocation158_spill] sm:$0xff]  ;;  %v1730_v25 = vadd.f32 %v1374_v39, %v6120_v40  ;;  %v1926_v38 = vmax.f32 %v1822_v15, 0.0 }
 0x23a   :  { %7609 = vst [vmem:[#allocation123_spill] sm:$0xff] %v6357_v16  ;;  %v7614_v13 = vld [vmem:[#allocation155_spill] sm:$0xff]  ;;  %v6370_v33 = vadd.f32 %v7617_v54, %v7616_v8  ;;  %v1700_v8 = vadd.f32 %v1547_v61, %v6128_v43  ;;  %v6381_v54 = vpop.f32.mrf.mxu0 }
 0x23b   :  { %7612 = vst [vmem:[#allocation45_spill] sm:$0xff] %v6362_v3  ;;  %v6366_v58 = vadd.f32 %v7614_v13, %v7613_v14  ;;  %v7619_v21 = vld [vmem:[#allocation79_spill] sm:$0xff]  ;;  %v1703_v14 = vadd.f32 %v6024_v56, %v6053_v29  ;;  %v1922_v13 = vmax.f32 %v1818_v57, 0.0  ;;  %v1549_v2 = vpop.f32.mrf.mxu1  ;;  %v6395_v56 = vmax.f32 %v1952_v44, %v1956_v52  ;;  %v7630_v44 = vld [vmem:[#allocation85_spill] sm:$0xff] }
 0x23c   :  { %7618 = vst [vmem:[#allocation62_spill] sm:$0xff] %v6370_v33  ;;  %v6375_v16 = vadd.f32 %v7620_v26, %v7619_v21  ;;  %v7621_v33 = vld [vmem:[#allocation29_spill] sm:$0xff]  ;;  %v7625_v26 = vld [vmem:[#allocation160_spill] sm:$0xff]  ;;  %v7626_v28 = vld [vmem:[#allocation83_spill] sm:$0xff]  ;;  %v1699_v29 = vadd.f32 %v6010_v62, %v6035_v20  ;;  %v1856_v57 = vadd.f32 %v5988_v49, %v1730_v25  ;;  %v1701_v61 = vadd.f32 %v1549_v2, %v6136_v46 }
 0x23d   :  { %7615 = vst [vmem:[#allocation124_spill] sm:$0xff] %v6366_v58  ;;  %v7622_v58 = vld [vmem:[#allocation159_spill] sm:$0xff]  ;;  %v7624_v21 = vld [vmem:[#allocation81_spill] sm:$0xff]  ;;  %v2026_v43 = vmax.f32 %v1922_v13, %v1926_v38  ;;  %v1829_v46 = vadd.f32 %v6039_v45, %v1703_v14 }
 0x23e   :  { %v6385_v3 = vadd.f32 %v7622_v58, %v7621_v33  ;;  %v6389_v27 = vadd.f32 %v7625_v26, %v7624_v21  ;;  %v7627_v40 = vld [vmem:[#allocation163_spill] sm:$0xff]  ;;  %v1380_v33 = vpop.f32.mrf.mxu0  ;;  %v1553_v58 = vpop.f32.mrf.mxu1  ;;  %v1826_v26 = vadd.f32 %v6045_v36, %v1700_v8  ;;  %v1960_v14 = vmax.f32 %v1856_v57, 0.0 }
 0x23f   :  { %v6393_v39 = vadd.f32 %v7627_v40, %v7626_v28  ;;  %v7628_v15 = vld [vmem:[#allocation31_spill] sm:$0xff]  ;;  %v1734_v28 = vadd.f32 %v1380_v33, %v6141_v53  ;;  %v1704_v52 = vadd.f32 %v1553_v58, %v6145_v0  ;;  %v7631_v40 = vld [vmem:[#allocation165_spill] sm:$0xff]  ;;  %v6418_v38 = vmax.f32 %v6014_v18, %v2026_v43 }
 0x240   :  { %7623 = vst [vmem:[#allocation125_spill] sm:$0xff] %v6385_v3  ;;  %v7629_v3 = vld [vmem:[#allocation164_spill] sm:$0xff]  ;;  %v6410_v62 = vadd.f32 %v7631_v40, %v7630_v44  ;;  %v7632_v20 = vld [vmem:[#allocation87_spill] sm:$0xff]  ;;  %v1555_v8 = vpop.f32.mrf.mxu1  ;;  %v1827_v53 = vadd.f32 %v6049_v50, %v1701_v61  ;;  %v1825_v58 = vadd.f32 %v6039_v45, %v1699_v29  ;;  %v1711_v18 = vadd.f32 %v6124_v12, %v6063_v9 }
 0x241   :  { %v6403_v21 = vadd.f32 %v7629_v3, %v7628_v15  ;;  %v7633_v25 = vld [vmem:[#allocation167_spill] sm:$0xff]  ;;  %7634 = vst [vmem:[#allocation47_spill] sm:$0xff] %v6418_v38  ;;  %v6420_v3 = vpop.f32.mrf.mxu0  ;;  %v1860_v0 = vadd.f32 %v5988_v49, %v1734_v28  ;;  %v1830_v2 = vadd.f32 %v6045_v36, %v1704_v52  ;;  %v1705_v33 = vadd.f32 %v1555_v8, %v6153_v1  ;;  %v7636_v52 = vld [vmem:[#allocation168_spill] sm:$0xff] }
 0x242   :  { %v6414_v13 = vadd.f32 %v7633_v25, %v7632_v20  ;;  %v1707_v15 = vadd.f32 %v6067_v11, %v6057_v47  ;;  %v1559_v44 = vpop.f32.mrf.mxu1  ;;  %v1930_v40 = vmax.f32 %v1826_v26, 0.0  ;;  %v7635_v25 = vld [vmem:[#allocation88_spill] sm:$0xff]  ;;  %v1933_v1 = vmax.f32 %v1829_v46, 0.0 }
 0x243   :  { %v1386_v43 = vpop.f32.mrf.mxu0  ;;  %v1964_v20 = vmax.f32 %v1860_v0, 0.0  ;;  %v1934_v61 = vmax.f32 %v1830_v2, 0.0  ;;  %v1831_v28 = vadd.f32 %v6049_v50, %v1705_v33  ;;  %v6434_v38 = vadd.f32 %v7636_v52, %v7635_v25 }
 0x244   :  { %v1738_v29 = vadd.f32 %v1386_v43, %v6159_v30  ;;  %v1708_v47 = vadd.f32 %v1559_v44, %v6163_v35  ;;  %v1561_v9 = vpop.f32.mrf.mxu1  ;;  %v1931_v12 = vmax.f32 %v1827_v53, 0.0  ;;  %v1929_v0 = vmax.f32 %v1825_v58, 0.0  ;;  %v7638_v44 = vld [vmem:[#allocation169_spill] sm:$0xff] }
 0x245   :  { %v6438_v11 = vpop.f32.mrf.mxu0  ;;  %v6440_v57 = vmax.f32 %v1960_v14, %v1964_v20  ;;  %v2032_v26 = vmax.f32 %v1930_v40, %v1934_v61  ;;  %v1935_v8 = vmax.f32 %v1831_v28, 0.0  ;;  %v1833_v2 = vadd.f32 %v6039_v45, %v1707_v15  ;;  %v7637_v14 = vld [vmem:[#allocation89_spill] sm:$0xff] }
 0x246   :  { %v1837_v33 = vadd.f32 %v6039_v45, %v1711_v18  ;;  %v1709_v25 = vadd.f32 %v1561_v9, %v6171_v60  ;;  %v1565_v52 = vpop.f32.mrf.mxu1  ;;  %v1864_v43 = vadd.f32 %v5988_v49, %v1738_v29  ;;  %v6452_v40 = vadd.f32 %v7638_v44, %v7637_v14  ;;  %v2161_v14 = vld [vmem:[#allocation6 + $0x1d8] sm:$0xff]  ;;  %v7640_v44 = vld [vmem:[#allocation171_spill] sm:$0xff] }
 0x247   :  { %v1392_v46 = vpop.f32.mrf.mxu0  ;;  %v6446_v30 = vmax.f32 %v6077_v32, %v2032_v26  ;;  %v2033_v35 = vmax.f32 %v1931_v12, %v1935_v8  ;;  %v2031_v58 = vmax.f32 %v1929_v0, %v1933_v1  ;;  %v1719_v15 = vadd.f32 %v6240_v63, %v6081_v41 }
 0x248   :  { %v1742_v53 = vadd.f32 %v1392_v46, %v6175_v48  ;;  %v1834_v60 = vadd.f32 %v6045_v36, %v1708_v47  ;;  %v1567_v20 = vpop.f32.mrf.mxu1  ;;  %v1835_v32 = vadd.f32 %v6049_v50, %v1709_v25  ;;  %v1712_v28 = vadd.f32 %v1565_v52, %v6183_v42  ;;  %v2162_v25 = vld [vmem:[#allocation6 + $0x1e0] sm:$0xff]  ;;  %v2164_v46 = vld [vmem:[#allocation6 + $0x1f0] sm:$0xff] }
 0x249   :  { %v6457_v18 = vpop.f32.mrf.mxu0  ;;  %v1713_v48 = vadd.f32 %v1567_v20, %v6191_v6  ;;  %v1937_v29 = vmax.f32 %v1833_v2, 0.0  ;;  %v1941_v9 = vmax.f32 %v1837_v33, 0.0  ;;  %v1715_v1 = vadd.f32 %v6179_v19, %v6073_v34 }
 0x24a   :  { %v1868_v61 = vadd.f32 %v5988_v49, %v1742_v53  ;;  %v1571_v41 = vpop.f32.mrf.mxu1  ;;  %v6465_v63 = vmax.f32 %v2031_v58, %v2033_v35  ;;  %v1968_v47 = vmax.f32 %v1864_v43, 0.0  ;;  %v1838_v8 = vadd.f32 %v6045_v36, %v1712_v28  ;;  %v2158_v28 = vld [vmem:[#allocation6 + $0x1c0] sm:$0xff] }
 0x24b   :  { %v1398_v12 = vpop.f32.mrf.mxu0  ;;  %v1839_v0 = vadd.f32 %v6049_v50, %v1713_v48  ;;  %v6470_v42 = vadd.f32 %v6039_v45, %v1719_v15  ;;  %v1938_v6 = vmax.f32 %v1834_v60, 0.0  ;;  %v1716_v33 = vadd.f32 %v1571_v41, %v6201_v7  ;;  %v7639_v7 = vld [vmem:[#allocation91_spill] sm:$0xff] }
 0x24c   :  { %v1972_v26 = vmax.f32 %v1868_v61, 0.0  ;;  %v1746_v2 = vadd.f32 %v1398_v12, %v6197_v59  ;;  %2423 = vmatprep.mubr.f32.mxu0 %v6465_v63  ;;  %2552 = vmatprep.mubr.f32.mxu1 %v6465_v63  ;;  %v1573_v19 = vpop.f32.mrf.mxu1  ;;  %v1939_v52 = vmax.f32 %v1835_v32, 0.0  ;;  %v1942_v43 = vmax.f32 %v1838_v8, 0.0  ;;  %v2159_v59 = vld [vmem:[#allocation6 + $0x1c8] sm:$0xff] }
 0x24d   :  { %v6476_v34 = vpop.f32.mrf.mxu0  ;;  %v1943_v53 = vmax.f32 %v1839_v0, 0.0  ;;  %2424 = vmatmul.mubr.f32.vlgmr.msra.gmra.mxu0 %v6446_v30  ;;  %2553 = vmatmul.mubr.f32.vlgmr.msra.gmra.mxu1 %v6446_v30  ;;  %v6484_v58 = vadd.f32 %v7640_v44, %v7639_v7  ;;  %v2037_v15 = vmax.f32 %v1937_v29, %v1941_v9  ;;  %v1841_v60 = vadd.f32 %v6039_v45, %v1715_v1  ;;  %v2155_v8 = vld [vmem:[#allocation6 + $0x1a8] sm:$0xff] }
 0x24e   :  { %v6478_v35 = vmax.f32 %v1968_v47, %v1972_v26  ;;  %v1717_v20 = vadd.f32 %v1573_v19, %v6209_v31  ;;  %v1577_v61 = vpop.f32.mrf.mxu1  ;;  %2618 = vmatpush1.msra.mxu0 %v2162_v25  ;;  %v2038_v48 = vmax.f32 %v1938_v6, %v1942_v43  ;;  %v1872_v41 = vadd.f32 %v5988_v49, %v1746_v2  ;;  %v2160_v26 = vld [vmem:[#allocation6 + $0x1d0] sm:$0xff]  ;;  %v2154_v43 = vld [vmem:[#allocation6 + $0x1a0] sm:$0xff] }
 0x24f   :  { %v1404_v32 = vpop.f32.mrf.mxu0  ;;  %v2039_v12 = vmax.f32 %v1939_v52, %v1943_v53  ;;  %2747 = vmatpush1.msra.mxu1 %v2164_v46  ;;  %v7641_v0 = vld [vmem:[#allocation92_spill] sm:$0xff]  ;;  %v1949_v9 = vmax.f32 %v6470_v42, 0.0  ;;  %v1727_v31 = vadd.f32 %v6343_v4, %v6112_v22  ;;  %v1842_v1 = vadd.f32 %v6045_v36, %v1716_v33  ;;  %2619 = vmatprep.subr.mxu0 %v2159_v59 }
 0x250   :  { %v1750_v47 = vadd.f32 %v1404_v32, %v6215_v23  ;;  %v6492_v29 = vadd.f32 %v5999_v17, %v7641_v0  ;;  %v1579_v6 = vpop.f32.mrf.mxu1  ;;  %2748 = vmatprep.subr.mxu1 %v2161_v14  ;;  %v6501_v23 = vmax.f32 %v6193_v24, %v2038_v48  ;;  %v1720_v19 = vadd.f32 %v1577_v61, %v6219_v55  ;;  %v2157_v24 = vld [vmem:[#allocation6 + $0x1b8] sm:$0xff]  ;;  %v7643_v0 = vld [vmem:[#allocation36_spill] sm:$0xff] }
 0x251   :  { %v6498_v25 = vpop.f32.mrf.mxu0  ;;  %v6503_v2 = vmax.f32 %v2037_v15, %v2039_v12  ;;  %2620 = vmatpush1.msra.mxu0 %v2158_v28  ;;  %v1945_v42 = vmax.f32 %v1841_v60, 0.0  ;;  %v1723_v22 = vadd.f32 %v6289_v5, %v6093_v10  ;;  %v1843_v4 = vadd.f32 %v6049_v50, %v1717_v20  ;;  %2749 = vmatpush1.msra.mxu1 %v2160_v26  ;;  %v2156_v10 = vld [vmem:[#allocation6 + $0x1b0] sm:$0xff]  ;;  %v2151_v5 = vld [vmem:[#allocation6 + $0x188] sm:$0xff]  ;;  %v2153_v20 = vld [vmem:[#allocation6 + $0x198] sm:$0xff] }
 0x252   :  { %v1876_v17 = vadd.f32 %v5988_v49, %v1750_v47  ;;  %v1721_v33 = vadd.f32 %v1579_v6, %v6228_v51  ;;  %v1583_v52 = vpop.f32.mrf.mxu1  ;;  %2621 = vmatprep.subr.mxu0 %v2155_v8  ;;  %v1976_v53 = vmax.f32 %v1872_v41, 0.0  ;;  %v1846_v14 = vadd.f32 %v6045_v36, %v1720_v19  ;;  %v7642_v48 = vld [vmem:[#allocation109_spill] sm:$0xff]  ;;  %2750 = vmatprep.subr.mxu1 %v2157_v24 }
 0x253   :  { %v1410_v46 = vpop.f32.mrf.mxu0  ;;  %2429 = vmatprep.mubr.f32.mxu0 %v6503_v2  ;;  %2558 = vmatprep.mubr.f32.mxu1 %v6503_v2  ;;  %v2043_v7 = vmax.f32 %v1945_v42, %v1949_v9  ;;  %v1853_v51 = vadd.f32 %v6039_v45, %v1727_v31  ;;  %v1946_v32 = vmax.f32 %v1842_v1, 0.0  ;;  %v1724_v12 = vadd.f32 %v1583_v52, %v7642_v48  ;;  %v2152_v41 = vld [vmem:[#allocation6 + $0x190] sm:$0xff]  ;;  %v7644_v42 = vld [vmem:[#allocation111_spill] sm:$0xff] }
 0x254   :  { %v1980_v59 = vmax.f32 %v1876_v17, 0.0  ;;  %v1754_v55 = vadd.f32 %v1410_v46, %v6232_v37  ;;  %v1847_v44 = vadd.f32 %v6049_v50, %v1721_v33  ;;  %v1585_v60 = vpop.f32.mrf.mxu1  ;;  %2430 = vmatmul.mubr.f32.gmra.mxu0 %v6501_v23  ;;  %2559 = vmatmul.mubr.f32.gmra.mxu1 %v6501_v23  ;;  %v2150_v37 = vld [vmem:[#allocation6 + $0x180] sm:$0xff]  ;;  %v1950_v28 = vmax.f32 %v1846_v14, 0.0  ;;  %v2147_v17 = vld [vmem:[#allocation6 + $0x168] sm:$0xff]  ;;  %v2149_v46 = vld [vmem:[#allocation6 + $0x178] sm:$0xff] }
 0x255   :  { %v6517_v15 = vpop.f32.mrf.mxu0  ;;  %2622 = vmatpush1.msra.mxu0 %v2154_v43  ;;  %v1849_v47 = vadd.f32 %v6039_v45, %v1723_v22  ;;  %v1947_v26 = vmax.f32 %v1843_v4, 0.0  ;;  %v1725_v9 = vadd.f32 %v1585_v60, %v7643_v0  ;;  %2751 = vmatpush1.msra.mxu1 %v2156_v10  ;;  %v2146_v52 = vld [vmem:[#allocation6 + $0x160] sm:$0xff]  ;;  %v1957_v24 = vmax.f32 %v1853_v51, 0.0  ;;  %v7645_v22 = vld [vmem:[#allocation33_spill] sm:$0xff] }
 0x256   :  { %v6521_v61 = vmax.f32 %v1976_v53, %v1980_v59  ;;  %v1951_v8 = vmax.f32 %v1847_v44, 0.0  ;;  %v1589_v6 = vpop.f32.mrf.mxu1  ;;  %2623 = vmatprep.subr.mxu0 %v2151_v5  ;;  %v2044_v1 = vmax.f32 %v1946_v32, %v1950_v28  ;;  %v1880_v19 = vadd.f32 %v5988_v49, %v1754_v55  ;;  %2752 = vmatprep.subr.mxu1 %v2153_v20  ;;  %v7646_v43 = vld [vmem:[#allocation105_spill] sm:$0xff]  ;;  %v2143_v55 = vld [vmem:[#allocation6 + $0x148] sm:$0xff] }
 0x257   :  { %v1416_v31 = vpop.f32.mrf.mxu0  ;;  %2624 = vmatpush1.msra.mxu0 %v2150_v37  ;;  %v1731_v4 = vadd.f32 %v6381_v54, %v7645_v22  ;;  %v1735_v53 = vadd.f32 %v6420_v3, %v7646_v43  ;;  %2753 = vmatpush1.msra.mxu1 %v2152_v41  ;;  %v2148_v5 = vld [vmem:[#allocation6 + $0x170] sm:$0xff]  ;;  %v1850_v20 = vadd.f32 %v6045_v36, %v1724_v12  ;;  %v1953_v54 = vmax.f32 %v1849_v47, 0.0  ;;  %v2142_v47 = vld [vmem:[#allocation6 + $0x140] sm:$0xff] }
 0x258   :  { %v1758_v33 = vadd.f32 %v1416_v31, %v7644_v42  ;;  %v2045_v59 = vmax.f32 %v1947_v26, %v1951_v8  ;;  %v1591_v10 = vpop.f32.mrf.mxu1  ;;  %v7647_v44 = vld [vmem:[#allocation117_spill] sm:$0xff]  ;;  %v7648_v37 = vld [vmem:[#allocation48_spill] sm:$0xff]  ;;  %2625 = vmatprep.subr.mxu0 %v2147_v17  ;;  %v1851_v3 = vadd.f32 %v6049_v50, %v1725_v9  ;;  %2754 = vmatprep.subr.mxu1 %v2149_v46  ;;  %v1984_v0 = vmax.f32 %v1880_v19, 0.0 }
 0x259   :  { %v6532_v14 = vpop.f32.mrf.mxu0  ;;  %v6535_v60 = vmax.f32 %v7647_v44, %v2044_v1  ;;  %v1728_v32 = vadd.f32 %v1589_v6, %v7648_v37  ;;  %v7649_v48 = vld [vmem:[#allocation37_spill] sm:$0xff]  ;;  %2626 = vmatpush1.msra.mxu0 %v2146_v52  ;;  %2755 = vmatpush1.msra.mxu1 %v2148_v5  ;;  %v6547_v17 = vadd.f32 %v6039_v45, %v1735_v53  ;;  %v2139_v52 = vld [vmem:[#allocation6 + $0x128] sm:$0xff]  ;;  %v1954_v22 = vmax.f32 %v1850_v20, 0.0  ;;  %v2138_v5 = vld [vmem:[#allocation6 + $0x120] sm:$0xff] }
 0x25a   :  { %v1884_v51 = vadd.f32 %v5988_v49, %v1758_v33  ;;  %v6540_v28 = vmax.f32 %v2043_v7, %v2045_v59  ;;  %v1729_v26 = vadd.f32 %v1591_v10, %v7649_v48  ;;  %v1595_v8 = vpop.f32.mrf.mxu1  ;;  %v7650_v1 = vld [vmem:[#allocation113_spill] sm:$0xff]  ;;  %2627 = vmatprep.subr.mxu0 %v2143_v55  ;;  %v2049_v7 = vmax.f32 %v1953_v54, %v1957_v24  ;;  %v7651_v10 = vld [vmem:[#allocation50_spill] sm:$0xff] }
 0x25b   :  { %v1422_v41 = vpop.f32.mrf.mxu0  ;;  %v1854_v12 = vadd.f32 %v6045_v36, %v1728_v32  ;;  %v2145_v6 = vld [vmem:[#allocation6 + $0x158] sm:$0xff]  ;;  %v2144_v46 = vld [vmem:[#allocation6 + $0x150] sm:$0xff]  ;;  %v1732_v24 = vadd.f32 %v1595_v8, %v7651_v10  ;;  %v1857_v55 = vadd.f32 %v6039_v45, %v1731_v4  ;;  %v1955_v44 = vmax.f32 %v1851_v3, 0.0  ;;  %2628 = vmatpush1.msra.mxu0 %v2142_v47  ;;  %v7657_v10 = vld [vmem:[#allocation39_spill] sm:$0xff] }
 0x25c   :  { %v1988_v31 = vmax.f32 %v1884_v51, 0.0  ;;  %v1762_v42 = vadd.f32 %v1422_v41, %v7650_v1  ;;  %v1855_v9 = vadd.f32 %v6049_v50, %v1729_v26  ;;  %2435 = vmatprep.mubr.f32.mxu0 %v6540_v28  ;;  %2564 = vmatprep.mubr.f32.mxu1 %v6540_v28  ;;  %v1597_v33 = vpop.f32.mrf.mxu1  ;;  %v2141_v53 = vld [vmem:[#allocation6 + $0x138] sm:$0xff]  ;;  %v2140_v20 = vld [vmem:[#allocation6 + $0x130] sm:$0xff]  ;;  %v1965_v4 = vmax.f32 %v6547_v17, 0.0 }
 0x25d   :  { %v6552_v19 = vpop.f32.mrf.mxu0  ;;  %v1958_v59 = vmax.f32 %v1854_v12, 0.0  ;;  %2436 = vmatmul.mubr.f32.gmra.mxu0 %v6535_v60  ;;  %2565 = vmatmul.mubr.f32.gmra.mxu1 %v6535_v60  ;;  %v7652_v37 = vld [vmem:[#allocation114_spill] sm:$0xff]  ;;  %v7653_v8 = vld [vmem:[#allocation52_spill] sm:$0xff] }
 0x25e   :  { %v6554_v43 = vmax.f32 %v1984_v0, %v1988_v31  ;;  %v1959_v51 = vmax.f32 %v1855_v9, 0.0  ;;  %v1733_v32 = vadd.f32 %v1597_v33, %v7652_v37  ;;  %v1601_v48 = vpop.f32.mrf.mxu1  ;;  %2756 = vmatprep.subr.mxu1 %v2145_v6  ;;  %v1888_v41 = vadd.f32 %v5988_v49, %v1762_v42  ;;  %2629 = vmatprep.subr.mxu0 %v2139_v52  ;;  %v2135_v31 = vld [vmem:[#allocation6 + $0x108] sm:$0xff]  ;;  %v2137_v12 = vld [vmem:[#allocation6 + $0x118] sm:$0xff]  ;;  %v2134_v42 = vld [vmem:[#allocation6 + $0x100] sm:$0xff] }
 0x25f   :  { %v1428_v54 = vpop.f32.mrf.mxu0  ;;  %v2050_v26 = vmax.f32 %v1954_v22, %v1958_v59  ;;  %2757 = vmatpush1.msra.mxu1 %v2144_v46  ;;  %v7654_v3 = vld [vmem:[#allocation106_spill] sm:$0xff]  ;;  %v7655_v9 = vld [vmem:[#allocation107_spill] sm:$0xff]  ;;  %2630 = vmatpush1.msra.mxu0 %v2138_v5  ;;  %v2136_v59 = vld [vmem:[#allocation6 + $0x110] sm:$0xff]  ;;  %v1858_v52 = vadd.f32 %v6045_v36, %v1732_v24  ;;  %v1961_v37 = vmax.f32 %v1857_v55, 0.0 }
 0x260   :  { %v1766_v0 = vadd.f32 %v1428_v54, %v7653_v8  ;;  %v1739_v1 = vadd.f32 %v6438_v11, %v7654_v3  ;;  %v1743_v33 = vadd.f32 %v6457_v18, %v7655_v9  ;;  %v2051_v6 = vmax.f32 %v1955_v44, %v1959_v51  ;;  %v1603_v22 = vpop.f32.mrf.mxu1  ;;  %2758 = vmatprep.subr.mxu1 %v2141_v53  ;;  %v7658_v51 = vld [vmem:[#allocation54_spill] sm:$0xff]  ;;  %v7659_v8 = vld [vmem:[#allocation40_spill] sm:$0xff] }
 0x261   :  { %v6568_v47 = vpop.f32.mrf.mxu0  ;;  %v6571_v46 = vmax.f32 %v6395_v56, %v2050_v26  ;;  %v1736_v11 = vadd.f32 %v1601_v48, %v7657_v10  ;;  %2759 = vmatpush1.msra.mxu1 %v2140_v20  ;;  %v1859_v44 = vadd.f32 %v6049_v50, %v1733_v32  ;;  %v1737_v53 = vadd.f32 %v1603_v22, %v7658_v51  ;;  %v2131_v48 = vld [vmem:[#allocation6 + $0xe8] sm:$0xff]  ;;  %v2133_v55 = vld [vmem:[#allocation6 + $0xf8] sm:$0xff]  ;;  %v2132_v3 = vld [vmem:[#allocation6 + $0xf0] sm:$0xff] }
 0x262   :  { %v1892_v17 = vadd.f32 %v5988_v49, %v1766_v0  ;;  %v6576_v18 = vmax.f32 %v2049_v7, %v2051_v6  ;;  %v1607_v54 = vpop.f32.mrf.mxu1  ;;  %2631 = vmatprep.subr.mxu0 %v2135_v31  ;;  %2760 = vmatprep.subr.mxu1 %v2137_v12  ;;  %v1992_v56 = vmax.f32 %v1888_v41, 0.0  ;;  %v2055_v7 = vmax.f32 %v1961_v37, %v1965_v4  ;;  %v2130_v12 = vld [vmem:[#allocation6 + $0xe0] sm:$0xff] }
 0x263   :  { %7656 = vst [vmem:[#allocation126_spill] sm:$0xff] %v6571_v46  ;;  %v1434_v5 = vpop.f32.mrf.mxu0  ;;  %v1862_v24 = vadd.f32 %v6045_v36, %v1736_v11  ;;  %2632 = vmatpush1.msra.mxu0 %v2134_v42  ;;  %2761 = vmatpush1.msra.mxu1 %v2136_v59  ;;  %v6583_v20 = vadd.f32 %v6039_v45, %v1743_v33  ;;  %v1962_v9 = vmax.f32 %v1858_v52, 0.0  ;;  %v7660_v42 = vld [vmem:[#allocation118_spill] sm:$0xff]  ;;  %v2127_v33 = vld [vmem:[#allocation6 + $0xc8] sm:$0xff]  ;;  %v1963_v10 = vmax.f32 %v1859_v44, 0.0 }
 0x264   :  { %v1996_v26 = vmax.f32 %v1892_v17, 0.0  ;;  %v1770_v0 = vadd.f32 %v1434_v5, %v7659_v8  ;;  %v1863_v32 = vadd.f32 %v6049_v50, %v1737_v53  ;;  %2441 = vmatprep.mubr.f32.mxu0 %v6576_v18  ;;  %2570 = vmatprep.mubr.f32.mxu1 %v6576_v18  ;;  %v1609_v31 = vpop.f32.mrf.mxu1  ;;  %v1740_v4 = vadd.f32 %v1607_v54, %v7660_v42  ;;  %v2129_v59 = vld [vmem:[#allocation6 + $0xd8] sm:$0xff]  ;;  %v7661_v37 = vld [vmem:[#allocation119_spill] sm:$0xff]  ;;  %v2128_v8 = vld [vmem:[#allocation6 + $0xd0] sm:$0xff] }
 0x265   :  { %v6588_v41 = vpop.f32.mrf.mxu0  ;;  %v1966_v22 = vmax.f32 %v1862_v24, 0.0  ;;  %2442 = vmatmul.mubr.f32.gmra.mxu0 %v6571_v46  ;;  %2571 = vmatmul.mubr.f32.gmra.mxu1 %v6571_v46  ;;  %v1865_v17 = vadd.f32 %v6039_v45, %v1739_v1  ;;  %v1741_v51 = vadd.f32 %v1609_v31, %v7661_v37  ;;  %v2126_v52 = vld [vmem:[#allocation6 + $0xc0] sm:$0xff]  ;;  %v2123_v42 = vld [vmem:[#allocation6 + $0xa8] sm:$0xff]  ;;  %v1973_v1 = vmax.f32 %v6583_v20, 0.0 }
 0x266   :  { %v6590_v6 = vmax.f32 %v1992_v56, %v1996_v26  ;;  %v1967_v11 = vmax.f32 %v1863_v32, 0.0  ;;  %v1613_v5 = vpop.f32.mrf.mxu1  ;;  %2633 = vmatprep.subr.mxu0 %v2131_v48  ;;  %2762 = vmatprep.subr.mxu1 %v2133_v55  ;;  %v1896_v54 = vadd.f32 %v5988_v49, %v1770_v0  ;;  %v7662_v26 = vld [vmem:[#allocation41_spill] sm:$0xff]  ;;  %v7663_v44 = vld [vmem:[#allocation44_spill] sm:$0xff]  ;;  %v7664_v31 = vld [vmem:[#allocation35_spill] sm:$0xff] }
 0x267   :  { %v1440_v53 = vpop.f32.mrf.mxu0  ;;  %v2056_v56 = vmax.f32 %v1962_v9, %v1966_v22  ;;  %2634 = vmatpush1.msra.mxu0 %v2130_v12  ;;  %2763 = vmatpush1.msra.mxu1 %v2132_v3  ;;  %v1747_v32 = vadd.f32 %v6476_v34, %v7663_v44  ;;  %v1751_v37 = vadd.f32 %v6498_v25, %v7664_v31  ;;  %v2125_v0 = vld [vmem:[#allocation6 + $0xb8] sm:$0xff]  ;;  %v2122_v22 = vld [vmem:[#allocation6 + $0xa0] sm:$0xff] }
 0x268   :  { %v1774_v24 = vadd.f32 %v1440_v53, %v7662_v26  ;;  %v2057_v48 = vmax.f32 %v1963_v10, %v1967_v11  ;;  %v1615_v9 = vpop.f32.mrf.mxu1  ;;  %2635 = vmatprep.subr.mxu0 %v2127_v33  ;;  %2764 = vmatprep.subr.mxu1 %v2129_v59  ;;  %v1866_v3 = vadd.f32 %v6045_v36, %v1740_v4  ;;  %v7666_v53 = vld [vmem:[#allocation120_spill] sm:$0xff]  ;;  %v1969_v26 = vmax.f32 %v1865_v17, 0.0  ;;  %v7668_v11 = vld [vmem:[#allocation121_spill] sm:$0xff]  ;;  %v7669_v31 = vld [vmem:[#allocation122_spill] sm:$0xff] }
 0x269   :  { %v6604_v55 = vpop.f32.mrf.mxu0  ;;  %v6607_v12 = vmax.f32 %v6440_v57, %v2056_v56  ;;  %v1744_v34 = vadd.f32 %v1613_v5, %v7666_v53  ;;  %2636 = vmatpush1.msra.mxu0 %v2126_v52  ;;  %v1867_v10 = vadd.f32 %v6049_v50, %v1741_v51  ;;  %v1745_v33 = vadd.f32 %v1615_v9, %v7668_v11  ;;  %v2124_v5 = vld [vmem:[#allocation6 + $0xb0] sm:$0xff]  ;;  %v2119_v17 = vld [vmem:[#allocation6 + $0x88] sm:$0xff] }
 0x26a   :  { %v1900_v20 = vadd.f32 %v5988_v49, %v1774_v24  ;;  %v6612_v25 = vmax.f32 %v2055_v7, %v2057_v48  ;;  %v1619_v44 = vpop.f32.mrf.mxu1  ;;  %2765 = vmatpush1.msra.mxu1 %v2128_v8  ;;  %2637 = vmatprep.subr.mxu0 %v2123_v42  ;;  %v2000_v57 = vmax.f32 %v1896_v54, 0.0  ;;  %v2061_v7 = vmax.f32 %v1969_v26, %v1973_v1  ;;  %v2121_v42 = vld [vmem:[#allocation6 + $0x98] sm:$0xff]  ;;  %v2118_v48 = vld [vmem:[#allocation6 + $0x80] sm:$0xff]  ;;  %v2115_v53 = vld [vmem:[#allocation6 + $0x68] sm:$0xff] }
 0x26b   :  { %7665 = vst [vmem:[#allocation64_spill] sm:$0xff] %v6607_v12  ;;  %v1446_v59 = vpop.f32.mrf.mxu0  ;;  %v1870_v4 = vadd.f32 %v6045_v36, %v1744_v34  ;;  %2766 = vmatprep.subr.mxu1 %v2125_v0  ;;  %2638 = vmatpush1.msra.mxu0 %v2122_v22  ;;  %v6619_v52 = vadd.f32 %v6039_v45, %v1747_v32  ;;  %v1970_v9 = vmax.f32 %v1866_v3, 0.0  ;;  %v2120_v32 = vld [vmem:[#allocation6 + $0x90] sm:$0xff]  ;;  %v1971_v26 = vmax.f32 %v1867_v10, 0.0 }
 0x26c   :  { %7667 = vst [vmem:[#allocation127_spill] sm:$0xff] %v6612_v25  ;;  %v2004_v56 = vmax.f32 %v1900_v20, 0.0  ;;  %v1778_v24 = vadd.f32 %v1446_v59, %v7669_v31  ;;  %v1871_v51 = vadd.f32 %v6049_v50, %v1745_v33  ;;  %2447 = vmatprep.mubr.f32.mxu0 %v6612_v25  ;;  %2576 = vmatprep.mubr.f32.mxu1 %v6612_v25  ;;  %v1621_v8 = vpop.f32.mrf.mxu1  ;;  %v7670_v20 = vld [vmem:[#allocation60_spill] sm:$0xff]  ;;  %v7671_v33 = vld [vmem:[#allocation45_spill] sm:$0xff] }
 0x26d   :  { %v6624_v54 = vpop.f32.mrf.mxu0  ;;  %v1974_v22 = vmax.f32 %v1870_v4, 0.0  ;;  %v1748_v1 = vadd.f32 %v1619_v44, %v7670_v20  ;;  %2448 = vmatmul.mubr.f32.gmra.mxu0 %v6607_v12  ;;  %2577 = vmatmul.mubr.f32.gmra.mxu1 %v6607_v12  ;;  %v6632_v34 = vadd.f32 %v6039_v45, %v1751_v37  ;;  %v1749_v59 = vadd.f32 %v1621_v8, %v7671_v33  ;;  %v7672_v4 = vld [vmem:[#allocation124_spill] sm:$0xff]  ;;  %v2114_v12 = vld [vmem:[#allocation6 + $0x60] sm:$0xff] }
 0x26e   :  { %v6626_v0 = vmax.f32 %v2000_v57, %v2004_v56  ;;  %v1975_v11 = vmax.f32 %v1871_v51, 0.0  ;;  %v1625_v3 = vpop.f32.mrf.mxu1  ;;  %2767 = vmatpush1.msra.mxu1 %v2124_v5  ;;  %2639 = vmatprep.subr.mxu0 %v2119_v17  ;;  %v2117_v57 = vld [vmem:[#allocation6 + $0x78] sm:$0xff]  ;;  %v1904_v44 = vadd.f32 %v5988_v49, %v1778_v24  ;;  %v2116_v25 = vld [vmem:[#allocation6 + $0x70] sm:$0xff]  ;;  %v2111_v17 = vld [vmem:[#allocation6 + $0x48] sm:$0xff] }
 0x26f   :  { %v1452_v31 = vpop.f32.mrf.mxu0  ;;  %v2062_v56 = vmax.f32 %v1970_v9, %v1974_v22  ;;  %2768 = vmatprep.subr.mxu1 %v2121_v42  ;;  %2640 = vmatpush1.msra.mxu0 %v2118_v48  ;;  %v7673_v37 = vld [vmem:[#allocation110_spill] sm:$0xff]  ;;  %v7674_v51 = vld [vmem:[#allocation112_spill] sm:$0xff]  ;;  %v1874_v42 = vadd.f32 %v6045_v36, %v1748_v1  ;;  %v7676_v1 = vld [vmem:[#allocation125_spill] sm:$0xff] }
 0x270   :  { %v1782_v20 = vadd.f32 %v1452_v31, %v7672_v4  ;;  %v1755_v10 = vadd.f32 %v6517_v15, %v7673_v37  ;;  %v1759_v8 = vadd.f32 %v6532_v14, %v7674_v51  ;;  %v2063_v33 = vmax.f32 %v1971_v26, %v1975_v11  ;;  %v1627_v5 = vpop.f32.mrf.mxu1  ;;  %2769 = vmatpush1.msra.mxu1 %v2120_v32  ;;  %v2113_v24 = vld [vmem:[#allocation6 + $0x58] sm:$0xff] }
 0x271   :  { %v6641_v46 = vpop.f32.mrf.mxu0  ;;  %2641 = vmatprep.subr.mxu0 %v2115_v53  ;;  %v6644_v9 = vmax.f32 %v6478_v35, %v2062_v56  ;;  %v7675_v22 = vld [vmem:[#allocation62_spill] sm:$0xff]  ;;  %2770 = vmatprep.subr.mxu1 %v2117_v57  ;;  %v1875_v14 = vadd.f32 %v6049_v50, %v1749_v59  ;;  %v1753_v26 = vadd.f32 %v1627_v5, %v6375_v16  ;;  %v2008_v11 = vmax.f32 %v1904_v44, 0.0  ;;  %v2112_v57 = vld [vmem:[#allocation6 + $0x50] sm:$0xff] }
 0x272   :  { %v1908_v48 = vadd.f32 %v5988_v49, %v1782_v20  ;;  %v1752_v15 = vadd.f32 %v1625_v3, %v7675_v22  ;;  %v6649_v31 = vmax.f32 %v2061_v7, %v2063_v33  ;;  %v1631_v53 = vpop.f32.mrf.mxu1  ;;  %2642 = vmatpush1.msra.mxu0 %v2114_v12  ;;  %2771 = vmatpush1.msra.mxu1 %v2116_v25  ;;  %v2110_v3 = vld [vmem:[#allocation6 + $0x40] sm:$0xff]  ;;  %v1977_v7 = vmax.f32 %v6619_v52, 0.0  ;;  %v2107_v20 = vld [vmem:[#allocation6 + $0x28] sm:$0xff]  ;;  %v2109_v37 = vld [vmem:[#allocation6 + $0x38] sm:$0xff] }
 0x273   :  { %v1458_v32 = vpop.f32.mrf.mxu0  ;;  %2643 = vmatprep.subr.mxu0 %v2111_v17  ;;  %2772 = vmatprep.subr.mxu1 %v2113_v24  ;;  %v1981_v59 = vmax.f32 %v6632_v34, 0.0  ;;  %v6658_v16 = vadd.f32 %v6039_v45, %v1759_v8  ;;  %v1879_v12 = vadd.f32 %v6049_v50, %v1753_v26  ;;  %v1978_v51 = vmax.f32 %v1874_v42, 0.0  ;;  %v2106_v8 = vld [vmem:[#allocation6 + $0x20] sm:$0xff]  ;;  %v2108_v5 = vld [vmem:[#allocation6 + $0x30] sm:$0xff]  ;;  %v2103_v42 = vld [vmem:[#allocation6 + $0x8] sm:$0xff] }
 0x274   :  { %v2012_v35 = vmax.f32 %v1908_v48, 0.0  ;;  %v1878_v56 = vadd.f32 %v6045_v36, %v1752_v15  ;;  %v1786_v4 = vadd.f32 %v1458_v32, %v7676_v1  ;;  %2453 = vmatprep.mubr.f32.mxu0 %v6649_v31  ;;  %2582 = vmatprep.mubr.f32.mxu1 %v6649_v31  ;;  %v1633_v44 = vpop.f32.mrf.mxu1  ;;  %v1756_v34 = vadd.f32 %v1631_v53, %v6389_v27 }
 0x275   :  { %v6663_v25 = vpop.f32.mrf.mxu0  ;;  %2454 = vmatmul.mubr.f32.gmra.mxu0 %v6644_v9  ;;  %2583 = vmatmul.mubr.f32.gmra.mxu1 %v6644_v9  ;;  %v1881_v17 = vadd.f32 %v6039_v45, %v1755_v10  ;;  %v1979_v24 = vmax.f32 %v1875_v14, 0.0  ;;  %v1983_v48 = vmax.f32 %v1879_v12, 0.0  ;;  %v1757_v22 = vadd.f32 %v1633_v44, %v6393_v39  ;;  %v7677_v14 = vld [vmem:[#allocation116_spill] sm:$0xff] }
 0x276   :  { %v6665_v33 = vmax.f32 %v2008_v11, %v2012_v35  ;;  %v1982_v52 = vmax.f32 %v1878_v56, 0.0  ;;  %v1637_v26 = vpop.f32.mrf.mxu1  ;;  %2644 = vmatpush1.msra.mxu0 %v2110_v3  ;;  %2773 = vmatpush1.msra.mxu1 %v2112_v57  ;;  %v1912_v27 = vadd.f32 %v5988_v49, %v1786_v4  ;;  %v2105_v11 = vld [vmem:[#allocation6 + $0x18] sm:$0xff]  ;;  %v2102_v35 = vld [vmem:[#allocation6] sm:$0xff]  ;;  %v2067_v56 = vmax.f32 %v1977_v7, %v1981_v59  ;;  %v2104_v3 = vld [vmem:[#allocation6 + $0x10] sm:$0xff] }
 0x277   :  { %v1464_v15 = vpop.f32.mrf.mxu0  ;;  %2645 = vmatprep.subr.mxu0 %v2107_v20  ;;  %2774 = vmatprep.subr.mxu1 %v2109_v37  ;;  %v1989_v10 = vmax.f32 %v6658_v16, 0.0  ;;  %v1767_v39 = vadd.f32 %v6568_v47, %v7677_v14  ;;  %v2069_v1 = vmax.f32 %v1979_v24, %v1983_v48  ;;  %v2227_v57 = vld [vmem:[#allocation6 + $0x3e8] sm:$0xff]  ;;  %v1760_v7 = vadd.f32 %v1637_v26, %v6410_v62  ;;  %v2226_v62 = vld [vmem:[#allocation6 + $0x3e0] sm:$0xff] }
 0x278   :  { %v2068_v32 = vmax.f32 %v1978_v51, %v1982_v52  ;;  %v1790_v53 = vadd.f32 %v1464_v15, %v6403_v21  ;;  %v1639_v12 = vpop.f32.mrf.mxu1  ;;  %2646 = vmatpush1.msra.mxu0 %v2106_v8  ;;  %2775 = vmatpush1.msra.mxu1 %v2108_v5  ;;  %v1882_v21 = vadd.f32 %v6045_v36, %v1756_v34  ;;  %v1985_v59 = vmax.f32 %v1881_v17, 0.0  ;;  %v7678_v8 = vld [vmem:[#allocation93_spill] sm:$0xff]  ;;  %v7680_v24 = vld [vmem:[#allocation38_spill] sm:$0xff]  ;;  %v2223_v26 = vld [vmem:[#allocation6 + $0x3c8] sm:$0xff] }
 0x279   :  { %2647 = vmatprep.subr.mxu0 %v2103_v42  ;;  %v6683_v16 = vmax.f32 %v2067_v56, %v2069_v1  ;;  %v1883_v47 = vadd.f32 %v6049_v50, %v1757_v22  ;;  %v1761_v20 = vadd.f32 %v1639_v12, %v6414_v13  ;;  %2776 = vmatprep.subr.mxu1 %v2105_v11  ;;  %v2016_v51 = vmax.f32 %v1912_v27, 0.0  ;;  %v7679_v5 = vld [vmem:[#allocation173_spill] sm:$0xff]  ;;  %v2219_v12 = vld [vmem:[#allocation6 + $0x3a8] sm:$0xff] }
 0x27a   :  { %v6678_v4 = vmax.f32 %v6521_v61, %v2068_v32  ;;  %v1916_v44 = vadd.f32 %v5988_v49, %v1790_v53  ;;  %v1643_v37 = vpop.f32.mrf.mxu1  ;;  %2648 = vmatpush1.msra.mxu0 %v2102_v35  ;;  %v1886_v52 = vadd.f32 %v6045_v36, %v1760_v7  ;;  %2777 = vmatpush1.msra.mxu1 %v2104_v3  ;;  %v2229_v49 = vld [vmem:[#allocation6 + $0x3f8] sm:$0xff]  ;;  %v2228_v15 = vld [vmem:[#allocation6 + $0x3f0] sm:$0xff]  ;;  %v1986_v42 = vmax.f32 %v1882_v21, 0.0  ;;  %v2218_v7 = vld [vmem:[#allocation6 + $0x3a0] sm:$0xff] }
 0x27b   :  { %v1764_v34 = vadd.f32 %v1643_v37, %v6434_v38  ;;  %2649 = vmatprep.subr.mxu0 %v2227_v57  ;;  %v1182_v17 = vadd.f32 %v7679_v5, %v7678_v8  ;;  %v1763_v48 = vadd.f32 %v6552_v19, %v7680_v24  ;;  %v1887_v13 = vadd.f32 %v6049_v50, %v1761_v20  ;;  %v2225_v53 = vld [vmem:[#allocation6 + $0x3d8] sm:$0xff]  ;;  %v2222_v19 = vld [vmem:[#allocation6 + $0x3c0] sm:$0xff]  ;;  %v2220_v20 = vld [vmem:[#allocation6 + $0x3b0] sm:$0xff] }
 0x27c   :  { %v2020_v61 = vmax.f32 %v1916_v44, 0.0  ;;  %2459 = vmatprep.mubr.f32.mxu0 %v6683_v16  ;;  %2588 = vmatprep.mubr.f32.mxu1 %v6683_v16  ;;  %v1645_v22 = vpop.f32.mrf.mxu1  ;;  %v2073_v38 = vmax.f32 %v1985_v59, %v1989_v10  ;;  %v1990_v27 = vmax.f32 %v1886_v52, 0.0  ;;  %v6701_v11 = vadd.f32 %v6039_v45, %v1767_v39  ;;  %v2224_v10 = vld [vmem:[#allocation6 + $0x3d0] sm:$0xff]  ;;  %v2221_v44 = vld [vmem:[#allocation6 + $0x3b8] sm:$0xff]  ;;  %v2215_v37 = vld [vmem:[#allocation6 + $0x388] sm:$0xff] }
 0x27d   :  { %2460 = vmatmul.mubr.f32.gmra.mxu0 %v6678_v4  ;;  %2589 = vmatmul.mubr.f32.gmra.mxu1 %v6678_v4  ;;  %v1987_v35 = vmax.f32 %v1883_v47, 0.0  ;;  %v1991_v56 = vmax.f32 %v1887_v13, 0.0  ;;  %v1765_v14 = vadd.f32 %v1645_v22, %v6452_v40  ;;  %v1890_v57 = vadd.f32 %v6045_v36, %v1764_v34  ;;  %v7681_v52 = vld [vmem:[#allocation94_spill] sm:$0xff] }
 0x27e   :  { %v6696_v32 = vmax.f32 %v2016_v51, %v2020_v61  ;;  %v1649_v1 = vpop.f32.mrf.mxu1  ;;  %2778 = vmatprep.subr.mxu1 %v2229_v49  ;;  %2650 = vmatpush2.msra.mxu0 %v2226_v62  ;;  %v2074_v3 = vmax.f32 %v1986_v42, %v1990_v27  ;;  %v1889_v39 = vadd.f32 %v6039_v45, %v1763_v48  ;;  %v7682_v34 = vld [vmem:[#allocation174_spill] sm:$0xff]  ;;  %v7685_v42 = vld [vmem:[#allocation175_spill] sm:$0xff] }
 0x27f   :  { %v1768_v21 = vadd.f32 %v1649_v1, %v6484_v58  ;;  %2779 = vmatpush2.msra.mxu1 %v2228_v15  ;;  %2651 = vmatprep.subr.mxu0 %v2223_v26  ;;  %v2075_v59 = vmax.f32 %v1987_v35, %v1991_v56  ;;  %v1891_v47 = vadd.f32 %v6049_v50, %v1765_v14  ;;  %v7683_v62 = vld [vmem:[#allocation58_spill] sm:$0xff]  ;;  %v1994_v48 = vmax.f32 %v1890_v57, 0.0  ;;  %v7684_v26 = vld [vmem:[#allocation95_spill] sm:$0xff]  ;;  %v2216_v35 = vld [vmem:[#allocation6 + $0x390] sm:$0xff] }
 0x280   :  { %v1651_v40 = vpop.f32.mrf.mxu1  ;;  %2780 = vmatprep.subr.mxu1 %v2225_v53  ;;  %2652 = vmatpush2.msra.mxu0 %v2222_v19  ;;  %v6709_v51 = vmax.f32 %v6554_v43, %v2074_v3  ;;  %v1184_v49 = vadd.f32 %v7682_v34, %v7681_v52  ;;  %v1775_v8 = vadd.f32 %v6604_v55, %v7683_v62  ;;  %v1997_v43 = vmax.f32 %v6701_v11, 0.0  ;;  %v2214_v15 = vld [vmem:[#allocation6 + $0x380] sm:$0xff]  ;;  %v7686_v55 = vld [vmem:[#allocation56_spill] sm:$0xff]  ;;  %v2213_v3 = vld [vmem:[#allocation6 + $0x378] sm:$0xff] }
 0x281   :  { %v1894_v61 = vadd.f32 %v6045_v36, %v1768_v21  ;;  %v1769_v58 = vadd.f32 %v1651_v40, %v6492_v29  ;;  %2781 = vmatpush2.msra.mxu1 %v2224_v10  ;;  %2653 = vmatprep.subr.mxu0 %v2219_v12  ;;  %v6717_v5 = vmax.f32 %v2073_v38, %v2075_v59  ;;  %v2217_v29 = vld [vmem:[#allocation6 + $0x398] sm:$0xff]  ;;  %v1993_v53 = vmax.f32 %v1889_v39, 0.0  ;;  %v2211_v56 = vld [vmem:[#allocation6 + $0x368] sm:$0xff]  ;;  %v2210_v57 = vld [vmem:[#allocation6 + $0x360] sm:$0xff] }
 0x282   :  { %v1655_v24 = vpop.f32.mrf.mxu1  ;;  %2782 = vmatprep.subr.mxu1 %v2221_v44  ;;  %2654 = vmatpush2.msra.mxu0 %v2218_v7  ;;  %v1188_v27 = vadd.f32 %v7685_v42, %v7684_v26  ;;  %v1771_v38 = vadd.f32 %v6588_v41, %v7686_v55  ;;  %v1995_v14 = vmax.f32 %v1891_v47, 0.0  ;;  %v7687_v21 = vld [vmem:[#allocation96_spill] sm:$0xff]  ;;  %v7689_v44 = vld [vmem:[#allocation97_spill] sm:$0xff]  ;;  %v7690_v7 = vld [vmem:[#allocation178_spill] sm:$0xff]  ;;  %v1901_v59 = vadd.f32 %v6039_v45, %v1775_v8 }
 0x283   :  { %v1998_v13 = vmax.f32 %v1894_v61, 0.0  ;;  %v1895_v22 = vadd.f32 %v6049_v50, %v1769_v58  ;;  %2783 = vmatpush2.msra.mxu1 %v2220_v20  ;;  %2655 = vmatprep.subr.mxu0 %v2215_v37  ;;  %v1772_v19 = vadd.f32 %v1655_v24, %v1182_v17  ;;  %v7688_v41 = vld [vmem:[#allocation176_spill] sm:$0xff]  ;;  %v1194_v39 = vadd.f32 %v7690_v7, %v7689_v44  ;;  %v2209_v52 = vld [vmem:[#allocation6 + $0x358] sm:$0xff]  ;;  %v2206_v34 = vld [vmem:[#allocation6 + $0x340] sm:$0xff] }
 0x284   :  { %2465 = vmatprep.mubr.f32.mxu0 %v6717_v5  ;;  %2594 = vmatprep.mubr.f32.mxu1 %v6717_v5  ;;  %v1657_v11 = vpop.f32.mrf.mxu1  ;;  %v1190_v17 = vadd.f32 %v7688_v41, %v7687_v21  ;;  %v2212_v47 = vld [vmem:[#allocation6 + $0x370] sm:$0xff]  ;;  %v2207_v20 = vld [vmem:[#allocation6 + $0x348] sm:$0xff]  ;;  %v2079_v37 = vmax.f32 %v1993_v53, %v1997_v43  ;;  %v7693_v42 = vld [vmem:[#allocation98_spill] sm:$0xff] }
 0x285   :  { %v2080_v1 = vmax.f32 %v1994_v48, %v1998_v13  ;;  %v1999_v10 = vmax.f32 %v1895_v22, 0.0  ;;  %v1773_v12 = vadd.f32 %v1657_v11, %v1184_v49  ;;  %2466 = vmatmul.mubr.f32.gmra.mxu0 %v6709_v51  ;;  %2595 = vmatmul.mubr.f32.gmra.mxu1 %v6709_v51  ;;  %v1897_v49 = vadd.f32 %v6039_v45, %v1771_v38  ;;  %v2208_v48 = vld [vmem:[#allocation6 + $0x350] sm:$0xff]  ;;  %v2203_v22 = vld [vmem:[#allocation6 + $0x328] sm:$0xff]  ;;  %v2205_v11 = vld [vmem:[#allocation6 + $0x338] sm:$0xff] }
 0x286   :  { %2784 = vmatprep.subr.mxu1 %v2217_v29  ;;  %v1661_v40 = vpop.f32.mrf.mxu1  ;;  %2656 = vmatpush2.msra.mxu0 %v2214_v15  ;;  %v1898_v62 = vadd.f32 %v6045_v36, %v1772_v19  ;;  %v7691_v29 = vld [vmem:[#allocation28_spill] sm:$0xff]  ;;  %v7692_v15 = vld [vmem:[#allocation157_spill] sm:$0xff]  ;;  %v7694_v53 = vld [vmem:[#allocation179_spill] sm:$0xff]  ;;  %v2005_v38 = vmax.f32 %v1901_v59, 0.0 }
 0x287   :  { %v6735_v61 = vmax.f32 %v6590_v6, %v2080_v1  ;;  %v2081_v58 = vmax.f32 %v1995_v14, %v1999_v10  ;;  %2785 = vmatpush2.msra.mxu1 %v2216_v35  ;;  %2657 = vmatprep.subr.mxu0 %v2211_v56  ;;  %v1776_v24 = vadd.f32 %v1661_v40, %v1188_v27  ;;  %v7695_v35 = vld [vmem:[#allocation99_spill] sm:$0xff]  ;;  %v7696_v56 = vld [vmem:[#allocation180_spill] sm:$0xff] }
 0x288   :  { %2786 = vmatprep.subr.mxu1 %v2213_v3  ;;  %v1663_v8 = vpop.f32.mrf.mxu1  ;;  %2658 = vmatpush2.msra.mxu0 %v2210_v57  ;;  %v1899_v43 = vadd.f32 %v6049_v50, %v1773_v12  ;;  %v981_v26 = vadd.f32 %v7692_v15, %v7691_v29  ;;  %v1196_v55 = vadd.f32 %v7694_v53, %v7693_v42  ;;  %v2202_v12 = vld [vmem:[#allocation6 + $0x320] sm:$0xff]  ;;  %v2001_v3 = vmax.f32 %v1897_v49, 0.0  ;;  %v2204_v44 = vld [vmem:[#allocation6 + $0x330] sm:$0xff]  ;;  %v2199_v7 = vld [vmem:[#allocation6 + $0x308] sm:$0xff] }
 0x289   :  { %v6739_v13 = vmax.f32 %v2079_v37, %v2081_v58  ;;  %v1777_v6 = vadd.f32 %v1663_v8, %v1190_v17  ;;  %2787 = vmatpush2.msra.mxu1 %v2212_v47  ;;  %2659 = vmatprep.subr.mxu0 %v2207_v20  ;;  %v1902_v27 = vadd.f32 %v6045_v36, %v1776_v24  ;;  %v2002_v21 = vmax.f32 %v1898_v62, 0.0  ;;  %v7697_v59 = vld [vmem:[#allocation100_spill] sm:$0xff]  ;;  %v7698_v40 = vld [vmem:[#allocation183_spill] sm:$0xff]  ;;  %v2201_v58 = vld [vmem:[#allocation6 + $0x318] sm:$0xff] }
 0x28a   :  { %2788 = vmatprep.subr.mxu1 %v2209_v52  ;;  %v1667_v19 = vpop.f32.mrf.mxu1  ;;  %2660 = vmatpush2.msra.mxu0 %v2206_v34  ;;  %v1200_v14 = vadd.f32 %v7696_v56, %v7695_v35  ;;  %v1783_v57 = vadd.f32 %v6641_v46, %v981_v26  ;;  %v1202_v47 = vadd.f32 %v7698_v40, %v7697_v59  ;;  %v2003_v20 = vmax.f32 %v1899_v43, 0.0  ;;  %v2198_v52 = vld [vmem:[#allocation6 + $0x300] sm:$0xff]  ;;  %v2200_v8 = vld [vmem:[#allocation6 + $0x310] sm:$0xff]  ;;  %v2197_v29 = vld [vmem:[#allocation6 + $0x2f8] sm:$0xff] }
 0x28b   :  { %v1903_v1 = vadd.f32 %v6049_v50, %v1777_v6  ;;  %v1780_v10 = vadd.f32 %v1667_v19, %v1194_v39  ;;  %2789 = vmatpush2.msra.mxu1 %v2208_v48  ;;  %2471 = vmatprep.mubr.f32.mxu0 %v6739_v13  ;;  %v2006_v41 = vmax.f32 %v1902_v27, 0.0  ;;  %v2085_v46 = vmax.f32 %v2001_v3, %v2005_v38  ;;  %v7699_v34 = vld [vmem:[#allocation123_spill] sm:$0xff]  ;;  %v2193_v35 = vld [vmem:[#allocation6 + $0x2d8] sm:$0xff] }
 0x28c   :  { %2600 = vmatprep.mubr.f32.mxu1 %v6739_v13  ;;  %2661 = vmatprep.subr.mxu0 %v2203_v22  ;;  %v1669_v17 = vpop.f32.mrf.mxu1  ;;  %v1779_v49 = vadd.f32 %v6624_v54, %v7699_v34  ;;  %v2195_v48 = vld [vmem:[#allocation6 + $0x2e8] sm:$0xff]  ;;  %v2194_v15 = vld [vmem:[#allocation6 + $0x2e0] sm:$0xff]  ;;  %v6761_v26 = vadd.f32 %v6039_v45, %v1783_v57 }
 0x28d   :  { %v2007_v39 = vmax.f32 %v1903_v1, 0.0  ;;  %2790 = vmatprep.subr.mxu1 %v2205_v11  ;;  %v1781_v37 = vadd.f32 %v1669_v17, %v1196_v55  ;;  %2472 = vmatmul.mubr.f32.gmra.mxu0 %v6735_v61  ;;  %v2086_v62 = vmax.f32 %v2002_v21, %v2006_v41  ;;  %v1906_v43 = vadd.f32 %v6045_v36, %v1780_v10  ;;  %v2196_v55 = vld [vmem:[#allocation6 + $0x2f0] sm:$0xff]  ;;  %v2191_v38 = vld [vmem:[#allocation6 + $0x2c8] sm:$0xff]  ;;  %v2190_v56 = vld [vmem:[#allocation6 + $0x2c0] sm:$0xff] }
 0x28e   :  { %2601 = vmatmul.mubr.f32.gmra.mxu1 %v6735_v61  ;;  %2662 = vmatpush2.msra.mxu0 %v2202_v12  ;;  %v1673_v24 = vpop.f32.mrf.mxu1  ;;  %v7701_v1 = vld [vmem:[#allocation172_spill] sm:$0xff]  ;;  %v7702_v10 = vld [vmem:[#allocation101_spill] sm:$0xff]  ;;  %v7703_v12 = vld [vmem:[#allocation42_spill] sm:$0xff] }
 0x28f   :  { %v2087_v6 = vmax.f32 %v2003_v20, %v2007_v39  ;;  %2791 = vmatpush2.msra.mxu1 %v2204_v44  ;;  %2663 = vmatprep.subr.mxu0 %v2199_v7  ;;  %v1784_v22 = vadd.f32 %v1673_v24, %v1200_v14  ;;  %v6764_v54 = vmax.f32 %v6626_v0, %v2086_v62  ;;  %v7700_v14 = vld [vmem:[#allocation177_spill] sm:$0xff]  ;;  %v7704_v57 = vld [vmem:[#allocation182_spill] sm:$0xff]  ;;  %v7705_v21 = vld [vmem:[#allocation43_spill] sm:$0xff]  ;;  %v2010_v59 = vmax.f32 %v1906_v43, 0.0 }
 0x290   :  { %v1907_v42 = vadd.f32 %v6049_v50, %v1781_v37  ;;  %2792 = vmatprep.subr.mxu1 %v2201_v58  ;;  %2664 = vmatpush2.msra.mxu0 %v2198_v52  ;;  %v1675_v53 = vpop.f32.mrf.mxu1  ;;  %v1695_v0 = vadd.f32 %v7701_v1, %v7700_v14  ;;  %v1206_v3 = vadd.f32 %v7703_v12, %v7702_v10  ;;  %v2192_v44 = vld [vmem:[#allocation6 + $0x2d0] sm:$0xff]  ;;  %v2187_v20 = vld [vmem:[#allocation6 + $0x2a8] sm:$0xff]  ;;  %v7707_v37 = vld [vmem:[#allocation90_spill] sm:$0xff] }
 0x291   :  { %v6767_v27 = vmax.f32 %v2085_v46, %v2087_v6  ;;  %v1910_v19 = vadd.f32 %v6045_v36, %v1784_v22  ;;  %2793 = vmatpush2.msra.mxu1 %v2200_v8  ;;  %2665 = vmatprep.subr.mxu0 %v2195_v48  ;;  %v1785_v11 = vadd.f32 %v1675_v53, %v1202_v47  ;;  %v7706_v39 = vld [vmem:[#allocation25_spill] sm:$0xff]  ;;  %v7709_v46 = vld [vmem:[#allocation115_spill] sm:$0xff] }
 0x292   :  { %v1697_v41 = vadd.f32 %v7705_v21, %v7704_v57  ;;  %2794 = vmatprep.subr.mxu1 %v2197_v29  ;;  %2666 = vmatpush2.msra.mxu0 %v2194_v15  ;;  %v1679_v17 = vpop.f32.mrf.mxu1  ;;  %v1905_v7 = vadd.f32 %v6039_v45, %v1779_v49  ;;  %v843_v58 = vadd.f32 %v7707_v37, %v7706_v39  ;;  %v7708_v52 = vld [vmem:[#allocation181_spill] sm:$0xff]  ;;  %v2013_v49 = vmax.f32 %v6761_v26, 0.0  ;;  %v2186_v22 = vld [vmem:[#allocation6 + $0x2a0] sm:$0xff] }
 0x293   :  { %v2014_v40 = vmax.f32 %v1910_v19, 0.0  ;;  %v1911_v47 = vadd.f32 %v6049_v50, %v1785_v11  ;;  %2795 = vmatpush2.msra.mxu1 %v2196_v55  ;;  %2667 = vmatprep.subr.mxu0 %v2191_v38  ;;  %v1693_v34 = vadd.f32 %v7709_v46, %v7708_v52  ;;  %v1788_v62 = vadd.f32 %v1679_v17, %v1206_v3  ;;  %v2189_v24 = vld [vmem:[#allocation6 + $0x2b8] sm:$0xff]  ;;  %v7711_v53 = vld [vmem:[#allocation103_spill] sm:$0xff]  ;;  %v7712_v55 = vld [vmem:[#allocation108_spill] sm:$0xff] }
 0x294   :  { %2796 = vmatprep.subr.mxu1 %v2193_v35  ;;  %2668 = vmatpush2.msra.mxu0 %v2190_v56  ;;  %v6782_v8 = vpop.f32.mrf.mxu1  ;;  %v2011_v48 = vmax.f32 %v1907_v42, 0.0  ;;  %v7710_v29 = vld [vmem:[#allocation170_spill] sm:$0xff]  ;;  %v1212_v38 = vadd.f32 %v7712_v55, %v7711_v53  ;;  %v1823_v19 = vadd.f32 %v6049_v50, %v1697_v41  ;;  %v2188_v11 = vld [vmem:[#allocation6 + $0x2b0] sm:$0xff]  ;;  %v2183_v35 = vld [vmem:[#allocation6 + $0x288] sm:$0xff]  ;;  %v1821_v42 = vadd.f32 %v6039_v45, %v1695_v0 }
 0x295   :  { %v2092_v6 = vmax.f32 %v2010_v59, %v2014_v40  ;;  %v2015_v43 = vmax.f32 %v1911_v47, 0.0  ;;  %2797 = vmatpush2.msra.mxu1 %v2192_v44  ;;  %2477 = vmatprep.mubr.f32.mxu0 %v6767_v27  ;;  %v1691_v15 = vadd.f32 %v7710_v29, %v843_v58  ;;  %v2009_v56 = vmax.f32 %v1905_v7, 0.0  ;;  %v2185_v10 = vld [vmem:[#allocation6 + $0x298] sm:$0xff]  ;;  %v2182_v12 = vld [vmem:[#allocation6 + $0x280] sm:$0xff]  ;;  %v2184_v41 = vld [vmem:[#allocation6 + $0x290] sm:$0xff] }
 0x296   :  { %2606 = vmatprep.mubr.f32.mxu1 %v6767_v27  ;;  %2669 = vmatprep.subr.mxu0 %v2187_v20  ;;  %v1685_v26 = vpop.f32.mrf.mxu1  ;;  %v1819_v3 = vadd.f32 %v6049_v50, %v1693_v34  ;;  %v1914_v57 = vadd.f32 %v6045_v36, %v1788_v62  ;;  %v2179_v0 = vld [vmem:[#allocation6 + $0x268] sm:$0xff]  ;;  %v2178_v44 = vld [vmem:[#allocation6 + $0x260] sm:$0xff]  ;;  %v1927_v59 = vmax.f32 %v1823_v19, 0.0  ;;  %v2180_v47 = vld [vmem:[#allocation6 + $0x270] sm:$0xff]  ;;  %v1925_v52 = vmax.f32 %v1821_v42, 0.0 }
 0x297   :  { %v6793_v14 = vmax.f32 %v6665_v33, %v2092_v6  ;;  %v2093_v1 = vmax.f32 %v2011_v48, %v2015_v43  ;;  %2798 = vmatprep.subr.mxu1 %v2189_v24  ;;  %2478 = vmatmul.mubr.f32.gmra.mxu0 %v6764_v54  ;;  %v1792_v21 = vadd.f32 %v1685_v26, %v1212_v38  ;;  %v2181_v33 = vld [vmem:[#allocation6 + $0x278] sm:$0xff]  ;;  %v2175_v20 = vld [vmem:[#allocation6 + $0x248] sm:$0xff]  ;;  %v2174_v58 = vld [vmem:[#allocation6 + $0x240] sm:$0xff] }
 0x298   :  { %2607 = vmatmul.mubr.f32.gmra.mxu1 %v6764_v54  ;;  %2670 = vmatpush2.msra.mxu0 %v2186_v22  ;;  %v2091_v17 = vmax.f32 %v2009_v56, %v2013_v49  ;;  %v1817_v7 = vadd.f32 %v6039_v45, %v1691_v15  ;;  %v2177_v37 = vld [vmem:[#allocation6 + $0x258] sm:$0xff]  ;;  %v1923_v46 = vmax.f32 %v1819_v3, 0.0  ;;  %v2018_v34 = vmax.f32 %v1914_v57, 0.0  ;;  %v2176_v24 = vld [vmem:[#allocation6 + $0x250] sm:$0xff]  ;;  %v2171_v49 = vld [vmem:[#allocation6 + $0x228] sm:$0xff] }
 0x299   :  { %2799 = vmatpush2.msra.mxu1 %v2188_v11  ;;  %2671 = vmatprep.subr.mxu0 %v2183_v35  ;;  %v1918_v40 = vadd.f32 %v6045_v36, %v1792_v21  ;;  %v2173_v6 = vld [vmem:[#allocation6 + $0x238] sm:$0xff]  ;;  %v2170_v22 = vld [vmem:[#allocation6 + $0x220] sm:$0xff]  ;;  %v2172_v15 = vld [vmem:[#allocation6 + $0x230] sm:$0xff] }
 0x29a   :  { %2800 = vmatprep.subr.mxu1 %v2185_v10  ;;  %2672 = vmatpush2.msra.mxu0 %v2182_v12  ;;  %v6801_v39 = vmax.f32 %v2091_v17, %v2093_v1  ;;  %v1921_v36 = vmax.f32 %v1817_v7, 0.0  ;;  %v2027_v43 = vmax.f32 %v1923_v46, %v1927_v59  ;;  %v2167_v53 = vld [vmem:[#allocation6 + $0x208] sm:$0xff]  ;;  %v2169_v38 = vld [vmem:[#allocation6 + $0x218] sm:$0xff]  ;;  %v2166_v11 = vld [vmem:[#allocation6 + $0x200] sm:$0xff] }
 0x29b   :  { %2801 = vmatpush2.msra.mxu1 %v2184_v41  ;;  %2673 = vmatprep.subr.mxu0 %v2179_v0  ;;  %v2022_v62 = vmax.f32 %v1918_v40, 0.0  ;;  %v2168_v35 = vld [vmem:[#allocation6 + $0x210] sm:$0xff]  ;;  %v2939_v26 = vld [vmem:[#allocation6 + $0x9f8] sm:$0xff]  ;;  %v2936_v42 = vld [vmem:[#allocation6 + $0x9e0] sm:$0xff] }
 0x29c   :  { %2802 = vmatprep.subr.mxu1 %v2181_v33  ;;  %2674 = vmatpush2.msra.mxu0 %v2178_v44  ;;  %v2025_v55 = vmax.f32 %v1921_v36, %v1925_v52  ;;  %v2938_v56 = vld [vmem:[#allocation6 + $0x9f0] sm:$0xff]  ;;  %v7713_v1 = vld [vmem:[#allocation47_spill] sm:$0xff]  ;;  %v2935_v12 = vld [vmem:[#allocation6 + $0x9d8] sm:$0xff] }
 0x29d   :  { %2803 = vmatpush2.msra.mxu1 %v2180_v47  ;;  %2675 = vmatprep.subr.mxu0 %v2175_v20  ;;  %v2098_v48 = vmax.f32 %v2018_v34, %v2022_v62  ;;  %v2933_v10 = vld [vmem:[#allocation6 + $0x9c8] sm:$0xff]  ;;  %v2932_v3 = vld [vmem:[#allocation6 + $0x9c0] sm:$0xff]  ;;  %v2934_v57 = vld [vmem:[#allocation6 + $0x9d0] sm:$0xff] }
 0x29e   :  { %2804 = vmatprep.subr.mxu1 %v2177_v37  ;;  %2676 = vmatpush2.msra.mxu0 %v2174_v58  ;;  %v2029_v19 = vmax.f32 %v2025_v55, %v2027_v43  ;;  %v2929_v21 = vld [vmem:[#allocation6 + $0x9a8] sm:$0xff]  ;;  %v2931_v41 = vld [vmem:[#allocation6 + $0x9b8] sm:$0xff]  ;;  %v2928_v0 = vld [vmem:[#allocation6 + $0x9a0] sm:$0xff] }
 0x29f   :  { %2805 = vmatpush2.msra.mxu1 %v2176_v24  ;;  %2483 = vmatprep.mubr.f32.mxu0 %v6801_v39  ;;  %v6805_v29 = vmax.f32 %v6696_v32, %v2098_v48  ;;  %v2937_v32 = vld [vmem:[#allocation6 + $0x9e8] sm:$0xff]  ;;  %v2930_v17 = vld [vmem:[#allocation6 + $0x9b0] sm:$0xff]  ;;  %v2927_v44 = vld [vmem:[#allocation6 + $0x998] sm:$0xff] }
 0x2a0   :  { %2612 = vmatprep.mubr.f32.mxu1 %v6801_v39  ;;  %2677 = vmatprep.subr.mxu0 %v2171_v49  ;;  %v2925_v33 = vld [vmem:[#allocation6 + $0x988] sm:$0xff]  ;;  %v2924_v7 = vld [vmem:[#allocation6 + $0x980] sm:$0xff]  ;;  %v2923_v40 = vld [vmem:[#allocation6 + $0x978] sm:$0xff] }
 0x2a1   :  { %2806 = vmatprep.subr.mxu1 %v2173_v6  ;;  %2484 = vmatmul.mubr.f32.gmra.mxu0 %v6793_v14  ;;  %v2921_v59 = vld [vmem:[#allocation6 + $0x968] sm:$0xff]  ;;  %v2920_v47 = vld [vmem:[#allocation6 + $0x960] sm:$0xff]  ;;  %v2922_v20 = vld [vmem:[#allocation6 + $0x970] sm:$0xff] }
 0x2a2   :  { %2613 = vmatmul.mubr.f32.gmra.mxu1 %v6793_v14  ;;  %2678 = vmatpush2.msra.mxu0 %v2170_v22  ;;  %v2919_v37 = vld [vmem:[#allocation6 + $0x958] sm:$0xff]  ;;  %v2916_v58 = vld [vmem:[#allocation6 + $0x940] sm:$0xff]  ;;  %v2918_v52 = vld [vmem:[#allocation6 + $0x950] sm:$0xff] }
 0x2a3   :  { %2807 = vmatpush2.msra.mxu1 %v2172_v15  ;;  %2679 = vmatprep.subr.mxu0 %v2167_v53  ;;  %v2913_v46 = vld [vmem:[#allocation6 + $0x928] sm:$0xff]  ;;  %v2915_v34 = vld [vmem:[#allocation6 + $0x938] sm:$0xff]  ;;  %v2912_v62 = vld [vmem:[#allocation6 + $0x920] sm:$0xff] }
 0x2a4   :  { %2681 = vmatprep.mubr.f32.mxu0 %v2029_v19  ;;  %2808 = vmatprep.subr.mxu1 %v2169_v38  ;;  %v2914_v24 = vld [vmem:[#allocation6 + $0x930] sm:$0xff]  ;;  %v2909_v49 = vld [vmem:[#allocation6 + $0x908] sm:$0xff]  ;;  %v2911_v36 = vld [vmem:[#allocation6 + $0x918] sm:$0xff] }
 0x2a5   :  { %2810 = vmatprep.mubr.f32.mxu1 %v2029_v19  ;;  %2680 = vmatpush2.msra.mxu0 %v2166_v11  ;;  %v2908_v48 = vld [vmem:[#allocation6 + $0x900] sm:$0xff]  ;;  %v2910_v6 = vld [vmem:[#allocation6 + $0x910] sm:$0xff]  ;;  %v2905_v43 = vld [vmem:[#allocation6 + $0x8e8] sm:$0xff] }
 0x2a6   :  { %2809 = vmatpush2.msra.mxu1 %v2168_v35  ;;  %3004 = vmatprep.subr.mxu0 %v2937_v32  ;;  %v2907_v22 = vld [vmem:[#allocation6 + $0x8f8] sm:$0xff]  ;;  %v2904_v15 = vld [vmem:[#allocation6 + $0x8e0] sm:$0xff]  ;;  %v2906_v53 = vld [vmem:[#allocation6 + $0x8f0] sm:$0xff] }
 0x2a7   :  { %3133 = vmatprep.subr.mxu1 %v2939_v26  ;;  %2682 = vmatmul.mubr.f32.vlgmr.msra.gmra.mxu0 %v7713_v1  ;;  %v7714_v55 = vld [vmem:[#allocation126_spill] sm:$0xff]  ;;  %v2901_v38 = vld [vmem:[#allocation6 + $0x8c8] sm:$0xff]  ;;  %v2902_v32 = vld [vmem:[#allocation6 + $0x8d0] sm:$0xff] }
 0x2a8   :  { %2811 = vmatmul.mubr.f32.vlgmr.msra.gmra.mxu1 %v7713_v1  ;;  %3005 = vmatpush1.msra.mxu0 %v2936_v42  ;;  %v2903_v19 = vld [vmem:[#allocation6 + $0x8d8] sm:$0xff]  ;;  %v2900_v11 = vld [vmem:[#allocation6 + $0x8c0] sm:$0xff]  ;;  %v2897_v26 = vld [vmem:[#allocation6 + $0x8a8] sm:$0xff] }
 0x2a9   :  { %3134 = vmatpush1.msra.mxu1 %v2938_v56  ;;  %2687 = vmatprep.mubr.f32.mxu0 %v6465_v63  ;;  %v7715_v35 = vld [vmem:[#allocation127_spill] sm:$0xff]  ;;  %v2899_v42 = vld [vmem:[#allocation6 + $0x8b8] sm:$0xff]  ;;  %v2898_v1 = vld [vmem:[#allocation6 + $0x8b0] sm:$0xff] }
 0x2aa   :  { %2816 = vmatprep.mubr.f32.mxu1 %v6465_v63  ;;  %3006 = vmatprep.subr.mxu0 %v2933_v10  ;;  %v2926_v63 = vld [vmem:[#allocation6 + $0x990] sm:$0xff]  ;;  %v2896_v56 = vld [vmem:[#allocation6 + $0x8a0] sm:$0xff] }
 0x2ab   :  { %3135 = vmatprep.subr.mxu1 %v2935_v12  ;;  %3007 = vmatpush1.msra.mxu0 %v2932_v3  ;;  %v7716_v10 = vld [vmem:[#allocation64_spill] sm:$0xff]  ;;  %v2895_v3 = vld [vmem:[#allocation6 + $0x898] sm:$0xff] }
 0x2ac   :  { %3136 = vmatpush1.msra.mxu1 %v2934_v57  ;;  %3008 = vmatprep.subr.mxu0 %v2929_v21  ;;  %v2893_v12 = vld [vmem:[#allocation6 + $0x888] sm:$0xff]  ;;  %v2892_v57 = vld [vmem:[#allocation6 + $0x880] sm:$0xff]  ;;  %v2894_v21 = vld [vmem:[#allocation6 + $0x890] sm:$0xff] }
 0x2ad   :  { %3137 = vmatprep.subr.mxu1 %v2931_v41  ;;  %2688 = vmatmul.mubr.f32.gmra.mxu0 %v6446_v30  ;;  %v2889_v41 = vld [vmem:[#allocation6 + $0x868] sm:$0xff] }
 0x2ae   :  { %2817 = vmatmul.mubr.f32.gmra.mxu1 %v6446_v30  ;;  %3009 = vmatpush1.msra.mxu0 %v2928_v0  ;;  %v2917_v30 = vld [vmem:[#allocation6 + $0x948] sm:$0xff]  ;;  %v2891_v0 = vld [vmem:[#allocation6 + $0x878] sm:$0xff] }
 0x2af   :  { %3138 = vmatpush1.msra.mxu1 %v2930_v17  ;;  %2693 = vmatprep.mubr.f32.mxu0 %v6503_v2  ;;  %v2888_v17 = vld [vmem:[#allocation6 + $0x860] sm:$0xff] }
 0x2b0   :  { %2822 = vmatprep.mubr.f32.mxu1 %v6503_v2  ;;  %3010 = vmatprep.subr.mxu0 %v2925_v33  ;;  %v2890_v33 = vld [vmem:[#allocation6 + $0x870] sm:$0xff] }
 0x2b1   :  { %3139 = vmatprep.subr.mxu1 %v2927_v44  ;;  %3011 = vmatpush1.msra.mxu0 %v2924_v7  ;;  %v2885_v44 = vld [vmem:[#allocation6 + $0x848] sm:$0xff]  ;;  %v2887_v7 = vld [vmem:[#allocation6 + $0x858] sm:$0xff] }
 0x2b2   :  { %3140 = vmatpush1.msra.mxu1 %v2926_v63  ;;  %3012 = vmatprep.subr.mxu0 %v2921_v59  ;;  %v2884_v63 = vld [vmem:[#allocation6 + $0x840] sm:$0xff]  ;;  %v2886_v59 = vld [vmem:[#allocation6 + $0x850] sm:$0xff] }
 0x2b3   :  { %3141 = vmatprep.subr.mxu1 %v2923_v40  ;;  %2694 = vmatmul.mubr.f32.gmra.mxu0 %v6501_v23  ;;  %v2881_v40 = vld [vmem:[#allocation6 + $0x828] sm:$0xff] }
 0x2b4   :  { %2823 = vmatmul.mubr.f32.gmra.mxu1 %v6501_v23  ;;  %3013 = vmatpush1.msra.mxu0 %v2920_v47  ;;  %v2883_v47 = vld [vmem:[#allocation6 + $0x838] sm:$0xff] }
 0x2b5   :  { %3142 = vmatpush1.msra.mxu1 %v2922_v20  ;;  %2699 = vmatprep.mubr.f32.mxu0 %v6540_v28  ;;  %v2880_v20 = vld [vmem:[#allocation6 + $0x820] sm:$0xff] }
 0x2b6   :  { %2828 = vmatprep.mubr.f32.mxu1 %v6540_v28  ;;  %3014 = vmatprep.subr.mxu0 %v2917_v30  ;;  %v2882_v30 = vld [vmem:[#allocation6 + $0x830] sm:$0xff] }
 0x2b7   :  { %3143 = vmatprep.subr.mxu1 %v2919_v37  ;;  %3015 = vmatpush1.msra.mxu0 %v2916_v58  ;;  %v2877_v37 = vld [vmem:[#allocation6 + $0x808] sm:$0xff]  ;;  %v2879_v58 = vld [vmem:[#allocation6 + $0x818] sm:$0xff] }
 0x2b8   :  { %3144 = vmatpush1.msra.mxu1 %v2918_v52  ;;  %3016 = vmatprep.subr.mxu0 %v2913_v46  ;;  %v2876_v52 = vld [vmem:[#allocation6 + $0x800] sm:$0xff]  ;;  %v2878_v46 = vld [vmem:[#allocation6 + $0x810] sm:$0xff] }
 0x2b9   :  { %3145 = vmatprep.subr.mxu1 %v2915_v34  ;;  %2700 = vmatmul.mubr.f32.gmra.mxu0 %v6535_v60  ;;  %v3001_v34 = vld [vmem:[#allocation6 + $0xbe8] sm:$0xff] }
 0x2ba   :  { %2829 = vmatmul.mubr.f32.gmra.mxu1 %v6535_v60  ;;  %3017 = vmatpush1.msra.mxu0 %v2912_v62  ;;  %v3003_v62 = vld [vmem:[#allocation6 + $0xbf8] sm:$0xff] }
 0x2bb   :  { %3146 = vmatpush1.msra.mxu1 %v2914_v24  ;;  %2705 = vmatprep.mubr.f32.mxu0 %v6576_v18  ;;  %v3000_v24 = vld [vmem:[#allocation6 + $0xbe0] sm:$0xff] }
 0x2bc   :  { %2834 = vmatprep.mubr.f32.mxu1 %v6576_v18  ;;  %3018 = vmatprep.subr.mxu0 %v2909_v49  ;;  %v3002_v49 = vld [vmem:[#allocation6 + $0xbf0] sm:$0xff] }
 0x2bd   :  { %3147 = vmatprep.subr.mxu1 %v2911_v36  ;;  %3019 = vmatpush1.msra.mxu0 %v2908_v48  ;;  %v2997_v36 = vld [vmem:[#allocation6 + $0xbc8] sm:$0xff]  ;;  %v2999_v48 = vld [vmem:[#allocation6 + $0xbd8] sm:$0xff] }
 0x2be   :  { %3148 = vmatpush1.msra.mxu1 %v2910_v6  ;;  %3020 = vmatprep.subr.mxu0 %v2905_v43  ;;  %v2996_v6 = vld [vmem:[#allocation6 + $0xbc0] sm:$0xff]  ;;  %v2998_v43 = vld [vmem:[#allocation6 + $0xbd0] sm:$0xff] }
 0x2bf   :  { %3149 = vmatprep.subr.mxu1 %v2907_v22  ;;  %2706 = vmatmul.mubr.f32.gmra.mxu0 %v7714_v55  ;;  %v2993_v22 = vld [vmem:[#allocation6 + $0xba8] sm:$0xff] }
 0x2c0   :  { %2835 = vmatmul.mubr.f32.gmra.mxu1 %v7714_v55  ;;  %3021 = vmatpush1.msra.mxu0 %v2904_v15  ;;  %v2995_v15 = vld [vmem:[#allocation6 + $0xbb8] sm:$0xff] }
 0x2c1   :  { %3150 = vmatpush1.msra.mxu1 %v2906_v53  ;;  %2711 = vmatprep.mubr.f32.mxu0 %v7715_v35  ;;  %v2992_v53 = vld [vmem:[#allocation6 + $0xba0] sm:$0xff] }
 0x2c2   :  { %2840 = vmatprep.mubr.f32.mxu1 %v7715_v35  ;;  %3022 = vmatprep.subr.mxu0 %v2901_v38  ;;  %v2994_v38 = vld [vmem:[#allocation6 + $0xbb0] sm:$0xff] }
 0x2c3   :  { %3151 = vmatprep.subr.mxu1 %v2903_v19  ;;  %3023 = vmatpush1.msra.mxu0 %v2900_v11  ;;  %v2989_v19 = vld [vmem:[#allocation6 + $0xb88] sm:$0xff]  ;;  %v2991_v11 = vld [vmem:[#allocation6 + $0xb98] sm:$0xff] }
 0x2c4   :  { %3152 = vmatpush1.msra.mxu1 %v2902_v32  ;;  %3024 = vmatprep.subr.mxu0 %v2897_v26  ;;  %v2988_v32 = vld [vmem:[#allocation6 + $0xb80] sm:$0xff]  ;;  %v2990_v26 = vld [vmem:[#allocation6 + $0xb90] sm:$0xff] }
 0x2c5   :  { %3153 = vmatprep.subr.mxu1 %v2899_v42  ;;  %2712 = vmatmul.mubr.f32.gmra.mxu0 %v7716_v10  ;;  %v2985_v42 = vld [vmem:[#allocation6 + $0xb68] sm:$0xff] }
 0x2c6   :  { %2841 = vmatmul.mubr.f32.gmra.mxu1 %v7716_v10  ;;  %3025 = vmatpush1.msra.mxu0 %v2896_v56  ;;  %v2987_v56 = vld [vmem:[#allocation6 + $0xb78] sm:$0xff] }
 0x2c7   :  { %3154 = vmatpush1.msra.mxu1 %v2898_v1  ;;  %2717 = vmatprep.mubr.f32.mxu0 %v6649_v31  ;;  %v2984_v1 = vld [vmem:[#allocation6 + $0xb60] sm:$0xff] }
 0x2c8   :  { %2846 = vmatprep.mubr.f32.mxu1 %v6649_v31  ;;  %3026 = vmatprep.subr.mxu0 %v2893_v12  ;;  %v2986_v12 = vld [vmem:[#allocation6 + $0xb70] sm:$0xff] }
 0x2c9   :  { %3155 = vmatprep.subr.mxu1 %v2895_v3  ;;  %3027 = vmatpush1.msra.mxu0 %v2892_v57  ;;  %v2981_v3 = vld [vmem:[#allocation6 + $0xb48] sm:$0xff]  ;;  %v2983_v57 = vld [vmem:[#allocation6 + $0xb58] sm:$0xff] }
 0x2ca   :  { %3156 = vmatpush1.msra.mxu1 %v2894_v21  ;;  %3028 = vmatprep.subr.mxu0 %v2889_v41  ;;  %v2980_v21 = vld [vmem:[#allocation6 + $0xb40] sm:$0xff]  ;;  %v2982_v41 = vld [vmem:[#allocation6 + $0xb50] sm:$0xff] }
 0x2cb   :  { %3157 = vmatprep.subr.mxu1 %v2891_v0  ;;  %2718 = vmatmul.mubr.f32.gmra.mxu0 %v6644_v9  ;;  %v2977_v0 = vld [vmem:[#allocation6 + $0xb28] sm:$0xff] }
 0x2cc   :  { %2847 = vmatmul.mubr.f32.gmra.mxu1 %v6644_v9  ;;  %3029 = vmatpush1.msra.mxu0 %v2888_v17  ;;  %v2979_v17 = vld [vmem:[#allocation6 + $0xb38] sm:$0xff] }
 0x2cd   :  { %3158 = vmatpush1.msra.mxu1 %v2890_v33  ;;  %2723 = vmatprep.mubr.f32.mxu0 %v6683_v16  ;;  %v2976_v33 = vld [vmem:[#allocation6 + $0xb20] sm:$0xff] }
 0x2ce   :  { %2852 = vmatprep.mubr.f32.mxu1 %v6683_v16  ;;  %3030 = vmatprep.subr.mxu0 %v2885_v44  ;;  %v2978_v44 = vld [vmem:[#allocation6 + $0xb30] sm:$0xff] }
 0x2cf   :  { %3159 = vmatprep.subr.mxu1 %v2887_v7  ;;  %3031 = vmatpush1.msra.mxu0 %v2884_v63  ;;  %v2973_v7 = vld [vmem:[#allocation6 + $0xb08] sm:$0xff]  ;;  %v2975_v63 = vld [vmem:[#allocation6 + $0xb18] sm:$0xff] }
 0x2d0   :  { %3160 = vmatpush1.msra.mxu1 %v2886_v59  ;;  %3032 = vmatprep.subr.mxu0 %v2881_v40  ;;  %v2972_v59 = vld [vmem:[#allocation6 + $0xb00] sm:$0xff]  ;;  %v2974_v40 = vld [vmem:[#allocation6 + $0xb10] sm:$0xff] }
 0x2d1   :  { %3161 = vmatprep.subr.mxu1 %v2883_v47  ;;  %2724 = vmatmul.mubr.f32.gmra.mxu0 %v6678_v4  ;;  %v2969_v47 = vld [vmem:[#allocation6 + $0xae8] sm:$0xff] }
 0x2d2   :  { %2853 = vmatmul.mubr.f32.gmra.mxu1 %v6678_v4  ;;  %3033 = vmatpush1.msra.mxu0 %v2880_v20  ;;  %v2971_v20 = vld [vmem:[#allocation6 + $0xaf8] sm:$0xff] }
 0x2d3   :  { %3162 = vmatpush1.msra.mxu1 %v2882_v30  ;;  %2729 = vmatprep.mubr.f32.mxu0 %v6717_v5  ;;  %v2968_v30 = vld [vmem:[#allocation6 + $0xae0] sm:$0xff] }
 0x2d4   :  { %2858 = vmatprep.mubr.f32.mxu1 %v6717_v5  ;;  %3034 = vmatprep.subr.mxu0 %v2877_v37  ;;  %v2970_v37 = vld [vmem:[#allocation6 + $0xaf0] sm:$0xff] }
 0x2d5   :  { %3163 = vmatprep.subr.mxu1 %v2879_v58  ;;  %3035 = vmatpush1.msra.mxu0 %v2876_v52  ;;  %v2965_v58 = vld [vmem:[#allocation6 + $0xac8] sm:$0xff]  ;;  %v2964_v52 = vld [vmem:[#allocation6 + $0xac0] sm:$0xff] }
 0x2d6   :  { %3164 = vmatpush1.msra.mxu1 %v2878_v46  ;;  %3036 = vmatprep.subr.mxu0 %v3001_v34  ;;  %v2966_v46 = vld [vmem:[#allocation6 + $0xad0] sm:$0xff]  ;;  %v2961_v34 = vld [vmem:[#allocation6 + $0xaa8] sm:$0xff] }
 0x2d7   :  { %3165 = vmatprep.subr.mxu1 %v3003_v62  ;;  %2730 = vmatmul.mubr.f32.gmra.mxu0 %v6709_v51  ;;  %v2963_v62 = vld [vmem:[#allocation6 + $0xab8] sm:$0xff] }
 0x2d8   :  { %2859 = vmatmul.mubr.f32.gmra.mxu1 %v6709_v51  ;;  %3037 = vmatpush2.msra.mxu0 %v3000_v24  ;;  %v2960_v24 = vld [vmem:[#allocation6 + $0xaa0] sm:$0xff] }
 0x2d9   :  { %3166 = vmatpush2.msra.mxu1 %v3002_v49  ;;  %2735 = vmatprep.mubr.f32.mxu0 %v6739_v13  ;;  %v2962_v49 = vld [vmem:[#allocation6 + $0xab0] sm:$0xff] }
 0x2da   :  { %2864 = vmatprep.mubr.f32.mxu1 %v6739_v13  ;;  %3038 = vmatprep.subr.mxu0 %v2997_v36  ;;  %v2957_v36 = vld [vmem:[#allocation6 + $0xa88] sm:$0xff] }
 0x2db   :  { %3167 = vmatprep.subr.mxu1 %v2999_v48  ;;  %3039 = vmatpush2.msra.mxu0 %v2996_v6  ;;  %v2959_v48 = vld [vmem:[#allocation6 + $0xa98] sm:$0xff]  ;;  %v2956_v6 = vld [vmem:[#allocation6 + $0xa80] sm:$0xff] }
 0x2dc   :  { %3168 = vmatpush2.msra.mxu1 %v2998_v43  ;;  %3040 = vmatprep.subr.mxu0 %v2993_v22  ;;  %v2958_v43 = vld [vmem:[#allocation6 + $0xa90] sm:$0xff]  ;;  %v2953_v22 = vld [vmem:[#allocation6 + $0xa68] sm:$0xff] }
 0x2dd   :  { %3169 = vmatprep.subr.mxu1 %v2995_v15  ;;  %2736 = vmatmul.mubr.f32.gmra.mxu0 %v6735_v61  ;;  %v2955_v15 = vld [vmem:[#allocation6 + $0xa78] sm:$0xff] }
 0x2de   :  { %2865 = vmatmul.mubr.f32.gmra.mxu1 %v6735_v61  ;;  %3041 = vmatpush2.msra.mxu0 %v2992_v53  ;;  %v2952_v53 = vld [vmem:[#allocation6 + $0xa60] sm:$0xff] }
 0x2df   :  { %3170 = vmatpush2.msra.mxu1 %v2994_v38  ;;  %2741 = vmatprep.mubr.f32.mxu0 %v6767_v27  ;;  %v2954_v38 = vld [vmem:[#allocation6 + $0xa70] sm:$0xff] }
 0x2e0   :  { %2870 = vmatprep.mubr.f32.mxu1 %v6767_v27  ;;  %3042 = vmatprep.subr.mxu0 %v2989_v19  ;;  %v2949_v19 = vld [vmem:[#allocation6 + $0xa48] sm:$0xff] }
 0x2e1   :  { %3171 = vmatprep.subr.mxu1 %v2991_v11  ;;  %3043 = vmatpush2.msra.mxu0 %v2988_v32  ;;  %v2951_v11 = vld [vmem:[#allocation6 + $0xa58] sm:$0xff]  ;;  %v2948_v32 = vld [vmem:[#allocation6 + $0xa40] sm:$0xff] }
 0x2e2   :  { %3172 = vmatpush2.msra.mxu1 %v2990_v26  ;;  %3044 = vmatprep.subr.mxu0 %v2985_v42  ;;  %v2950_v26 = vld [vmem:[#allocation6 + $0xa50] sm:$0xff]  ;;  %v2945_v42 = vld [vmem:[#allocation6 + $0xa28] sm:$0xff] }
 0x2e3   :  { %3173 = vmatprep.subr.mxu1 %v2987_v56  ;;  %2742 = vmatmul.mubr.f32.gmra.mxu0 %v6764_v54  ;;  %v2947_v56 = vld [vmem:[#allocation6 + $0xa38] sm:$0xff] }
 0x2e4   :  { %2871 = vmatmul.mubr.f32.gmra.mxu1 %v6764_v54  ;;  %3045 = vmatpush2.msra.mxu0 %v2984_v1  ;;  %v2944_v1 = vld [vmem:[#allocation6 + $0xa20] sm:$0xff] }
 0x2e5   :  { %3174 = vmatpush2.msra.mxu1 %v2986_v12  ;;  %3046 = vmatprep.subr.mxu0 %v2981_v3  ;;  %v2946_v12 = vld [vmem:[#allocation6 + $0xa30] sm:$0xff]  ;;  %v2941_v3 = vld [vmem:[#allocation6 + $0xa08] sm:$0xff] }
 0x2e6   :  { %3068 = vmatprep.mubr.f32.mxu0 %v6503_v2  ;;  %3175 = vmatprep.subr.mxu1 %v2983_v57  ;;  %v2943_v57 = vld [vmem:[#allocation6 + $0xa18] sm:$0xff] }
 0x2e7   :  { %3197 = vmatprep.mubr.f32.mxu1 %v6503_v2  ;;  %3047 = vmatpush2.msra.mxu0 %v2980_v21  ;;  %v2967_v2 = vld [vmem:[#allocation6 + $0xad8] sm:$0xff]  ;;  %v2940_v21 = vld [vmem:[#allocation6 + $0xa00] sm:$0xff] }
 0x2e8   :  { %3176 = vmatpush2.msra.mxu1 %v2982_v41  ;;  %3048 = vmatprep.subr.mxu0 %v2977_v0  ;;  %v2942_v41 = vld [vmem:[#allocation6 + $0xa10] sm:$0xff]  ;;  %v7720_v0 = vld [vmem:[#allocation166_spill] sm:$0xff] }
 0x2e9   :  { %3177 = vmatprep.subr.mxu1 %v2979_v17  ;;  %3049 = vmatpush2.msra.mxu0 %v2976_v33  ;;  %v7721_v17 = vld [vmem:[#allocation102_spill] sm:$0xff] }
 0x2ea   :  { %3178 = vmatpush2.msra.mxu1 %v2978_v44  ;;  %3050 = vmatprep.subr.mxu0 %v2973_v7  ;;  %v7722_v33 = vld [vmem:[#allocation34_spill] sm:$0xff] }
 0x2eb   :  { %3179 = vmatprep.subr.mxu1 %v2975_v63  ;;  %3051 = vmatpush2.msra.mxu0 %v2972_v59  ;;  %v1208_v44 = vadd.f32 %v7722_v33, %v7721_v17  ;;  %v7723_v7 = vld [vmem:[#allocation30_spill] sm:$0xff]  ;;  %v3442_v33 = vld [vmem:[#allocation9 + $0x40] sm:$0xff] }
 0x2ec   :  { %3180 = vmatpush2.msra.mxu1 %v2974_v40  ;;  %3052 = vmatprep.subr.mxu0 %v2969_v47  ;;  %v7724_v63 = vld [vmem:[#allocation162_spill] sm:$0xff] }
 0x2ed   :  { %3181 = vmatprep.subr.mxu1 %v2971_v20  ;;  %3053 = vmatpush2.msra.mxu0 %v2968_v30  ;;  %v987_v59 = vadd.f32 %v7724_v63, %v7723_v7  ;;  %v3441_v63 = vld [vmem:[#allocation9 + $0x38] sm:$0xff] }
 0x2ee   :  { %3182 = vmatpush2.msra.mxu1 %v2970_v37  ;;  %3054 = vmatprep.subr.mxu0 %v2965_v58  ;;  %v3497_v58 = vld [vmem:[#allocation9 + $0x1f0] sm:$0xff] }
 0x2ef   :  { %3183 = vmatprep.subr.mxu1 %v2967_v2  ;;  %3055 = vmatpush2.msra.mxu0 %v2964_v52  ;;  %v3481_v2 = vld [vmem:[#allocation9 + $0x170] sm:$0xff]  ;;  %v3449_v52 = vld [vmem:[#allocation9 + $0x78] sm:$0xff] }
 0x2f0   :  { %3184 = vmatpush2.msra.mxu1 %v2966_v46  ;;  %3056 = vmatprep.subr.mxu0 %v2961_v34  ;;  %v3496_v46 = vld [vmem:[#allocation9 + $0x1e8] sm:$0xff]  ;;  %v3448_v34 = vld [vmem:[#allocation9 + $0x70] sm:$0xff] }
 0x2f1   :  { %3185 = vmatprep.subr.mxu1 %v2963_v62  ;;  %3057 = vmatpush2.msra.mxu0 %v2960_v24  ;;  %v3463_v24 = vld [vmem:[#allocation9 + $0xe8] sm:$0xff] }
 0x2f2   :  { %3186 = vmatpush2.msra.mxu1 %v2962_v49  ;;  %3058 = vmatprep.subr.mxu0 %v2957_v36  ;;  %v3447_v36 = vld [vmem:[#allocation9 + $0x68] sm:$0xff] }
 0x2f3   :  { %3187 = vmatprep.subr.mxu1 %v2959_v48  ;;  %3059 = vmatpush2.msra.mxu0 %v2956_v6  ;;  %v3495_v48 = vld [vmem:[#allocation9 + $0x1e0] sm:$0xff] }
 0x2f4   :  { %3188 = vmatpush2.msra.mxu1 %v2958_v43  ;;  %3060 = vmatprep.subr.mxu0 %v2953_v22  ;;  %v3462_v43 = vld [vmem:[#allocation9 + $0xe0] sm:$0xff] }
 0x2f5   :  { %3189 = vmatprep.subr.mxu1 %v2955_v15  ;;  %3061 = vmatpush2.msra.mxu0 %v2952_v53  ;;  %v3479_v22 = vld [vmem:[#allocation9 + $0x160] sm:$0xff] }
 0x2f6   :  { %3190 = vmatpush2.msra.mxu1 %v2954_v38  ;;  %3062 = vmatprep.subr.mxu0 %v2949_v19  ;;  %v3446_v53 = vld [vmem:[#allocation9 + $0x60] sm:$0xff]  ;;  %v3494_v38 = vld [vmem:[#allocation9 + $0x1d8] sm:$0xff] }
 0x2f7   :  { %3191 = vmatprep.subr.mxu1 %v2951_v11  ;;  %3063 = vmatpush2.msra.mxu0 %v2948_v32  ;;  %v3461_v19 = vld [vmem:[#allocation9 + $0xd8] sm:$0xff] }
 0x2f8   :  { %3192 = vmatpush2.msra.mxu1 %v2950_v26  ;;  %3064 = vmatprep.subr.mxu0 %v2945_v42  ;;  %v3478_v11 = vld [vmem:[#allocation9 + $0x158] sm:$0xff]  ;;  %v3493_v26 = vld [vmem:[#allocation9 + $0x1d0] sm:$0xff] }
 0x2f9   :  { %3193 = vmatprep.subr.mxu1 %v2947_v56  ;;  %3065 = vmatpush2.msra.mxu0 %v2944_v1  ;;  %v3445_v32 = vld [vmem:[#allocation9 + $0x58] sm:$0xff]  ;;  %v3460_v56 = vld [vmem:[#allocation9 + $0xd0] sm:$0xff] }
 0x2fa   :  { %3194 = vmatpush2.msra.mxu1 %v2946_v12  ;;  %3066 = vmatprep.subr.mxu0 %v2941_v3  ;;  %v3477_v1 = vld [vmem:[#allocation9 + $0x150] sm:$0xff] }
 0x2fb   :  { %3195 = vmatprep.subr.mxu1 %v2943_v57  ;;  %3067 = vmatpush2.msra.mxu0 %v2940_v21  ;;  %v3444_v3 = vld [vmem:[#allocation9 + $0x50] sm:$0xff]  ;;  %v3492_v57 = vld [vmem:[#allocation9 + $0x1c8] sm:$0xff] }
 0x2fc   :  { %3196 = vmatpush2.msra.mxu1 %v2942_v41  ;;  %3069 = vmatmul.mubr.f32.vlgmr.msra.gmra.mxu0 %v6501_v23  ;;  %v3459_v41 = vld [vmem:[#allocation9 + $0xc8] sm:$0xff] }
 0x2fd   :  { %3198 = vmatmul.mubr.f32.vlgmr.msra.gmra.mxu1 %v6501_v23  ;;  %3074 = vmatprep.mubr.f32.mxu0 %v6540_v28  ;;  %v1687_v23 = vpop.f32.mrf.mxu1 }
 0x2fe   :  { %3203 = vmatprep.mubr.f32.mxu1 %v6540_v28  ;;  %v7718_v28 = vld [vmem:[#allocation46_spill] sm:$0xff] }
 0x300   :  { %3075 = vmatmul.mubr.f32.gmra.mxu0 %v6535_v60 }
 0x301   :  { %3204 = vmatmul.mubr.f32.gmra.mxu1 %v6535_v60  ;;  %3080 = vmatprep.mubr.f32.mxu0 %v6576_v18  ;;  %v7717_v60 = vld [vmem:[#allocation104_spill] sm:$0xff] }
 0x302   :  { %3209 = vmatprep.mubr.f32.mxu1 %v6576_v18  ;;  %v1214_v18 = vadd.f32 %v7718_v28, %v7717_v60  ;;  %v3443_v60 = vld [vmem:[#allocation9 + $0x48] sm:$0xff]  ;;  %v3458_v28 = vld [vmem:[#allocation9 + $0xc0] sm:$0xff] }
 0x304   :  { %3081 = vmatmul.mubr.f32.gmra.mxu0 %v7714_v55 }
 0x305   :  { %3210 = vmatmul.mubr.f32.gmra.mxu1 %v7714_v55  ;;  %3086 = vmatprep.mubr.f32.mxu0 %v7715_v35  ;;  %v1466_v55 = vpop.f32.mrf.mxu0 }
 0x306   :  { %3215 = vmatprep.mubr.f32.mxu1 %v7715_v35  ;;  %v7719_v35 = vld [vmem:[#allocation32_spill] sm:$0xff] }
 0x308   :  { %3087 = vmatmul.mubr.f32.gmra.mxu0 %v7716_v10 }
 0x309   :  { %3216 = vmatmul.mubr.f32.gmra.mxu1 %v7716_v10  ;;  %3092 = vmatprep.mubr.f32.mxu0 %v6649_v31  ;;  %v993_v10 = vadd.f32 %v7720_v0, %v7719_v35 }
 0x30a   :  { %3221 = vmatprep.mubr.f32.mxu1 %v6649_v31  ;;  %v1793_v31 = vadd.f32 %v1687_v23, %v1214_v18 }
 0x30b   :  { %v1791_v40 = vadd.f32 %v1466_v55, %v993_v10 }
 0x30c   :  { %3093 = vmatmul.mubr.f32.gmra.mxu0 %v6644_v9  ;;  %v1919_v47 = vadd.f32 %v6049_v50, %v1793_v31  ;;  %v3457_v31 = vld [vmem:[#allocation9 + $0xb8] sm:$0xff] }
 0x30d   :  { %3222 = vmatmul.mubr.f32.gmra.mxu1 %v6644_v9  ;;  %3098 = vmatprep.mubr.f32.mxu0 %v6683_v16  ;;  %v1789_v9 = vadd.f32 %v6782_v8, %v1208_v44  ;;  %v1917_v20 = vadd.f32 %v6039_v45, %v1791_v40  ;;  %v3440_v40 = vld [vmem:[#allocation9 + $0x30] sm:$0xff] }
 0x30e   :  { %3227 = vmatprep.mubr.f32.mxu1 %v6683_v16  ;;  %v1787_v16 = vadd.f32 %v6663_v25, %v987_v59  ;;  %v2023_v8 = vmax.f32 %v1919_v47, 0.0  ;;  %v3456_v59 = vld [vmem:[#allocation9 + $0xb0] sm:$0xff] }
 0x30f   :  { %v1915_v30 = vadd.f32 %v6049_v50, %v1789_v9  ;;  %v2021_v25 = vmax.f32 %v1917_v20, 0.0  ;;  %v3476_v20 = vld [vmem:[#allocation9 + $0x148] sm:$0xff] }
 0x310   :  { %3099 = vmatmul.mubr.f32.gmra.mxu0 %v6678_v4 }
 0x311   :  { %3228 = vmatmul.mubr.f32.gmra.mxu1 %v6678_v4  ;;  %3104 = vmatprep.mubr.f32.mxu0 %v6717_v5  ;;  %v1913_v4 = vadd.f32 %v6039_v45, %v1787_v16  ;;  %v3455_v16 = vld [vmem:[#allocation9 + $0xa8] sm:$0xff] }
 0x312   :  { %3233 = vmatprep.mubr.f32.mxu1 %v6717_v5  ;;  %v2019_v5 = vmax.f32 %v1915_v30, 0.0  ;;  %v3439_v30 = vld [vmem:[#allocation9 + $0x28] sm:$0xff] }
 0x313   :  { %v2017_v50 = vmax.f32 %v1913_v4, 0.0 }
 0x314   :  { %3105 = vmatmul.mubr.f32.gmra.mxu0 %v6709_v51  ;;  %v2099_v37 = vmax.f32 %v2019_v5, %v2023_v8  ;;  %v3491_v8 = vld [vmem:[#allocation9 + $0x1c0] sm:$0xff] }
 0x315   :  { %3234 = vmatmul.mubr.f32.gmra.mxu1 %v6709_v51  ;;  %3110 = vmatprep.mubr.f32.mxu0 %v6739_v13  ;;  %v2097_v51 = vmax.f32 %v2017_v50, %v2021_v25  ;;  %v3454_v25 = vld [vmem:[#allocation9 + $0xa0] sm:$0xff] }
 0x316   :  { %3239 = vmatprep.mubr.f32.mxu1 %v6739_v13  ;;  %v6910_v13 = vpop.f32.mrf.mxu1  ;;  %v3475_v50 = vld [vmem:[#allocation9 + $0x140] sm:$0xff] }
 0x317   :  { %v2101_v45 = vmax.f32 %v2097_v51, %v2099_v37  ;;  %v3438_v37 = vld [vmem:[#allocation9 + $0x20] sm:$0xff]  ;;  %v3490_v51 = vld [vmem:[#allocation9 + $0x1b8] sm:$0xff] }
 0x318   :  { %3111 = vmatmul.mubr.f32.gmra.mxu0 %v6735_v61  ;;  %v6914_v49 = vpop.f32.mrf.mxu1 }
 0x319   :  { %3240 = vmatmul.mubr.f32.gmra.mxu1 %v6735_v61  ;;  %3116 = vmatprep.mubr.f32.mxu0 %v6767_v27  ;;  %v6908_v61 = vpop.f32.mrf.mxu0 }
 0x31a   :  { %3245 = vmatprep.mubr.f32.mxu1 %v6767_v27  ;;  %v3482_v27 = vld [vmem:[#allocation9 + $0x178] sm:$0xff]  ;;  %v6918_v15 = vpop.f32.mrf.mxu1 }
 0x31b   :  { %v6912_v62 = vpop.f32.mrf.mxu0 }
 0x31c   :  { %3117 = vmatmul.mubr.f32.gmra.mxu0 %v6764_v54  ;;  %v6922_v12 = vpop.f32.mrf.mxu1 }
 0x31d   :  { %3246 = vmatmul.mubr.f32.gmra.mxu1 %v6764_v54  ;;  %3122 = vmatprep.mubr.f32.mxu0 %v6801_v39  ;;  %v3498_v54 = vld [vmem:[#allocation9 + $0x1f8] sm:$0xff]  ;;  %v6916_v6 = vpop.f32.mrf.mxu0 }
 0x31e   :  { %3251 = vmatprep.mubr.f32.mxu1 %v6801_v39  ;;  %4329 = vmatprep.subr.mxu0 %v3498_v54  ;;  %v3465_v39 = vld [vmem:[#allocation9 + $0xf8] sm:$0xff]  ;;  %v6926_v23 = vpop.f32.mrf.mxu1 }
 0x31f   :  { %4330 = vmatpush3.msra.mxu0 %v3482_v27  ;;  %4364 = vmatprep.subr.mxu1 %v3465_v39  ;;  %v6920_v42 = vpop.f32.mrf.mxu0  ;;  %v3474_v54 = vld [vmem:[#allocation9 + $0x138] sm:$0xff]  ;;  %v3489_v39 = vld [vmem:[#allocation9 + $0x1b0] sm:$0xff] }
 0x320   :  { %3123 = vmatmul.mubr.f32.gmra.mxu0 %v6793_v14  ;;  %4331 = vmatprep.subr.mxu0 %v3497_v58  ;;  %v6930_v55 = vpop.f32.mrf.mxu1  ;;  %v3437_v27 = vld [vmem:[#allocation9 + $0x18] sm:$0xff] }
 0x321   :  { %3252 = vmatmul.mubr.f32.gmra.mxu1 %v6793_v14  ;;  %3128 = vmatprep.mubr.f32.mxu0 %v2101_v45  ;;  %v3464_v14 = vld [vmem:[#allocation9 + $0xf0] sm:$0xff]  ;;  %v6924_v21 = vpop.f32.mrf.mxu0 }
 0x322   :  { %3257 = vmatprep.mubr.f32.mxu1 %v2101_v45  ;;  %4365 = vmatpush3.msra.mxu1 %v3449_v52  ;;  %v3453_v45 = vld [vmem:[#allocation9 + $0x98] sm:$0xff] }
 0x323   :  { %4332 = vmatpush3.msra.mxu0 %v3481_v2  ;;  %4366 = vmatprep.subr.mxu1 %v3464_v14  ;;  %v6928_v18 = vpop.f32.mrf.mxu0  ;;  %v3452_v2 = vld [vmem:[#allocation9 + $0x90] sm:$0xff] }
 0x324   :  { %3129 = vmatmul.mubr.f32.gmra.mxu0 %v6805_v29  ;;  %4333 = vmatprep.subr.mxu0 %v3496_v46  ;;  %v3473_v14 = vld [vmem:[#allocation9 + $0x130] sm:$0xff] }
 0x325   :  { %3258 = vmatmul.mubr.f32.gmra.mxu1 %v6805_v29  ;;  %v3480_v29 = vld [vmem:[#allocation9 + $0x168] sm:$0xff]  ;;  %v6932_v35 = vpop.f32.mrf.mxu0  ;;  %v6934_v0 = vpop.f32.mrf.mxu1 }
 0x326   :  { %4367 = vmatpush3.msra.mxu1 %v3448_v34  ;;  %4334 = vmatpush3.msra.mxu0 %v3480_v29  ;;  %v3488_v34 = vld [vmem:[#allocation9 + $0x1a8] sm:$0xff]  ;;  %v3436_v29 = vld [vmem:[#allocation9 + $0x10] sm:$0xff] }
 0x327   :  { %4368 = vmatprep.subr.mxu1 %v3463_v24  ;;  %4335 = vmatprep.subr.mxu0 %v3495_v48  ;;  %v6936_v10 = vpop.f32.mrf.mxu0  ;;  %v6938_v17 = vpop.f32.mrf.mxu1  ;;  %v3451_v48 = vld [vmem:[#allocation9 + $0x88] sm:$0xff] }
 0x328   :  { %4369 = vmatpush3.msra.mxu1 %v3447_v36  ;;  %4336 = vmatpush3.msra.mxu0 %v3479_v22  ;;  %v3472_v36 = vld [vmem:[#allocation9 + $0x128] sm:$0xff]  ;;  %v3487_v22 = vld [vmem:[#allocation9 + $0x1a0] sm:$0xff] }
 0x329   :  { %4370 = vmatprep.subr.mxu1 %v3462_v43  ;;  %4337 = vmatprep.subr.mxu0 %v3494_v38  ;;  %v3435_v43 = vld [vmem:[#allocation9 + $0x8] sm:$0xff] }
 0x32a   :  { %4371 = vmatpush3.msra.mxu1 %v3446_v53  ;;  %4338 = vmatpush3.msra.mxu0 %v3478_v11  ;;  %v3450_v53 = vld [vmem:[#allocation9 + $0x80] sm:$0xff] }
 0x32b   :  { %4372 = vmatprep.subr.mxu1 %v3461_v19  ;;  %4339 = vmatprep.subr.mxu0 %v3493_v26  ;;  %v3471_v19 = vld [vmem:[#allocation9 + $0x120] sm:$0xff]  ;;  %v3486_v26 = vld [vmem:[#allocation9 + $0x198] sm:$0xff] }
 0x32c   :  { %4373 = vmatpush3.msra.mxu1 %v3445_v32  ;;  %4340 = vmatpush3.msra.mxu0 %v3477_v1  ;;  %v3434_v11 = vld [vmem:[#allocation9] sm:$0xff] }
 0x32d   :  { %4374 = vmatprep.subr.mxu1 %v3460_v56  ;;  %4341 = vmatprep.subr.mxu0 %v3492_v57  ;;  %v6940_v44 = vpop.f32.mrf.mxu0  ;;  %v6942_v7 = vpop.f32.mrf.mxu1  ;;  %v3775_v56 = vld [vmem:[#allocation9 + $0x3f8] sm:$0xff] }
 0x32e   :  { %4375 = vmatpush3.msra.mxu1 %v3444_v3  ;;  %4342 = vmatpush3.msra.mxu0 %v3476_v20  ;;  %v3470_v3 = vld [vmem:[#allocation9 + $0x118] sm:$0xff] }
 0x32f   :  { %4376 = vmatprep.subr.mxu1 %v3459_v41  ;;  %v6944_v9 = vpop.f32.mrf.mxu0  ;;  %v6946_v47 = vpop.f32.mrf.mxu1  ;;  %4343 = vmatprep.subr.mxu0 %v3491_v8  ;;  %v3485_v41 = vld [vmem:[#allocation9 + $0x190] sm:$0xff] }
 0x330   :  { %4377 = vmatpush3.msra.mxu1 %v3443_v60  ;;  %7725 = vst [vmem:[#allocation49_spill] sm:$0xff] %v6944_v9  ;;  %7726 = vst [vmem:[#allocation128_spill] sm:$0xff] %v6946_v47  ;;  %4344 = vmatpush3.msra.mxu0 %v3475_v50  ;;  %v3469_v60 = vld [vmem:[#allocation9 + $0x110] sm:$0xff]  ;;  %v3302_v47 = vld [vmem:[#allocation7] sm:$0xf] }
 0x331   :  { %4378 = vmatprep.subr.mxu1 %v3458_v28  ;;  %4345 = vmatprep.subr.mxu0 %v3490_v51  ;;  %v3484_v28 = vld [vmem:[#allocation9 + $0x188] sm:$0xff] }
 0x332   :  { %4379 = vmatpush3.msra.mxu1 %v3442_v33  ;;  %4346 = vmatpush3.msra.mxu0 %v3474_v54 }
 0x333   :  { %4380 = vmatprep.subr.mxu1 %v3457_v31  ;;  %4347 = vmatprep.subr.mxu0 %v3489_v39  ;;  %v3468_v31 = vld [vmem:[#allocation9 + $0x108] sm:$0xff] }
 0x334   :  { %4381 = vmatpush3.msra.mxu1 %v3441_v63  ;;  %4348 = vmatpush3.msra.mxu0 %v3473_v14 }
 0x335   :  { %4382 = vmatprep.subr.mxu1 %v3456_v59  ;;  %v6948_v4 = vpop.f32.mrf.mxu0  ;;  %v6950_v5 = vpop.f32.mrf.mxu1  ;;  %4349 = vmatprep.subr.mxu0 %v3488_v34  ;;  %v3483_v59 = vld [vmem:[#allocation9 + $0x180] sm:$0xff] }
 0x336   :  { %4383 = vmatpush3.msra.mxu1 %v3440_v40  ;;  %7727 = vst [vmem:[#allocation66_spill] sm:$0xff] %v6948_v4  ;;  %7728 = vst [vmem:[#allocation129_spill] sm:$0xff] %v6950_v5  ;;  %4350 = vmatpush3.msra.mxu0 %v3472_v36 }
 0x337   :  { %4384 = vmatprep.subr.mxu1 %v3455_v16  ;;  %v6952_v58 = vpop.f32.mrf.mxu0  ;;  %v6954_v52 = vpop.f32.mrf.mxu1  ;;  %4351 = vmatprep.subr.mxu0 %v3487_v22  ;;  %v3467_v16 = vld [vmem:[#allocation9 + $0x100] sm:$0xff] }
 0x338   :  { %4385 = vmatpush3.msra.mxu1 %v3439_v30  ;;  %7729 = vst [vmem:[#allocation51_spill] sm:$0xff] %v6952_v58  ;;  %7730 = vst [vmem:[#allocation130_spill] sm:$0xff] %v6954_v52  ;;  %4352 = vmatpush3.msra.mxu0 %v3471_v19  ;;  %v3671_v30 = vld [vmem:[#allocation9 + $0x2f8] sm:$0xff] }
 0x339   :  { %4386 = vmatprep.subr.mxu1 %v3454_v25  ;;  %4353 = vmatprep.subr.mxu0 %v3486_v26 }
 0x33a   :  { %4387 = vmatpush3.msra.mxu1 %v3438_v37  ;;  %4354 = vmatpush3.msra.mxu0 %v3470_v3 }
 0x33b   :  { %4388 = vmatprep.subr.mxu1 %v3453_v45  ;;  %4355 = vmatprep.subr.mxu0 %v3485_v41 }
 0x33c   :  { %4389 = vmatpush3.msra.mxu1 %v3437_v27  ;;  %4356 = vmatpush3.msra.mxu0 %v3469_v60 }
 0x33d   :  { %4390 = vmatprep.subr.mxu1 %v3452_v2  ;;  %v6956_v46 = vpop.f32.mrf.mxu0  ;;  %v6958_v24 = vpop.f32.mrf.mxu1  ;;  %4357 = vmatprep.subr.mxu0 %v3484_v28 }
 0x33e   :  { %7731 = vst [vmem:[#allocation68_spill] sm:$0xff] %v6956_v46  ;;  %7732 = vst [vmem:[#allocation131_spill] sm:$0xff] %v6958_v24  ;;  %4391 = vmatpush3.msra.mxu1 %v3436_v29  ;;  %4358 = vmatpush3.msra.mxu0 %v3468_v31 }
 0x33f   :  { %4392 = vmatprep.subr.mxu1 %v3451_v48  ;;  %v6960_v38 = vpop.f32.mrf.mxu0  ;;  %v6962_v32 = vpop.f32.mrf.mxu1  ;;  %4359 = vmatprep.subr.mxu0 %v3483_v59 }
 0x340   :  { %4393 = vmatpush3.msra.mxu1 %v3435_v43  ;;  %7733 = vst [vmem:[#allocation53_spill] sm:$0xff] %v6960_v38  ;;  %7734 = vst [vmem:[#allocation132_spill] sm:$0xff] %v6962_v32  ;;  %4360 = vmatpush3.msra.mxu0 %v3467_v16 }
 0x341   :  { %4394 = vmatprep.subr.mxu1 %v3450_v53  ;;  %4399 = vmatprep.subr.mxu0 %v3671_v30 }
 0x342   :  { %4395 = vmatpush3.msra.mxu1 %v3434_v11 }
 0x343   :  { %4434 = vmatprep.subr.mxu1 %v3775_v56 }
 0x345   :  { %v6964_v1 = vpop.f32.mrf.mxu0  ;;  %v6966_v57 = vpop.f32.mrf.mxu1 }
 0x346   :  { %7735 = vst [vmem:[#allocation70_spill] sm:$0xff] %v6964_v1  ;;  %7736 = vst [vmem:[#allocation133_spill] sm:$0xff] %v6966_v57 }
 0x347   :  { %v6968_v33 = vpop.f32.mrf.mxu0  ;;  %v6970_v63 = vpop.f32.mrf.mxu1 }
 0x348   :  { %7737 = vst [vmem:[#allocation55_spill] sm:$0xff] %v6968_v33  ;;  %7738 = vst [vmem:[#allocation134_spill] sm:$0xff] %v6970_v63 }
 0x34d   :  { %v6972_v40 = vpop.f32.mrf.mxu0 }
 0x34e   :  { %7739 = vst [vmem:[#allocation72_spill] sm:$0xff] %v6972_v40  ;;  %v6974_v20 = vpop.f32.mrf.mxu1 }
 0x34f   :  { %7740 = vst [vmem:[#allocation135_spill] sm:$0xff] %v6974_v20  ;;  %v6976_v8 = vpop.f32.mrf.mxu0 }
 0x350   :  { %7741 = vst [vmem:[#allocation57_spill] sm:$0xff] %v6976_v8  ;;  %v6978_v25 = vpop.f32.mrf.mxu1 }
 0x351   :  { %7742 = vst [vmem:[#allocation136_spill] sm:$0xff] %v6978_v25 }
 0x357   :  { %v6980_v50 = vpop.f32.mrf.mxu0 }
 0x358   :  { %7743 = vst [vmem:[#allocation74_spill] sm:$0xff] %v6980_v50  ;;  %v6982_v37 = vpop.f32.mrf.mxu1 }
 0x359   :  { %7744 = vst [vmem:[#allocation137_spill] sm:$0xff] %v6982_v37  ;;  %v2481_v51 = vpop.f32.mrf.mxu0 }
 0x35a   :  { %v2610_v45 = vpop.f32.mrf.mxu1 }
 0x361   :  { %v2485_v54 = vpop.f32.mrf.mxu0 }
 0x362   :  { %v2614_v27 = vpop.f32.mrf.mxu1 }
 0x363   :  { %v2486_v39 = vpop.f32.mrf.mxu0 }
 0x364   :  { %v2615_v2 = vpop.f32.mrf.mxu1 }
 0x367   :  { %v2683_v14 = vpop.f32.mrf.mxu0 }
 0x368   :  { %v2812_v34 = vpop.f32.mrf.mxu1 }
 0x369   :  { %v2685_v29 = vpop.f32.mrf.mxu0 }
 0x36a   :  { %v2814_v36 = vpop.f32.mrf.mxu1 }
 0x36d   :  { %v2689_v48 = vpop.f32.mrf.mxu0 }
 0x36e   :  { %v2818_v43 = vpop.f32.mrf.mxu1 }
 0x36f   :  { %v2691_v22 = vpop.f32.mrf.mxu0 }
 0x370   :  { %v2820_v53 = vpop.f32.mrf.mxu1 }
 0x373   :  { %v2695_v19 = vpop.f32.mrf.mxu0 }
 0x374   :  { %v2824_v11 = vpop.f32.mrf.mxu1 }
 0x375   :  { %v2697_v26 = vpop.f32.mrf.mxu0 }
 0x376   :  { %v2826_v56 = vpop.f32.mrf.mxu1 }
 0x379   :  { %v2701_v3 = vpop.f32.mrf.mxu0 }
 0x37a   :  { %v2830_v41 = vpop.f32.mrf.mxu1 }
 0x37b   :  { %v2703_v60 = vpop.f32.mrf.mxu0 }
 0x37c   :  { %v2832_v28 = vpop.f32.mrf.mxu1 }
 0x37f   :  { %v2707_v31 = vpop.f32.mrf.mxu0 }
 0x380   :  { %v2836_v59 = vpop.f32.mrf.mxu1 }
 0x381   :  { %v2709_v16 = vpop.f32.mrf.mxu0 }
 0x382   :  { %v2838_v30 = vpop.f32.mrf.mxu1 }
 0x385   :  { %v2713_v54 = vpop.f32.mrf.mxu0 }
 0x386   :  { %v2842_v27 = vpop.f32.mrf.mxu1 }
 0x387   :  { %v2715_v39 = vpop.f32.mrf.mxu0 }
 0x388   :  { %v2844_v2 = vpop.f32.mrf.mxu1 }
 0x38b   :  { %v2719_v37 = vpop.f32.mrf.mxu0 }
 0x38c   :  { %v2848_v50 = vpop.f32.mrf.mxu1 }
 0x38d   :  { %v2721_v25 = vpop.f32.mrf.mxu0 }
 0x38e   :  { %v2850_v8 = vpop.f32.mrf.mxu1 }
 0x391   :  { %v2725_v20 = vpop.f32.mrf.mxu0 }
 0x392   :  { %v6984_v40 = vpop.f32.mrf.mxu1 }
 0x393   :  { %7745 = vst [vmem:[#allocation59_spill] sm:$0xff] %v6984_v40  ;;  %v6986_v63 = vpop.f32.mrf.mxu0 }
 0x394   :  { %7746 = vst [vmem:[#allocation138_spill] sm:$0xff] %v6986_v63  ;;  %v6988_v33 = vpop.f32.mrf.mxu1 }
 0x395   :  { %7747 = vst [vmem:[#allocation76_spill] sm:$0xff] %v6988_v33 }
 0x397   :  { %v6990_v57 = vpop.f32.mrf.mxu0 }
 0x398   :  { %7748 = vst [vmem:[#allocation139_spill] sm:$0xff] %v6990_v57  ;;  %v6992_v1 = vpop.f32.mrf.mxu1 }
 0x399   :  { %7749 = vst [vmem:[#allocation61_spill] sm:$0xff] %v6992_v1  ;;  %v6994_v32 = vpop.f32.mrf.mxu0  ;;  %v7754_v1 = vld [vmem:[#allocation161_spill] sm:$0xff] }
 0x39a   :  { %7750 = vst [vmem:[#allocation140_spill] sm:$0xff] %v6994_v32  ;;  %v6996_v38 = vpop.f32.mrf.mxu1  ;;  %v7755_v9 = vsub.s32 0, %v7754_v1 }
 0x39b   :  { %7751 = vst [vmem:[#allocation78_spill] sm:$0xff] %v6996_v38  ;;  %v2684_v38 = vadd.f32 %v2683_v14, %v6908_v61  ;;  %v2690_v61 = vadd.f32 %v2689_v48, %v6916_v6  ;;  %v2696_v14 = vadd.f32 %v2695_v19, %v6924_v21  ;;  %v7043_v6 = vadd.f32 %v2703_v60, %v6936_v10  ;;  %v7761_v10 = vld [vmem:[#allocation66_spill] sm:$0xff]  ;;  %v7765_v19 = vld [vmem:[#allocation68_spill] sm:$0xff] }
 0x39c   :  { %v7008_v32 = vrot.slane %v3302_v47, %v7755_v9  ;;  %v2815_v9 = vadd.f32 %v2814_v36, %v6914_v49  ;;  %v7040_v49 = vadd.f32 %v2830_v41, %v6934_v0  ;;  %v7052_v21 = vadd.f32 %v2836_v59, %v6942_v7  ;;  %v7767_v41 = vld [vmem:[#allocation53_spill] sm:$0xff] }
 0x39d   :  { %v6998_v24 = vpop.f32.mrf.mxu0  ;;  %v7079_v60 = vadd.f32 %v2721_v25, %v7767_v41 }
 0x39e   :  { %7752 = vst [vmem:[#allocation141_spill] sm:$0xff] %v6998_v24  ;;  %v7000_v46 = vpop.f32.mrf.mxu1  ;;  %v7756_v24 = vsub.s32 2, %v7754_v1 }
 0x39f   :  { %7753 = vst [vmem:[#allocation63_spill] sm:$0xff] %v7000_v46  ;;  %v2739_v52 = vpop.f32.mrf.mxu0 }
 0x3a0   :  { %v7002_v58 = vadd.f32 %v2739_v52, %v2481_v51  ;;  %v2868_v40 = vpop.f32.mrf.mxu1  ;;  %v7013_v46 = vrot.slane %v3302_v47, %v7756_v24  ;;  %v7757_v52 = vsub.s32 1, %v7754_v1  ;;  %v2692_v24 = vadd.f32 %v2691_v22, %v6920_v42  ;;  %v7764_v22 = vld [vmem:[#allocation130_spill] sm:$0xff] }
 0x3a1   :  { %v7004_v5 = vadd.f32 %v2868_v40, %v2610_v45  ;;  %v2819_v40 = vadd.f32 %v2818_v43, %v6918_v15  ;;  %v2821_v45 = vadd.f32 %v2820_v53, %v6922_v12  ;;  %v7046_v15 = vadd.f32 %v2832_v28, %v6938_v17  ;;  %v7762_v17 = vld [vmem:[#allocation129_spill] sm:$0xff] }
 0x3a2   :  { %v7017_v51 = vrot.slane %v3302_v47, %v7757_v52  ;;  %v7049_v42 = vadd.f32 %v2707_v31, %v6940_v44  ;;  %v7064_v36 = vadd.f32 %v2842_v27, %v7762_v17  ;;  %v7763_v44 = vld [vmem:[#allocation51_spill] sm:$0xff]  ;;  %v7070_v53 = vadd.f32 %v2844_v2, %v7764_v22  ;;  %v7769_v27 = vld [vmem:[#allocation70_spill] sm:$0xff]  ;;  %v7770_v52 = vld [vmem:[#allocation133_spill] sm:$0xff] }
 0x3a3   :  { %v2743_v63 = vpop.f32.mrf.mxu0  ;;  %v7067_v48 = vadd.f32 %v2715_v39, %v7763_v44 }
 0x3a4   :  { %v2872_v33 = vpop.f32.mrf.mxu1  ;;  %v7758_v63 = vsub.s32 3, %v7754_v1  ;;  %v2825_v1 = vadd.f32 %v2824_v11, %v6926_v23  ;;  %v7759_v23 = vld [vmem:[#allocation49_spill] sm:$0xff]  ;;  %v7073_v11 = vadd.f32 %v2719_v37, %v7765_v19  ;;  %v7087_v37 = vadd.f32 %v2725_v20, %v7769_v27 }
 0x3a5   :  { %v2744_v4 = vpop.f32.mrf.mxu0 }
 0x3a6   :  { %v2873_v57 = vpop.f32.mrf.mxu1  ;;  %v7021_v33 = vrot.slane %v3302_v47, %v7758_v63  ;;  %v2813_v4 = vadd.f32 %v2812_v34, %v6910_v13  ;;  %v2698_v47 = vadd.f32 %v2697_v26, %v6928_v18  ;;  %v7034_v13 = vadd.f32 %v2826_v56, %v6930_v55  ;;  %v7760_v55 = vld [vmem:[#allocation128_spill] sm:$0xff]  ;;  %v7766_v26 = vld [vmem:[#allocation131_spill] sm:$0xff] }
 0x3a7   :  { %v2686_v57 = vadd.f32 %v2685_v29, %v6912_v62  ;;  %v7037_v62 = vadd.f32 %v2701_v3, %v6932_v35  ;;  %v7055_v18 = vadd.f32 %v2709_v16, %v7759_v23  ;;  %v7058_v35 = vadd.f32 %v2838_v30, %v7760_v55  ;;  %v7768_v30 = vld [vmem:[#allocation132_spill] sm:$0xff]  ;;  %v7771_v63 = vld [vmem:[#allocation59_spill] sm:$0xff]  ;;  %v7774_v55 = vld [vmem:[#allocation134_spill] sm:$0xff] }
 0x3a8   :  { %v7061_v29 = vadd.f32 %v2713_v54, %v7761_v10  ;;  %v7084_v54 = vadd.f32 %v2850_v8, %v7768_v30  ;;  %v7092_v25 = vadd.f32 %v7771_v63, %v7770_v52  ;;  %v7777_v10 = vld [vmem:[#allocation139_spill] sm:$0xff] }
 0x3bc   :  { %v3070_v12 = vpop.f32.mrf.mxu0 }
 0x3bd   :  { %v3262_v0 = vadd.f32 %v3070_v12, %v2684_v38  ;;  %v3199_v34 = vpop.f32.mrf.mxu1  ;;  %v7076_v38 = vadd.f32 %v2848_v50, %v7766_v26 }
 0x3be   :  { %v3264_v43 = vadd.f32 %v3199_v34, %v2813_v4  ;;  %v3072_v7 = vpop.f32.mrf.mxu0  ;;  %v7772_v4 = vld [vmem:[#allocation55_spill] sm:$0xff]  ;;  %v7776_v34 = vld [vmem:[#allocation72_spill] sm:$0xff] }
 0x3bf   :  { %v3263_v56 = vadd.f32 %v3072_v7, %v2686_v57  ;;  %v3201_v3 = vpop.f32.mrf.mxu1  ;;  %v3324_v28 = vadd.f32 %v7008_v32, %v3262_v0  ;;  %v7773_v57 = vld [vmem:[#allocation138_spill] sm:$0xff]  ;;  %v7775_v0 = vld [vmem:[#allocation76_spill] sm:$0xff] }
 0x3c0   :  { %v3326_v31 = vadd.f32 %v7013_v46, %v3264_v43  ;;  %v3265_v59 = vadd.f32 %v3201_v3, %v2815_v9  ;;  %v3076_v16 = vpop.f32.mrf.mxu0  ;;  %v7096_v12 = vadd.f32 %v7773_v57, %v7772_v4  ;;  %v7101_v20 = vadd.f32 %v7775_v0, %v7774_v55  ;;  %v7780_v0 = vld [vmem:[#allocation57_spill] sm:$0xff] }
 0x3c1   :  { %v3325_v50 = vadd.f32 %v7017_v51, %v3263_v56  ;;  %v3266_v39 = vadd.f32 %v3076_v16, %v2690_v61  ;;  %v3205_v2 = vpop.f32.mrf.mxu1  ;;  %v7105_v61 = vadd.f32 %v7777_v10, %v7776_v34  ;;  %v3364_v7 = vmax.f32 %v3324_v28, 0.0 }
 0x3c2   :  { %v3327_v9 = vadd.f32 %v7021_v33, %v3265_v59  ;;  %v3268_v23 = vadd.f32 %v3205_v2, %v2819_v40  ;;  %v3078_v8 = vpop.f32.mrf.mxu0  ;;  %v3366_v22 = vmax.f32 %v3326_v31, 0.0 }
 0x3c3   :  { %v3328_v17 = vadd.f32 %v7008_v32, %v3266_v39  ;;  %v3267_v44 = vadd.f32 %v3078_v8, %v2692_v24  ;;  %v3207_v43 = vpop.f32.mrf.mxu1  ;;  %v3365_v40 = vmax.f32 %v3325_v50, 0.0  ;;  %v7778_v8 = vld [vmem:[#allocation135_spill] sm:$0xff] }
 0x3c4   :  { %v3330_v19 = vadd.f32 %v7013_v46, %v3268_v23  ;;  %v3269_v26 = vadd.f32 %v3207_v43, %v2821_v45  ;;  %v3082_v56 = vpop.f32.mrf.mxu0  ;;  %v3367_v30 = vmax.f32 %v3327_v9, 0.0  ;;  %v7779_v9 = vld [vmem:[#allocation61_spill] sm:$0xff] }
 0x3c5   :  { %v3368_v3 = vmax.f32 %v3328_v17, 0.0  ;;  %v3329_v41 = vadd.f32 %v7017_v51, %v3267_v44  ;;  %v3270_v59 = vadd.f32 %v3082_v56, %v2696_v14  ;;  %v3211_v16 = vpop.f32.mrf.mxu1  ;;  %v7116_v55 = vadd.f32 %v7779_v9, %v7778_v8 }
 0x3c6   :  { %v3370_v27 = vmax.f32 %v3330_v19, 0.0  ;;  %v3331_v2 = vadd.f32 %v7021_v33, %v3269_v26  ;;  %v3272_v52 = vadd.f32 %v3211_v16, %v2825_v1  ;;  %v3084_v39 = vpop.f32.mrf.mxu0  ;;  %v7781_v1 = vld [vmem:[#allocation140_spill] sm:$0xff]  ;;  %v7783_v26 = vld [vmem:[#allocation78_spill] sm:$0xff] }
 0x3c7   :  { %v3404_v24 = vmax.f32 %v3364_v7, %v3368_v3  ;;  %v3369_v63 = vmax.f32 %v3329_v41, 0.0  ;;  %v3332_v28 = vadd.f32 %v7008_v32, %v3270_v59  ;;  %v3271_v31 = vadd.f32 %v3084_v39, %v2698_v47  ;;  %v3213_v4 = vpop.f32.mrf.mxu1  ;;  %v7782_v19 = vld [vmem:[#allocation136_spill] sm:$0xff] }
 0x3c8   :  { %v3406_v45 = vmax.f32 %v3366_v22, %v3370_v27  ;;  %v3371_v57 = vmax.f32 %v3331_v2, 0.0  ;;  %v3334_v50 = vadd.f32 %v7013_v46, %v3272_v52  ;;  %v3273_v23 = vadd.f32 %v3213_v4, %v7034_v13  ;;  %v3088_v14 = vpop.f32.mrf.mxu0  ;;  %v3759_v4 = vld [vmem:[#allocation9 + $0x378] sm:$0xff] }
 0x3c9   :  { %v7120_v34 = vadd.f32 %v7781_v1, %v7780_v0  ;;  %v3405_v10 = vmax.f32 %v3365_v40, %v3369_v63  ;;  %v3274_v17 = vadd.f32 %v3088_v14, %v7037_v62  ;;  %v3217_v47 = vpop.f32.mrf.mxu1  ;;  %v3333_v7 = vadd.f32 %v7017_v51, %v3271_v31 }
 0x3ca   :  { %v3408_v44 = vmax.f32 %v3404_v24, %v3406_v45  ;;  %v3407_v43 = vmax.f32 %v3367_v30, %v3371_v57  ;;  %v3335_v22 = vadd.f32 %v7021_v33, %v3273_v23  ;;  %v3090_v13 = vpop.f32.mrf.mxu0  ;;  %v7127_v56 = vadd.f32 %v7783_v26, %v7782_v19 }
 0x3cb   :  { %v3336_v3 = vadd.f32 %v7008_v32, %v3274_v17  ;;  %v3276_v41 = vadd.f32 %v3217_v47, %v7040_v49  ;;  %v3275_v40 = vadd.f32 %v3090_v13, %v7043_v6  ;;  %v3219_v59 = vpop.f32.mrf.mxu1  ;;  %v3372_v62 = vmax.f32 %v3332_v28, 0.0  ;;  %v3773_v47 = vld [vmem:[#allocation9 + $0x3e8] sm:$0xff] }
 0x3cc   :  { %v3374_v16 = vmax.f32 %v3334_v50, 0.0  ;;  %v3277_v30 = vadd.f32 %v3219_v59, %v7046_v15  ;;  %v3094_v27 = vpop.f32.mrf.mxu0  ;;  %v3409_v2 = vmax.f32 %v3405_v10, %v3407_v43  ;;  %v3373_v45 = vmax.f32 %v3333_v7, 0.0  ;;  %v3774_v15 = vld [vmem:[#allocation9 + $0x3f0] sm:$0xff] }
 0x3cd   :  { %v3376_v52 = vmax.f32 %v3336_v3, 0.0  ;;  %v3338_v39 = vadd.f32 %v7013_v46, %v3276_v41  ;;  %v3337_v24 = vadd.f32 %v7017_v51, %v3275_v40  ;;  %v3278_v63 = vadd.f32 %v3094_v27, %v7049_v42  ;;  %v3223_v31 = vpop.f32.mrf.mxu1  ;;  %v3758_v42 = vld [vmem:[#allocation9 + $0x370] sm:$0xff]  ;;  %v3757_v3 = vld [vmem:[#allocation9 + $0x368] sm:$0xff]  ;;  %v7787_v40 = vld [vmem:[#allocation63_spill] sm:$0xff] }
 0x3ce   :  { %v3375_v49 = vmax.f32 %v3335_v22, 0.0  ;;  %v3339_v6 = vadd.f32 %v7021_v33, %v3277_v30  ;;  %v3280_v28 = vadd.f32 %v3223_v31, %v7052_v21  ;;  %3633 = vmatprep.mubr.f32.mxu1 %v3409_v2  ;;  %v3096_v57 = vpop.f32.mrf.mxu0  ;;  %v7784_v43 = vld [vmem:[#allocation74_spill] sm:$0xff]  ;;  %v7785_v7 = vld [vmem:[#allocation141_spill] sm:$0xff]  ;;  %v3772_v27 = vld [vmem:[#allocation9 + $0x3e0] sm:$0xff] }
 0x3cf   :  { %v7138_v50 = vmax.f32 %v3372_v62, %v3376_v52  ;;  %v3378_v23 = vmax.f32 %v3338_v39, 0.0  ;;  %v3377_v14 = vmax.f32 %v3337_v24, 0.0  ;;  %v3340_v8 = vadd.f32 %v7008_v32, %v3278_v63  ;;  %v3225_v9 = vpop.f32.mrf.mxu1  ;;  %3634 = vmatmul.mubr.f32.vlgmr.msra.gmra.mxu1 %v3408_v44  ;;  %v7786_v41 = vld [vmem:[#allocation137_spill] sm:$0xff]  ;;  %v3756_v24 = vld [vmem:[#allocation9 + $0x360] sm:$0xff] }
 0x3d0   :  { %v3379_v0 = vmax.f32 %v3339_v6, 0.0  ;;  %v7142_v1 = vadd.f32 %v7013_v46, %v3280_v28  ;;  %v3279_v10 = vadd.f32 %v3096_v57, %v7055_v18  ;;  %v3281_v21 = vadd.f32 %v3225_v9, %v7058_v35  ;;  %4435 = vmatpush3.msra.mxu1 %v3759_v4  ;;  %v3100_v17 = vpop.f32.mrf.mxu0  ;;  %v3771_v6 = vld [vmem:[#allocation9 + $0x3d8] sm:$0xff] }
 0x3d1   :  { %v7148_v22 = vadd.f32 %v7785_v7, %v7784_v43  ;;  %v3412_v13 = vmax.f32 %v3374_v16, %v3378_v23  ;;  %v3411_v19 = vmax.f32 %v3373_v45, %v3377_v14  ;;  %4436 = vmatprep.subr.mxu1 %v3774_v15  ;;  %v3282_v44 = vadd.f32 %v3100_v17, %v7061_v29  ;;  %v3229_v26 = vpop.f32.mrf.mxu1  ;;  %v3755_v23 = vld [vmem:[#allocation9 + $0x358] sm:$0xff]  ;;  %v3654_v43 = vld [vmem:[#allocation9 + $0x270] sm:$0xff] }
 0x3d2   :  { %v7153_v59 = vadd.f32 %v7787_v40, %v7786_v41  ;;  %v3413_v18 = vmax.f32 %v3375_v49, %v3379_v0  ;;  %v3341_v35 = vadd.f32 %v7017_v51, %v3279_v10  ;;  %v3343_v62 = vadd.f32 %v7021_v33, %v3281_v21  ;;  %4437 = vmatpush3.msra.mxu1 %v3758_v42  ;;  %v3102_v30 = vpop.f32.mrf.mxu0  ;;  %v3670_v0 = vld [vmem:[#allocation9 + $0x2f0] sm:$0xff]  ;;  %v3769_v41 = vld [vmem:[#allocation9 + $0x3c8] sm:$0xff] }
 0x3d3   :  { %v3414_v16 = vmax.f32 %v7138_v50, %v3412_v13  ;;  %v3344_v2 = vadd.f32 %v7008_v32, %v3282_v44  ;;  %v3284_v29 = vadd.f32 %v3229_v26, %v7064_v36  ;;  %4438 = vmatprep.subr.mxu1 %v3773_v47  ;;  %v3283_v52 = vadd.f32 %v3102_v30, %v7067_v48  ;;  %v3231_v39 = vpop.f32.mrf.mxu1  ;;  %v3655_v50 = vld [vmem:[#allocation9 + $0x278] sm:$0xff]  ;;  %v3754_v7 = vld [vmem:[#allocation9 + $0x350] sm:$0xff]  ;;  %v3653_v30 = vld [vmem:[#allocation9 + $0x268] sm:$0xff] }
 0x3d4   :  { %v3380_v63 = vmax.f32 %v3340_v8, 0.0  ;;  %v3382_v31 = vmax.f32 %v7142_v1, 0.0  ;;  %v3285_v4 = vadd.f32 %v3231_v39, %v7070_v53  ;;  %4439 = vmatpush3.msra.mxu1 %v3757_v3  ;;  %v3106_v45 = vpop.f32.mrf.mxu0  ;;  %v3415_v49 = vmax.f32 %v3411_v19, %v3413_v18  ;;  %v3770_v1 = vld [vmem:[#allocation9 + $0x3d0] sm:$0xff]  ;;  %v3669_v3 = vld [vmem:[#allocation9 + $0x2e8] sm:$0xff] }
 0x3d5   :  { %v3384_v28 = vmax.f32 %v3344_v2, 0.0  ;;  %v3346_v57 = vadd.f32 %v7013_v46, %v3284_v29  ;;  %v3345_v15 = vadd.f32 %v7017_v51, %v3283_v52  ;;  %4440 = vmatprep.subr.mxu1 %v3772_v27  ;;  %v3286_v36 = vadd.f32 %v3106_v45, %v7073_v11  ;;  %v3235_v48 = vpop.f32.mrf.mxu1  ;;  %v3753_v27 = vld [vmem:[#allocation9 + $0x348] sm:$0xff]  ;;  %v3668_v29 = vld [vmem:[#allocation9 + $0x2e0] sm:$0xff] }
 0x3d6   :  { %v3381_v14 = vmax.f32 %v3341_v35, 0.0  ;;  %v3383_v8 = vmax.f32 %v3343_v62, 0.0  ;;  %v3347_v9 = vadd.f32 %v7021_v33, %v3285_v4  ;;  %v3288_v53 = vadd.f32 %v3235_v48, %v7076_v38  ;;  %4441 = vmatpush3.msra.mxu1 %v3756_v24  ;;  %3563 = vmatprep.mubr.f32.mxu0 %v3415_v49  ;;  %v3108_v42 = vpop.f32.mrf.mxu0  ;;  %v3768_v52 = vld [vmem:[#allocation9 + $0x3c0] sm:$0xff] }
 0x3d7   :  { %v7168_v10 = vmax.f32 %v3380_v63, %v3384_v28  ;;  %v3386_v21 = vmax.f32 %v3346_v57, 0.0  ;;  %v3385_v17 = vmax.f32 %v3345_v15, 0.0  ;;  %v7171_v11 = vadd.f32 %v7008_v32, %v3286_v36  ;;  %4442 = vmatprep.subr.mxu1 %v3771_v6  ;;  %v3237_v47 = vpop.f32.mrf.mxu1  ;;  %3564 = vmatmul.mubr.f32.vlgmr.msra.gmra.mxu0 %v3414_v16  ;;  %v3652_v4 = vld [vmem:[#allocation9 + $0x260] sm:$0xff]  ;;  %v3667_v36 = vld [vmem:[#allocation9 + $0x2d8] sm:$0xff] }
 0x3d8   :  { %v3387_v13 = vmax.f32 %v3347_v9, 0.0  ;;  %v7174_v38 = vadd.f32 %v7013_v46, %v3288_v53  ;;  %v3287_v19 = vadd.f32 %v3108_v42, %v7079_v60  ;;  %v3289_v44 = vadd.f32 %v3237_v47, %v7084_v54  ;;  %4400 = vmatpush3.msra.mxu0 %v3655_v50  ;;  %4443 = vmatpush3.msra.mxu1 %v3755_v23  ;;  %v3112_v26 = vpop.f32.mrf.mxu0  ;;  %v3752_v45 = vld [vmem:[#allocation9 + $0x340] sm:$0xff]  ;;  %v3651_v9 = vld [vmem:[#allocation9 + $0x258] sm:$0xff] }
 0x3d9   :  { %v7178_v40 = vmax.f32 %v3382_v31, %v3386_v21  ;;  %v3417_v18 = vmax.f32 %v3381_v14, %v3385_v17  ;;  %4401 = vmatprep.subr.mxu0 %v3670_v0  ;;  %4444 = vmatprep.subr.mxu1 %v3770_v1  ;;  %v3290_v35 = vadd.f32 %v3112_v26, %v7087_v37  ;;  %v3241_v62 = vpop.f32.mrf.mxu1  ;;  %v3388_v37 = vmax.f32 %v7171_v11, 0.0  ;;  %v3751_v1 = vld [vmem:[#allocation9 + $0x338] sm:$0xff]  ;;  %v3666_v21 = vld [vmem:[#allocation9 + $0x2d0] sm:$0xff] }
 0x3da   :  { %v3419_v16 = vmax.f32 %v3383_v8, %v3387_v13  ;;  %v7182_v60 = vadd.f32 %v7017_v51, %v3287_v19  ;;  %v7185_v54 = vadd.f32 %v7021_v33, %v3289_v44  ;;  %4402 = vmatpush3.msra.mxu0 %v3654_v43  ;;  %4445 = vmatpush3.msra.mxu1 %v3754_v7  ;;  %v3114_v2 = vpop.f32.mrf.mxu0  ;;  %v3390_v49 = vmax.f32 %v7174_v38, 0.0  ;;  %v3767_v8 = vld [vmem:[#allocation9 + $0x3b8] sm:$0xff]  ;;  %v3766_v7 = vld [vmem:[#allocation9 + $0x3b0] sm:$0xff] }
 0x3db   :  { %v3420_v39 = vmax.f32 %v7168_v10, %v7178_v40  ;;  %v3352_v24 = vadd.f32 %v7008_v32, %v3290_v35  ;;  %v3292_v63 = vadd.f32 %v3241_v62, %v7092_v25  ;;  %4403 = vmatprep.subr.mxu0 %v3669_v3  ;;  %4446 = vmatprep.subr.mxu1 %v3769_v41  ;;  %v3243_v31 = vpop.f32.mrf.mxu1  ;;  %v3650_v13 = vld [vmem:[#allocation9 + $0x250] sm:$0xff]  ;;  %v3665_v41 = vld [vmem:[#allocation9 + $0x2c8] sm:$0xff] }
 0x3dc   :  { %v3389_v6 = vmax.f32 %v7182_v60, 0.0  ;;  %v3291_v28 = vadd.f32 %v3114_v2, %v7096_v12  ;;  %v3293_v57 = vadd.f32 %v3243_v31, %v7101_v20  ;;  %4404 = vmatpush3.msra.mxu0 %v3653_v30  ;;  %4447 = vmatpush3.msra.mxu1 %v3753_v27  ;;  %v3118_v15 = vpop.f32.mrf.mxu0  ;;  %v3421_v14 = vmax.f32 %v3417_v18, %v3419_v16  ;;  %v3750_v3 = vld [vmem:[#allocation9 + $0x330] sm:$0xff]  ;;  %v3765_v30 = vld [vmem:[#allocation9 + $0x3a8] sm:$0xff]  ;;  %v3648_v31 = vld [vmem:[#allocation9 + $0x240] sm:$0xff] }
 0x3dd   :  { %v3392_v48 = vmax.f32 %v3352_v24, 0.0  ;;  %v3354_v25 = vadd.f32 %v7013_v46, %v3292_v63  ;;  %4405 = vmatprep.subr.mxu0 %v3668_v29  ;;  %4448 = vmatprep.subr.mxu1 %v3768_v52  ;;  %v3294_v50 = vadd.f32 %v3118_v15, %v7105_v61  ;;  %v3247_v23 = vpop.f32.mrf.mxu1  ;;  %v3391_v53 = vmax.f32 %v7185_v54, 0.0  ;;  %v3649_v27 = vld [vmem:[#allocation9 + $0x248] sm:$0xff]  ;;  %v3664_v29 = vld [vmem:[#allocation9 + $0x2c0] sm:$0xff]  ;;  %v3858_v10 = vld [vmem:[#allocation9 + $0x450] sm:$0xff] }
 0x3de   :  { %v3353_v12 = vadd.f32 %v7017_v51, %v3291_v28  ;;  %v3355_v20 = vadd.f32 %v7021_v33, %v3293_v57  ;;  %v3296_v42 = vadd.f32 %v3247_v23, %v7116_v55  ;;  %4406 = vmatpush3.msra.mxu0 %v3652_v4  ;;  %4449 = vmatpush3.msra.mxu1 %v3752_v45  ;;  %v3120_v0 = vpop.f32.mrf.mxu0  ;;  %v3749_v2 = vld [vmem:[#allocation9 + $0x328] sm:$0xff]  ;;  %v3764_v63 = vld [vmem:[#allocation9 + $0x3a0] sm:$0xff]  ;;  %v3663_v28 = vld [vmem:[#allocation9 + $0x2b8] sm:$0xff] }
 0x3df   :  { %v7202_v17 = vmax.f32 %v3388_v37, %v3392_v48  ;;  %v3394_v61 = vmax.f32 %v3354_v25, 0.0  ;;  %v7205_v11 = vadd.f32 %v7008_v32, %v3294_v50  ;;  %4407 = vmatprep.subr.mxu0 %v3667_v36  ;;  %3736 = vmatprep.mubr.f32.mxu0 %v3421_v14  ;;  %v3295_v47 = vadd.f32 %v3120_v0, %v7120_v34  ;;  %v3249_v43 = vpop.f32.mrf.mxu1  ;;  %v3763_v48 = vld [vmem:[#allocation9 + $0x398] sm:$0xff]  ;;  %v3646_v0 = vld [vmem:[#allocation9 + $0x230] sm:$0xff]  ;;  %v3873_v40 = vld [vmem:[#allocation9 + $0x4c8] sm:$0xff] }
 0x3e0   :  { %v3393_v38 = vmax.f32 %v3353_v12, 0.0  ;;  %v3395_v55 = vmax.f32 %v3355_v20, 0.0  ;;  %v7209_v19 = vadd.f32 %v7013_v46, %v3296_v42  ;;  %4450 = vmatprep.subr.mxu1 %v3767_v8  ;;  %v3297_v44 = vadd.f32 %v3249_v43, %v7127_v56  ;;  %4408 = vmatpush3.msra.mxu0 %v3651_v9  ;;  %v3124_v26 = vpop.f32.mrf.mxu0  ;;  %v3647_v50 = vld [vmem:[#allocation9 + $0x238] sm:$0xff]  ;;  %v3762_v12 = vld [vmem:[#allocation9 + $0x390] sm:$0xff] }
 0x3e1   :  { %v7212_v18 = vmax.f32 %v3390_v49, %v3394_v61  ;;  %v7215_v35 = vadd.f32 %v7017_v51, %v3295_v47  ;;  %4451 = vmatpush3.msra.mxu1 %v3751_v1  ;;  %4409 = vmatprep.subr.mxu0 %v3666_v21  ;;  %v3298_v34 = vadd.f32 %v3124_v26, %v7148_v22  ;;  %v3253_v62 = vpop.f32.mrf.mxu1  ;;  %v3396_v15 = vmax.f32 %v7205_v11, 0.0  ;;  %v3747_v23 = vld [vmem:[#allocation9 + $0x318] sm:$0xff]  ;;  %v3746_v1 = vld [vmem:[#allocation9 + $0x310] sm:$0xff]  ;;  %v3661_v61 = vld [vmem:[#allocation9 + $0x2a8] sm:$0xff] }
 0x3e2   :  { %v3423_v16 = vmax.f32 %v3389_v6, %v3393_v38  ;;  %v3425_v60 = vmax.f32 %v3391_v53, %v3395_v55  ;;  %v3359_v56 = vadd.f32 %v7021_v33, %v3297_v44  ;;  %4452 = vmatprep.subr.mxu1 %v3766_v7  ;;  %4410 = vmatpush3.msra.mxu0 %v3650_v13  ;;  %v3126_v54 = vpop.f32.mrf.mxu0  ;;  %v3748_v6 = vld [vmem:[#allocation9 + $0x320] sm:$0xff]  ;;  %v3398_v14 = vmax.f32 %v7209_v19, 0.0  ;;  %v3662_v53 = vld [vmem:[#allocation9 + $0x2b0] sm:$0xff]  ;;  %v3761_v11 = vld [vmem:[#allocation9 + $0x388] sm:$0xff] }
 0x3e3   :  { %v3426_v52 = vmax.f32 %v7202_v17, %v7212_v18  ;;  %v3360_v37 = vadd.f32 %v7008_v32, %v3298_v34  ;;  %v3300_v24 = vadd.f32 %v3253_v62, %v7153_v59  ;;  %4453 = vmatpush3.msra.mxu1 %v3750_v3  ;;  %4411 = vmatprep.subr.mxu0 %v3665_v41  ;;  %v3255_v22 = vpop.f32.mrf.mxu1  ;;  %v3397_v20 = vmax.f32 %v7215_v35, 0.0  ;;  %v3645_v7 = vld [vmem:[#allocation9 + $0x228] sm:$0xff]  ;;  %v3660_v55 = vld [vmem:[#allocation9 + $0x2a0] sm:$0xff]  ;;  %v3659_v41 = vld [vmem:[#allocation9 + $0x298] sm:$0xff] }
 0x3e4   :  { %4454 = vmatprep.subr.mxu1 %v3765_v30  ;;  %v3299_v4 = vadd.f32 %v3126_v54, %v7002_v58  ;;  %v3301_v45 = vadd.f32 %v3255_v22, %v7004_v5  ;;  %4412 = vmatpush3.msra.mxu0 %v3649_v27  ;;  %v3130_v49 = vpop.f32.mrf.mxu0  ;;  %v3427_v57 = vmax.f32 %v3423_v16, %v3425_v60  ;;  %v3745_v13 = vld [vmem:[#allocation9 + $0x308] sm:$0xff]  ;;  %v3760_v19 = vld [vmem:[#allocation9 + $0x380] sm:$0xff]  ;;  %v3643_v35 = vld [vmem:[#allocation9 + $0x218] sm:$0xff]  ;;  %v7788_v27 = vmov 0.0  }
 0x3e5   :  { %v3400_v32 = vmax.f32 %v3360_v37, 0.0  ;;  %v3362_v59 = vadd.f32 %v7013_v46, %v3300_v24  ;;  %4455 = vmatpush3.msra.mxu1 %v3749_v2  ;;  %4413 = vmatprep.subr.mxu0 %v3664_v29  ;;  %v3259_v36 = vpop.f32.mrf.mxu1  ;;  %v3644_v44 = vld [vmem:[#allocation9 + $0x220] sm:$0xff]  ;;  %v3658_v34 = vld [vmem:[#allocation9 + $0x290] sm:$0xff]  ;;  %v3657_v30 = vld [vmem:[#allocation9 + $0x288] sm:$0xff] }
 0x3e6   :  { %v3361_v25 = vadd.f32 %v7017_v51, %v3299_v4  ;;  %v3363_v58 = vadd.f32 %v7021_v33, %v3301_v45  ;;  %4456 = vmatprep.subr.mxu1 %v3764_v63  ;;  %4414 = vmatpush3.msra.mxu0 %v3648_v31  ;;  %v3131_v5 = vpop.f32.mrf.mxu0  ;;  %v3399_v51 = vmax.f32 %v3359_v56, 0.0  ;;  %v3744_v26 = vld [vmem:[#allocation9 + $0x300] sm:$0xff]  ;;  %v3642_v62 = vld [vmem:[#allocation9 + $0x210] sm:$0xff]  ;;  %v3641_v16 = vld [vmem:[#allocation9 + $0x208] sm:$0xff] }
 0x3e7   :  { %v7230_v8 = vmax.f32 %v3396_v15, %v3400_v32  ;;  %v3402_v9 = vmax.f32 %v3362_v59, 0.0  ;;  %4457 = vmatpush3.msra.mxu1 %v3748_v6  ;;  %4415 = vmatprep.subr.mxu0 %v3663_v28  ;;  %v3260_v46 = vpop.f32.mrf.mxu1  ;;  %v3656_v60 = vld [vmem:[#allocation9 + $0x280] sm:$0xff]  ;;  %v3879_v54 = vld [vmem:[#allocation9 + $0x4f8] sm:$0xff]  ;;  %v3878_v29 = vld [vmem:[#allocation9 + $0x4f0] sm:$0xff] }
 0x3e8   :  { %v3401_v42 = vmax.f32 %v3361_v25, 0.0  ;;  %v3403_v33 = vmax.f32 %v3363_v58, 0.0  ;;  %4458 = vmatprep.subr.mxu1 %v3763_v48  ;;  %3840 = vmatprep.mubr.f32.mxu1 %v3427_v57  ;;  %v3640_v56 = vld [vmem:[#allocation9 + $0x200] sm:$0xff]  ;;  %v3863_v2 = vld [vmem:[#allocation9 + $0x478] sm:$0xff]  ;;  %v3862_v17 = vld [vmem:[#allocation9 + $0x470] sm:$0xff] }
 0x3e9   :  { %v7233_v21 = vmax.f32 %v3398_v14, %v3402_v9  ;;  %4416 = vmatpush3.msra.mxu0 %v3647_v50  ;;  %4459 = vmatpush3.msra.mxu1 %v3747_v23  ;;  %v3877_v18 = vld [vmem:[#allocation9 + $0x4e8] sm:$0xff]  ;;  %v3876_v37 = vld [vmem:[#allocation9 + $0x4e0] sm:$0xff]  ;;  %v3875_v22 = vld [vmem:[#allocation9 + $0x4d8] sm:$0xff] }
 0x3ea   :  { %v3429_v47 = vmax.f32 %v3397_v20, %v3401_v42  ;;  %v3431_v43 = vmax.f32 %v3399_v51, %v3403_v33  ;;  %4417 = vmatprep.subr.mxu0 %v3662_v53  ;;  %4460 = vmatprep.subr.mxu1 %v3762_v12  ;;  %v3860_v24 = vld [vmem:[#allocation9 + $0x460] sm:$0xff]  ;;  %v3859_v63 = vld [vmem:[#allocation9 + $0x458] sm:$0xff]  ;;  %v3874_v31 = vld [vmem:[#allocation9 + $0x4d0] sm:$0xff] }
 0x3eb   :  { %v3432_v38 = vmax.f32 %v7230_v8, %v7233_v21  ;;  %4418 = vmatpush3.msra.mxu0 %v3646_v0  ;;  %4461 = vmatpush3.msra.mxu1 %v3746_v1  ;;  %v3872_v4 = vld [vmem:[#allocation9 + $0x4c0] sm:$0xff]  ;;  %v3871_v49 = vld [vmem:[#allocation9 + $0x4b8] sm:$0xff]  ;;  %v3870_v28 = vld [vmem:[#allocation9 + $0x4b0] sm:$0xff] }
 0x3ec   :  { %4419 = vmatprep.subr.mxu0 %v3661_v61  ;;  %4462 = vmatprep.subr.mxu1 %v3761_v11  ;;  %v3433_v3 = vmax.f32 %v3429_v47, %v3431_v43  ;;  %v3856_v45 = vld [vmem:[#allocation9 + $0x440] sm:$0xff]  ;;  %v3855_v6 = vld [vmem:[#allocation9 + $0x438] sm:$0xff]  ;;  %v3854_v57 = vld [vmem:[#allocation9 + $0x430] sm:$0xff] }
 0x3ed   :  { %4420 = vmatpush3.msra.mxu0 %v3645_v7  ;;  %4463 = vmatpush3.msra.mxu1 %v3745_v13  ;;  %v3869_v15 = vld [vmem:[#allocation9 + $0x4a8] sm:$0xff]  ;;  %v3868_v59 = vld [vmem:[#allocation9 + $0x4a0] sm:$0xff]  ;;  %v3867_v48 = vld [vmem:[#allocation9 + $0x498] sm:$0xff] }
 0x3ee   :  { %4421 = vmatprep.subr.mxu0 %v3660_v55  ;;  %4464 = vmatprep.subr.mxu1 %v3760_v19  ;;  %v3853_v32 = vld [vmem:[#allocation9 + $0x428] sm:$0xff]  ;;  %v3852_v36 = vld [vmem:[#allocation9 + $0x420] sm:$0xff]  ;;  %v3851_v25 = vld [vmem:[#allocation9 + $0x418] sm:$0xff] }
 0x3ef   :  { %4422 = vmatpush3.msra.mxu0 %v3644_v44  ;;  %4465 = vmatpush3.msra.mxu1 %v3744_v26  ;;  %v3866_v58 = vld [vmem:[#allocation9 + $0x490] sm:$0xff]  ;;  %v3865_v50 = vld [vmem:[#allocation9 + $0x488] sm:$0xff]  ;;  %v3864_v14 = vld [vmem:[#allocation9 + $0x480] sm:$0xff] }
 0x3f0   :  { %4423 = vmatprep.subr.mxu0 %v3659_v41  ;;  %3841 = vmatmul.mubr.f32.vlgmr.msra.gmra.mxu1 %v3426_v52  ;;  %v3861_v52 = vld [vmem:[#allocation9 + $0x468] sm:$0xff]  ;;  %v3850_v5 = vld [vmem:[#allocation9 + $0x410] sm:$0xff]  ;;  %v3848_v9 = vld [vmem:[#allocation9 + $0x400] sm:$0xff] }
 0x3f1   :  { %4424 = vmatpush3.msra.mxu0 %v3643_v35  ;;  %4538 = vmatprep.subr.mxu1 %v7788_v27  ;;  %v3849_v23 = vld [vmem:[#allocation9 + $0x408] sm:$0xff]  ;;  %v3975_v46 = vld [vmem:[#allocation12 + $0x78] sm:$0xff]  ;;  %v3974_v53 = vld [vmem:[#allocation12 + $0x70] sm:$0xff] }
 0x3f2   :  { %4425 = vmatprep.subr.mxu0 %v3658_v34  ;;  %4539 = vmatpush3.msra.mxu1 %v3975_v46  ;;  %v3973_v12 = vld [vmem:[#allocation12 + $0x68] sm:$0xff]  ;;  %v3972_v20 = vld [vmem:[#allocation12 + $0x60] sm:$0xff]  ;;  %v3971_v51 = vld [vmem:[#allocation12 + $0x58] sm:$0xff] }
 0x3f3   :  { %4426 = vmatpush3.msra.mxu0 %v3642_v62  ;;  %4540 = vmatprep.subr.mxu1 %v7788_v27  ;;  %v3970_v8 = vld [vmem:[#allocation12 + $0x50] sm:$0xff]  ;;  %v3969_v42 = vld [vmem:[#allocation12 + $0x48] sm:$0xff]  ;;  %v3968_v33 = vld [vmem:[#allocation12 + $0x40] sm:$0xff] }
 0x3f4   :  { %4427 = vmatprep.subr.mxu0 %v3657_v30  ;;  %4541 = vmatpush3.msra.mxu1 %v3974_v53  ;;  %v3967_v0 = vld [vmem:[#allocation12 + $0x38] sm:$0xff]  ;;  %v3966_v1 = vld [vmem:[#allocation12 + $0x30] sm:$0xff]  ;;  %v3965_v21 = vld [vmem:[#allocation12 + $0x28] sm:$0xff] }
 0x3f5   :  { %4428 = vmatpush3.msra.mxu0 %v3641_v16  ;;  %4542 = vmatprep.subr.mxu1 %v7788_v27  ;;  %v3964_v61 = vld [vmem:[#allocation12 + $0x20] sm:$0xff]  ;;  %v3963_v11 = vld [vmem:[#allocation12 + $0x18] sm:$0xff]  ;;  %v3962_v47 = vld [vmem:[#allocation12 + $0x10] sm:$0xff] }
 0x3f6   :  { %4429 = vmatprep.subr.mxu0 %v3656_v60  ;;  %4543 = vmatpush3.msra.mxu1 %v3973_v12  ;;  %v3961_v43 = vld [vmem:[#allocation12 + $0x8] sm:$0xff]  ;;  %v3960_v7 = vld [vmem:[#allocation12] sm:$0xff]  ;;  %v4064_v26 = vld [vmem:[#allocation15 + $0x50] sm:$0xff] }
 0x3f7   :  { %4430 = vmatpush3.msra.mxu0 %v3640_v56  ;;  %4544 = vmatprep.subr.mxu1 %v7788_v27  ;;  %v4069_v13 = vld [vmem:[#allocation15 + $0x78] sm:$0xff]  ;;  %v4067_v55 = vld [vmem:[#allocation15 + $0x68] sm:$0xff]  ;;  %v4066_v19 = vld [vmem:[#allocation15 + $0x60] sm:$0xff] }
 0x3f8   :  { %3737 = vmatmul.mubr.f32.vlgmr.msra.gmra.mxu0 %v3420_v39  ;;  %4469 = vmatprep.subr.mxu0 %v3879_v54  ;;  %v3857_v39 = vld [vmem:[#allocation9 + $0x448] sm:$0xff]  ;;  %v4065_v44 = vld [vmem:[#allocation15 + $0x58] sm:$0xff]  ;;  %v4060_v34 = vld [vmem:[#allocation15 + $0x30] sm:$0xff] }
 0x3f9   :  { %4470 = vmatpush3.msra.mxu0 %v3863_v2  ;;  %3944 = vmatprep.mubr.f32.mxu0 %v3433_v3  ;;  %v4063_v3 = vld [vmem:[#allocation15 + $0x48] sm:$0xff]  ;;  %v4062_v41 = vld [vmem:[#allocation15 + $0x40] sm:$0xff]  ;;  %v4061_v35 = vld [vmem:[#allocation15 + $0x38] sm:$0xff] }
 0x3fa   :  { %4471 = vmatprep.subr.mxu0 %v3878_v29  ;;  %4545 = vmatpush3.msra.mxu1 %v3972_v20  ;;  %v4059_v62 = vld [vmem:[#allocation15 + $0x28] sm:$0xff]  ;;  %v4058_v30 = vld [vmem:[#allocation15 + $0x20] sm:$0xff]  ;;  %v4057_v16 = vld [vmem:[#allocation15 + $0x18] sm:$0xff] }
 0x3fb   :  { %4472 = vmatpush3.msra.mxu0 %v3862_v17  ;;  %4546 = vmatprep.subr.mxu1 %v7788_v27 }
 0x3fc   :  { %4473 = vmatprep.subr.mxu0 %v3877_v18  ;;  %4547 = vmatpush3.msra.mxu1 %v3971_v51 }
 0x3fd   :  { %4474 = vmatpush3.msra.mxu0 %v3861_v52  ;;  %4548 = vmatprep.subr.mxu1 %v7788_v27 }
 0x3fe   :  { %4475 = vmatprep.subr.mxu0 %v3876_v37  ;;  %4549 = vmatpush3.msra.mxu1 %v3970_v8 }
 0x3ff   :  { %4476 = vmatpush3.msra.mxu0 %v3860_v24  ;;  %4550 = vmatprep.subr.mxu1 %v7788_v27 }
 0x400   :  { %4477 = vmatprep.subr.mxu0 %v3875_v22  ;;  %4551 = vmatpush3.msra.mxu1 %v3969_v42 }
 0x401   :  { %4478 = vmatpush3.msra.mxu0 %v3859_v63  ;;  %4552 = vmatprep.subr.mxu1 %v7788_v27 }
 0x402   :  { %4479 = vmatprep.subr.mxu0 %v3874_v31  ;;  %4553 = vmatpush3.msra.mxu1 %v3968_v33 }
 0x403   :  { %4480 = vmatpush3.msra.mxu0 %v3858_v10  ;;  %4554 = vmatprep.subr.mxu1 %v7788_v27 }
 0x404   :  { %4481 = vmatprep.subr.mxu0 %v3873_v40  ;;  %4555 = vmatpush3.msra.mxu1 %v3967_v0 }
 0x405   :  { %4482 = vmatpush3.msra.mxu0 %v3857_v39  ;;  %4556 = vmatprep.subr.mxu1 %v7788_v27 }
 0x406   :  { %4483 = vmatprep.subr.mxu0 %v3872_v4  ;;  %4557 = vmatpush3.msra.mxu1 %v3966_v1 }
 0x407   :  { %4484 = vmatpush3.msra.mxu0 %v3856_v45  ;;  %4558 = vmatprep.subr.mxu1 %v7788_v27 }
 0x408   :  { %4485 = vmatprep.subr.mxu0 %v3871_v49  ;;  %4559 = vmatpush3.msra.mxu1 %v3965_v21  ;;  %v4326_v49 = vld [vmem:[#allocation10] ss:$0 sm:$0xff] }
 0x409   :  { %4486 = vmatpush3.msra.mxu0 %v3855_v6  ;;  %4560 = vmatprep.subr.mxu1 %v7788_v27 }
 0x40a   :  { %4487 = vmatprep.subr.mxu0 %v3870_v28  ;;  %4561 = vmatpush3.msra.mxu1 %v3964_v61 }
 0x40b   :  { %4488 = vmatpush3.msra.mxu0 %v3854_v57  ;;  %4562 = vmatprep.subr.mxu1 %v7788_v27 }
 0x40c   :  { %4489 = vmatprep.subr.mxu0 %v3869_v15  ;;  %4563 = vmatpush3.msra.mxu1 %v3963_v11  ;;  %v4056_v15 = vld [vmem:[#allocation15 + $0x10] sm:$0xff] }
 0x40d   :  { %4490 = vmatpush3.msra.mxu0 %v3853_v32  ;;  %4564 = vmatprep.subr.mxu1 %v7788_v27  ;;  %v4055_v32 = vld [vmem:[#allocation15 + $0x8] sm:$0xff] }
 0x40e   :  { %4491 = vmatprep.subr.mxu0 %v3868_v59  ;;  %4565 = vmatpush3.msra.mxu1 %v3962_v47  ;;  %v4054_v59 = vld [vmem:[#allocation15] sm:$0xff] }
 0x40f   :  { %4492 = vmatpush3.msra.mxu0 %v3852_v36  ;;  %4566 = vmatprep.subr.mxu1 %v7788_v27  ;;  %v4327_v36 = vld [vmem:[#allocation13] ss:$0 sm:$0xff] }
 0x410   :  { %4493 = vmatprep.subr.mxu0 %v3867_v48  ;;  %4567 = vmatpush3.msra.mxu1 %v3961_v43 }
 0x411   :  { %4494 = vmatpush3.msra.mxu0 %v3851_v25  ;;  %4568 = vmatprep.subr.mxu1 %v7788_v27 }
 0x412   :  { %4495 = vmatprep.subr.mxu0 %v3866_v58  ;;  %4569 = vmatpush3.msra.mxu1 %v3960_v7 }
 0x413   :  { %4496 = vmatpush3.msra.mxu0 %v3850_v5  ;;  %4570 = vmatprep.mubr.msk.f32.mxu1 %vm4864_vm2, %v7788_v27 }
 0x414   :  { %4497 = vmatprep.subr.mxu0 %v3865_v50  ;;  %v4328_v50 = vld [vmem:[#allocation16] ss:$0 sm:$0xff] }
 0x415   :  { %4498 = vmatpush3.msra.mxu0 %v3849_v23 }
 0x416   :  { %4499 = vmatprep.subr.mxu0 %v3864_v14 }
 0x417   :  { %4500 = vmatpush3.msra.mxu0 %v3848_v9 }
 0x418   :  { %3945 = vmatmul.mubr.f32.vlgmr.msra.gmra.mxu0 %v3432_v38  ;;  %4573 = vmatprep.subr.mxu0 %v7788_v27  ;;  %v4068_v38 = vld [vmem:[#allocation15 + $0x70] sm:$0xff] }
 0x419   :  { %4605 = vmatprep.mubr.msk.f32.mxu0 %vm4864_vm2, %v7788_v27  ;;  %4574 = vmatpush3.msra.mxu0 %v4069_v13 }
 0x41a   :  { %4575 = vmatprep.subr.mxu0 %v7788_v27 }
 0x41b   :  { %4576 = vmatpush3.msra.mxu0 %v4068_v38 }
 0x41c   :  { %4577 = vmatprep.subr.mxu0 %v7788_v27 }
 0x41d   :  { %4578 = vmatpush3.msra.mxu0 %v4067_v55 }
 0x41e   :  { %4579 = vmatprep.subr.mxu0 %v7788_v27 }
 0x41f   :  { %4580 = vmatpush3.msra.mxu0 %v4066_v19 }
 0x420   :  { %4581 = vmatprep.subr.mxu0 %v7788_v27 }
 0x421   :  { %4582 = vmatpush3.msra.mxu0 %v4065_v44 }
 0x422   :  { %4583 = vmatprep.subr.mxu0 %v7788_v27 }
 0x423   :  { %4584 = vmatpush3.msra.mxu0 %v4064_v26 }
 0x424   :  { %4585 = vmatprep.subr.mxu0 %v7788_v27 }
 0x425   :  { %4586 = vmatpush3.msra.mxu0 %v4063_v3 }
 0x426   :  { %4587 = vmatprep.subr.mxu0 %v7788_v27 }
 0x427   :  { %4588 = vmatpush3.msra.mxu0 %v4062_v41 }
 0x428   :  { %4589 = vmatprep.subr.mxu0 %v7788_v27 }
 0x429   :  { %4590 = vmatpush3.msra.mxu0 %v4061_v35 }
 0x42a   :  { %4591 = vmatprep.subr.mxu0 %v7788_v27 }
 0x42b   :  { %4592 = vmatpush3.msra.mxu0 %v4060_v34 }
 0x42c   :  { %4593 = vmatprep.subr.mxu0 %v7788_v27 }
 0x42d   :  { %4594 = vmatpush3.msra.mxu0 %v4059_v62 }
 0x42e   :  { %4595 = vmatprep.subr.mxu0 %v7788_v27 }
 0x42f   :  { %4596 = vmatpush3.msra.mxu0 %v4058_v30 }
 0x430   :  { %4597 = vmatprep.subr.mxu0 %v7788_v27 }
 0x431   :  { %4598 = vmatpush3.msra.mxu0 %v4057_v16 }
 0x432   :  { %4599 = vmatprep.subr.mxu0 %v7788_v27 }
 0x433   :  { %4600 = vmatpush3.msra.mxu0 %v4056_v15 }
 0x434   :  { %4601 = vmatprep.subr.mxu0 %v7788_v27 }
 0x435   :  { %4602 = vmatpush3.msra.mxu0 %v4055_v32 }
 0x436   :  { %4603 = vmatprep.subr.mxu0 %v7788_v27 }
 0x437   :  { %4604 = vmatpush3.msra.mxu0 %v4054_v59 }
 0x48f   :  { %v4396_v54 = vpop.f32.mrf.mxu1 }
 0x491   :  { %v4397_v29 = vpop.f32.mrf.mxu1 }
 0x492   :  { %v4398_v37 = vadd.f32 %v4397_v29, %v4396_v54 }
 0x497   :  { %v4361_v60 = vpop.f32.mrf.mxu0 }
 0x499   :  { %v4362_v56 = vpop.f32.mrf.mxu0 }
 0x49a   :  { %v4363_v18 = vadd.f32 %v4362_v56, %v4361_v60 }
 0x49c   :  { %v3636_v22 = vadd.f32 %v4398_v37, %v4363_v18 }
 0x4b0   :  { %v4466_v52 = vpop.f32.mrf.mxu1 }
 0x4b2   :  { %v4467_v63 = vpop.f32.mrf.mxu1 }
 0x4b3   :  { %v4468_v40 = vadd.f32 %v4467_v63, %v4466_v52 }
 0x4b8   :  { %v4431_v2 = vpop.f32.mrf.mxu0 }
 0x4ba   :  { %v4432_v17 = vpop.f32.mrf.mxu0 }
 0x4bb   :  { %v4433_v24 = vadd.f32 %v4432_v17, %v4431_v2 }
 0x4bd   :  { %v3742_v31 = vadd.f32 %v4433_v24, %v3636_v22 }
 0x4bf   :  { %v3846_v4 = vadd.f32 %v4468_v40, %v3742_v31 }
 0x4d8   :  { %v4501_v10 = vpop.f32.mrf.mxu0 }
 0x4da   :  { %v4502_v39 = vpop.f32.mrf.mxu0 }
 0x4db   :  { %v4503_v45 = vadd.f32 %v4502_v39, %v4501_v10 }
 0x4dd   :  { %v3950_v6 = vadd.f32 %v4503_v45, %v3846_v4 }
 0x4df   :  { %v3958_v28 = vadd.f32 %v4326_v49, %v3950_v6 }
 0x4e1   :  { %v3959_v57 = vmax.f32 %v3958_v28, 0.0 }
 0x4e3   :  { %4571 = vmatmul.mubr.f32.vlgmr.msra.gmra.mxu1 %v3959_v57 }
 0x5a3   :  { %v4049_v48 = vpop.f32.mrf.mxu1 }
 0x5a4   :  { %v4050_v25 = vadd.f32 %v4327_v36, %v4049_v48 }
 0x5a5   :  { %v4572_v58 = vpop.f32.mrf.mxu1 }
 0x5a6   :  { %v4053_v5 = vmax.f32 %v4050_v25, 0.0 }
 0x5a8   :  { %4606 = vmatmul.mubr.f32.vlgmr.msra.gmra.mxu0 %v4053_v5 }
 0x668   :  { %v4143_v23 = vpop.f32.mrf.mxu0 }
 0x669   :  { %v4144_v14 = vadd.f32 %v4328_v50, %v4143_v23 }
 0x66a   :  { %v4607_v9 = vpop.f32.mrf.mxu0 }
 0x66b   :  { %4147 = vst [vmem:[%s7294_s11] sm:$0xff] %v4144_v14 }
 0x66c   :  { %4152 = vsyncpa [#allocation3], 1 }
 0x66d   :  { %4153 = vsyncpa [#allocation5], 1 }
 0x66e   :  { %4154 = vsyncpa [#allocation8], 1 }
 0x66f   :  { %4155 = vsyncpa [#allocation11], 1 }
 0x670   :  { %4156 = vsyncpa [#allocation14], 1 }
 0x671   :  { %4157 = vsyncpa [#allocation17], 1 }

</bundles_post_ra>
